<compile_context>
chip_gen: v5e
topology: v5e:2x2
jax: 0.10.0
libtpu: 0.0.40
codegen_flags: <defaults>
</compile_context>

<pallas_src>
import jax
import jax.numpy as jnp
from jax.experimental import pallas as pl
from jax.experimental.pallas import tpu as pltpu


# ---------------------------------------------------------------------------
# Kernel
# ---------------------------------------------------------------------------
def modality_integrator_kernel(
    a_ref, v_ref, s_ref,                 # activations (B,Fa), (B,Fv), (B,Fs) f32
    wa_ref, wv_ref, ws_ref,              # per-modality weights (Fa,U),(Fv,U),(Fs,U)
    wfa_ref, wfv_ref, wfs_ref,           # fusion weight split   (U, Un) x3
    b_ref,                               # folded bias           (1, Un) f32
    out_ref,                             # output                (B, Un) f32
):
    wdt = wa_ref.dtype                   # bf16 (default) or f32

    # Stage 1: per-modality transforms (biases already folded into b_ref).
    # MXU matmuls, f32 accumulation.
    ta = jnp.dot(a_ref[...].astype(wdt), wa_ref[...],
                 preferred_element_type=jnp.float32)
    tv = jnp.dot(v_ref[...].astype(wdt), wv_ref[...],
                 preferred_element_type=jnp.float32)
    ts = jnp.dot(s_ref[...].astype(wdt), ws_ref[...],
                 preferred_element_type=jnp.float32)

    # Stage 2: fusion layer on the (implicit) concatenation along dim=1.
    fused = (
        jnp.dot(ta.astype(wdt), wfa_ref[...], preferred_element_type=jnp.float32)
        + jnp.dot(tv.astype(wdt), wfv_ref[...], preferred_element_type=jnp.float32)
        + jnp.dot(ts.astype(wdt), wfs_ref[...], preferred_element_type=jnp.float32)
        + b_ref[...]
    )
    out_ref[...] = fused.astype(out_ref.dtype)


# ---------------------------------------------------------------------------
# One-time parameter preparation (hoisted out of the per-call path)
# ---------------------------------------------------------------------------
def prepare_params(params, weight_dtype=jnp.bfloat16):
    """params: PyTorch-convention (out,in) weights + (out,) biases.

    Returns kernel-ready arrays: (in,out) weights in `weight_dtype`, fusion
    weight split by modality, and a single folded f32 output bias.
    """
    U = params["fusion_w"].shape[0]

    wa = params["audio_w"].T                      # (Fa, U)
    wv = params["video_w"].T                      # (Fv, U)
    ws = params["screen_w"].T                     # (Fs, U)
    wf = params["fusion_w"].T                     # (3U, U)
    wf_a, wf_v, wf_s = wf[:U], wf[U:2 * U], wf[2 * U:]

    # Exact bias fold (in f32): b' = ba@Wf_a + bv@Wf_v + bs@Wf_s + bf.
    b = (
        params["audio_b"].reshape(1, U) @ wf_a
        + params["video_b"].reshape(1, U) @ wf_v
        + params["screen_b"].reshape(1, U) @ wf_s
        + params["fusion_b"].reshape(1, U)
    ).astype(jnp.float32)

    c = lambda w: w.astype(weight_dtype)
    return {
        "wa": c(wa), "wv": c(wv), "ws": c(ws),
        "wfa": c(wf_a), "wfv": c(wf_v), "wfs": c(wf_s),
        "b": b,
    }


# ---------------------------------------------------------------------------
# Wrapper
# ---------------------------------------------------------------------------
def modality_integrator(audio, video, screen, prepped, *, num_col_tiles=1):
    """Fused forward pass.  `prepped` comes from prepare_params().

    num_col_tiles=1  -> single whole-array block (best on v5e/v6e, 1 TC).
    num_col_tiles=2  -> "parallel" grid over output columns (uses both v7x TCs).
    """
    B, Fa = audio.shape
    Fv = video.shape[1]
    Fs = screen.shape[1]
    U = prepped["wfa"].shape[1]
    assert U % num_col_tiles == 0
    tn = U // num_col_tiles
    # Keep column tiles lane-aligned (128) when tiling; fall back to 1 tile.
    if num_col_tiles > 1 and tn % 128 != 0:
        num_col_tiles, tn = 1, U

    # Advisory cost hint for XLA's scheduler around this short, BW-bound call.
    wbytes = sum(int(x.size) * x.dtype.itemsize for x in prepped.values())
    abytes = (audio.size + video.size + screen.size) * 4
    flops = 2 * B * (Fa + Fv + Fs) * U + 2 * B * (3 * U) * U
    cost = pl.CostEstimate(
        flops=flops, transcendentals=0,
        bytes_accessed=wbytes + abytes + B * U * 4,
    )

    # Whole-array blocks (constant index_map -> DMA'd once, reused per tile).
    full = lambda shape: pl.BlockSpec(shape, lambda j: (0, 0))
    # Blocks tiled along the output (unified) columns.
    coltile = lambda rows: pl.BlockSpec((rows, tn), lambda j: (0, j))

    return pl.pallas_call(
        modality_integrator_kernel,
        out_shape=jax.ShapeDtypeStruct((B, U), jnp.float32),
        grid=(num_col_tiles,),
        in_specs=[
            full((B, Fa)), full((B, Fv)), full((B, Fs)),      # activations
            full((Fa, U)), full((Fv, U)), full((Fs, U)),      # modality weights
            coltile(U), coltile(U), coltile(U),               # fusion weight split
            coltile(1),                                       # folded bias
        ],
        out_specs=coltile(B),
        compiler_params=pltpu.CompilerParams(
            dimension_semantics=("parallel",)),
        cost_estimate=cost,
    )(
        audio, video, screen,
        prepped["wa"], prepped["wv"], prepped["ws"],
        prepped["wfa"], prepped["wfv"], prepped["wfs"],
        prepped["b"],
    )


# ---------------------------------------------------------------------------
# Test harness
# ---------------------------------------------------------------------------
def _init_params(key, audio_feat=128, video_feat=256, screen_feat=256, unified=512):
    ks = jax.random.split(key, 8)

    def lin(kw, kb, out_f, in_f):
        bound = 1.0 / jnp.sqrt(in_f)
        w = jax.random.uniform(kw, (out_f, in_f), jnp.float32, -bound, bound)
        b = jax.random.uniform(kb, (out_f,), jnp.float32, -bound, bound)
        return w, b

    aw, ab = lin(ks[0], ks[1], unified, audio_feat)
    vw, vb = lin(ks[2], ks[3], unified, video_feat)
    sw, sb = lin(ks[4], ks[5], unified, screen_feat)
    fw, fb = lin(ks[6], ks[7], unified, unified * 3)
    return {
        "audio_w": aw, "audio_b": ab,
        "video_w": vw, "video_b": vb,
        "screen_w": sw, "screen_b": sb,
        "fusion_w": fw, "fusion_b": fb,
    }


def _reference(audio, video, screen, p):
    ta = audio @ p["audio_w"].T + p["audio_b"]
    tv = video @ p["video_w"].T + p["video_b"]
    ts = screen @ p["screen_w"].T + p["screen_b"]
    cat = jnp.concatenate([ta, tv, ts], axis=1)
    return cat @ p["fusion_w"].T + p["fusion_b"]


if __name__ == "__main__":
    key = jax.random.PRNGKey(0)
    k_a, k_v, k_s, k_p = jax.random.split(key, 4)

    B = 2
    AUDIO_F, VIDEO_F, SCREEN_F, UNIFIED = 128, 256, 256, 512

    audio = jax.random.normal(k_a, (B, AUDIO_F), jnp.float32)
    video = jax.random.normal(k_v, (B, VIDEO_F), jnp.float32)
    screen = jax.random.normal(k_s, (B, SCREEN_F), jnp.float32)
    params = _init_params(k_p, AUDIO_F, VIDEO_F, SCREEN_F, UNIFIED)

    ref = _reference(audio, video, screen, params)

    # 1) f32-weight path: exact-structure check (transpose + split + bias fold).
    prepped_f32 = prepare_params(params, weight_dtype=jnp.float32)
    out_f32 = jax.block_until_ready(
        modality_integrator(audio, video, screen, prepped_f32))
    assert out_f32.shape == (B, UNIFIED)
    assert jnp.allclose(out_f32, ref, atol=1e-3, rtol=1e-3), "f32 mismatch vs ref"

    # 2) Default bf16-weight path (half the HBM weight traffic).
    prepped = prepare_params(params)  # bf16 weights
    out = jax.block_until_ready(
        modality_integrator(audio, video, screen, prepped))
    assert out.shape == (B, UNIFIED)
    assert jnp.allclose(out, ref, atol=5e-2, rtol=5e-2), "bf16 mismatch vs ref"

    # 3) Column-tiled variant (v7x two-TensorCore path) must match untiled.
    out_t2 = jax.block_until_ready(
        modality_integrator(audio, video, screen, prepped, num_col_tiles=2))
    assert jnp.allclose(out_t2, out, atol=1e-5, rtol=1e-5), "tiled path mismatch"

    print("KERNEL_OK")
</pallas_src>

<mosaic_0001>
module attributes {stable_mosaic.version = 11 : i64} {
  func.func @modality_integrator_kernel(%arg0: i32, %arg1: memref<2x128xf32, #tpu.memory_space<vmem>>, %arg2: memref<2x256xf32, #tpu.memory_space<vmem>>, %arg3: memref<2x256xf32, #tpu.memory_space<vmem>>, %arg4: memref<128x512xf32, #tpu.memory_space<vmem>>, %arg5: memref<256x512xf32, #tpu.memory_space<vmem>>, %arg6: memref<256x512xf32, #tpu.memory_space<vmem>>, %arg7: memref<512x512xf32, #tpu.memory_space<vmem>>, %arg8: memref<512x512xf32, #tpu.memory_space<vmem>>, %arg9: memref<512x512xf32, #tpu.memory_space<vmem>>, %arg10: memref<1x512xf32, #tpu.memory_space<vmem>>, %arg11: memref<2x512xf32, #tpu.memory_space<vmem>>) attributes {dimension_semantics = [#tpu.dimension_semantics<parallel>], iteration_bounds = array<i64: 1>, scalar_prefetch = 0 : i64, scratch_operands = 0 : i64, tpu.core_type = #tpu.core_type<tc>, window_params = [{pipeline_mode = #tpu.pipeline_mode<synchronous>, transform_indices = @transform_0, window_bounds = array<i64: 2, 128>}, {pipeline_mode = #tpu.pipeline_mode<synchronous>, transform_indices = @transform_1, window_bounds = array<i64: 2, 256>}, {pipeline_mode = #tpu.pipeline_mode<synchronous>, transform_indices = @transform_2, window_bounds = array<i64: 2, 256>}, {pipeline_mode = #tpu.pipeline_mode<synchronous>, transform_indices = @transform_3, window_bounds = array<i64: 128, 512>}, {pipeline_mode = #tpu.pipeline_mode<synchronous>, transform_indices = @transform_4, window_bounds = array<i64: 256, 512>}, {pipeline_mode = #tpu.pipeline_mode<synchronous>, transform_indices = @transform_5, window_bounds = array<i64: 256, 512>}, {transform_indices = @transform_6, window_bounds = array<i64: 512, 512>}, {transform_indices = @transform_7, window_bounds = array<i64: 512, 512>}, {transform_indices = @transform_8, window_bounds = array<i64: 512, 512>}, {transform_indices = @transform_9, window_bounds = array<i64: 1, 512>}, {transform_indices = @transform_10, window_bounds = array<i64: 2, 512>}]} {
    %c0 = arith.constant 0 : index
    %c0_0 = arith.constant 0 : index
    %0 = vector.load %arg1[%c0, %c0_0] : memref<2x128xf32, #tpu.memory_space<vmem>>, vector<2x128xf32>
    %c0_1 = arith.constant 0 : index
    %c0_2 = arith.constant 0 : index
    %1 = vector.load %arg4[%c0_1, %c0_2] : memref<128x512xf32, #tpu.memory_space<vmem>>, vector<128x512xf32>
    %cst = arith.constant dense<0.000000e+00> : vector<2x512xf32>
    %2 = tpu.matmul %0, %1, %cst {dimension_numbers = #tpu.dot_dimension_numbers<[1], [0], [0], [1], [0, 0, 1, 1], [], []>} : vector<2x128xf32>, vector<128x512xf32>, vector<2x512xf32> -> vector<2x512xf32>
    %c0_3 = arith.constant 0 : index
    %c0_4 = arith.constant 0 : index
    %3 = vector.load %arg2[%c0_3, %c0_4] : memref<2x256xf32, #tpu.memory_space<vmem>>, vector<2x256xf32>
    %c0_5 = arith.constant 0 : index
    %c0_6 = arith.constant 0 : index
    %4 = vector.load %arg5[%c0_5, %c0_6] : memref<256x512xf32, #tpu.memory_space<vmem>>, vector<256x512xf32>
    %cst_7 = arith.constant dense<0.000000e+00> : vector<2x512xf32>
    %5 = tpu.matmul %3, %4, %cst_7 {dimension_numbers = #tpu.dot_dimension_numbers<[1], [0], [0], [1], [0, 0, 1, 1], [], []>} : vector<2x256xf32>, vector<256x512xf32>, vector<2x512xf32> -> vector<2x512xf32>
    %c0_8 = arith.constant 0 : index
    %c0_9 = arith.constant 0 : index
    %6 = vector.load %arg3[%c0_8, %c0_9] : memref<2x256xf32, #tpu.memory_space<vmem>>, vector<2x256xf32>
    %c0_10 = arith.constant 0 : index
    %c0_11 = arith.constant 0 : index
    %7 = vector.load %arg6[%c0_10, %c0_11] : memref<256x512xf32, #tpu.memory_space<vmem>>, vector<256x512xf32>
    %cst_12 = arith.constant dense<0.000000e+00> : vector<2x512xf32>
    %8 = tpu.matmul %6, %7, %cst_12 {dimension_numbers = #tpu.dot_dimension_numbers<[1], [0], [0], [1], [0, 0, 1, 1], [], []>} : vector<2x256xf32>, vector<256x512xf32>, vector<2x512xf32> -> vector<2x512xf32>
    %c0_13 = arith.constant 0 : index
    %c0_14 = arith.constant 0 : index
    %9 = vector.load %arg7[%c0_13, %c0_14] : memref<512x512xf32, #tpu.memory_space<vmem>>, vector<512x512xf32>
    %cst_15 = arith.constant dense<0.000000e+00> : vector<2x512xf32>
    %10 = tpu.matmul %2, %9, %cst_15 {dimension_numbers = #tpu.dot_dimension_numbers<[1], [0], [0], [1], [0, 0, 1, 1], [], []>} : vector<2x512xf32>, vector<512x512xf32>, vector<2x512xf32> -> vector<2x512xf32>
    %c0_16 = arith.constant 0 : index
    %c0_17 = arith.constant 0 : index
    %11 = vector.load %arg8[%c0_16, %c0_17] : memref<512x512xf32, #tpu.memory_space<vmem>>, vector<512x512xf32>
    %cst_18 = arith.constant dense<0.000000e+00> : vector<2x512xf32>
    %12 = tpu.matmul %5, %11, %cst_18 {dimension_numbers = #tpu.dot_dimension_numbers<[1], [0], [0], [1], [0, 0, 1, 1], [], []>} : vector<2x512xf32>, vector<512x512xf32>, vector<2x512xf32> -> vector<2x512xf32>
    %13 = arith.addf %10, %12 : vector<2x512xf32>
    %c0_19 = arith.constant 0 : index
    %c0_20 = arith.constant 0 : index
    %14 = vector.load %arg9[%c0_19, %c0_20] : memref<512x512xf32, #tpu.memory_space<vmem>>, vector<512x512xf32>
    %cst_21 = arith.constant dense<0.000000e+00> : vector<2x512xf32>
    %15 = tpu.matmul %8, %14, %cst_21 {dimension_numbers = #tpu.dot_dimension_numbers<[1], [0], [0], [1], [0, 0, 1, 1], [], []>} : vector<2x512xf32>, vector<512x512xf32>, vector<2x512xf32> -> vector<2x512xf32>
    %16 = arith.addf %13, %15 : vector<2x512xf32>
    %c0_22 = arith.constant 0 : index
    %c0_23 = arith.constant 0 : index
    %17 = vector.load %arg10[%c0_22, %c0_23] : memref<1x512xf32, #tpu.memory_space<vmem>>, vector<1x512xf32>
    %18 = vector.broadcast %17 : vector<1x512xf32> to vector<2x512xf32>
    %19 = arith.addf %16, %18 : vector<2x512xf32>
    %c0_24 = arith.constant 0 : index
    %c0_25 = arith.constant 0 : index
    %20 = vector.load %arg11[%c0_24, %c0_25] : memref<2x512xf32, #tpu.memory_space<vmem>>, vector<2x512xf32>
    tpu.vector_store %arg11[%c0_24, %c0_25], %19 {strides = array<i32>} : memref<2x512xf32, #tpu.memory_space<vmem>>, vector<2x512xf32>,
    return
  }
  func.func @transform_0(%arg0: i32) -> (i32, i32) {
    %c0_i32 = arith.constant 0 : i32
    %c0_i32_0 = arith.constant 0 : i32
    %c0_i32_1 = arith.constant 0 : i32
    return %c0_i32, %c0_i32_0 : i32, i32
  }
  func.func @transform_1(%arg0: i32) -> (i32, i32) {
    %c0_i32 = arith.constant 0 : i32
    %c0_i32_0 = arith.constant 0 : i32
    %c0_i32_1 = arith.constant 0 : i32
    return %c0_i32, %c0_i32_0 : i32, i32
  }
  func.func @transform_2(%arg0: i32) -> (i32, i32) {
    %c0_i32 = arith.constant 0 : i32
    %c0_i32_0 = arith.constant 0 : i32
    %c0_i32_1 = arith.constant 0 : i32
    return %c0_i32, %c0_i32_0 : i32, i32
  }
  func.func @transform_3(%arg0: i32) -> (i32, i32) {
    %c0_i32 = arith.constant 0 : i32
    %c0_i32_0 = arith.constant 0 : i32
    %c0_i32_1 = arith.constant 0 : i32
    return %c0_i32, %c0_i32_0 : i32, i32
  }
  func.func @transform_4(%arg0: i32) -> (i32, i32) {
    %c0_i32 = arith.constant 0 : i32
    %c0_i32_0 = arith.constant 0 : i32
    %c0_i32_1 = arith.constant 0 : i32
    return %c0_i32, %c0_i32_0 : i32, i32
  }
  func.func @transform_5(%arg0: i32) -> (i32, i32) {
    %c0_i32 = arith.constant 0 : i32
    %c0_i32_0 = arith.constant 0 : i32
    %c0_i32_1 = arith.constant 0 : i32
    return %c0_i32, %c0_i32_0 : i32, i32
  }
  func.func @transform_6(%arg0: i32) -> (i32, i32) {
    %c0_i32 = arith.constant 0 : i32
    %c0_i32_0 = arith.constant 0 : i32
    return %c0_i32, %arg0 : i32, i32
  }
  func.func @transform_7(%arg0: i32) -> (i32, i32) {
    %c0_i32 = arith.constant 0 : i32
    %c0_i32_0 = arith.constant 0 : i32
    return %c0_i32, %arg0 : i32, i32
  }
  func.func @transform_8(%arg0: i32) -> (i32, i32) {
    %c0_i32 = arith.constant 0 : i32
    %c0_i32_0 = arith.constant 0 : i32
    return %c0_i32, %arg0 : i32, i32
  }
  func.func @transform_9(%arg0: i32) -> (i32, i32) {
    %c0_i32 = arith.constant 0 : i32
    %c0_i32_0 = arith.constant 0 : i32
    return %c0_i32, %arg0 : i32, i32
  }
  func.func @transform_10(%arg0: i32) -> (i32, i32) {
    %c0_i32 = arith.constant 0 : i32
    %c0_i32_0 = arith.constant 0 : i32
    return %c0_i32, %arg0 : i32, i32
  }
}

</mosaic_0001>

<bundles_post_ra>
// kernel: tpu_custom_call.1
= control target key start
LH: loop header
LB: loop body
LE: loop exit
PB: predicated region body
PF: predicated region fallthrough
CT: control target
= control target key end

     0   :  { %15 = vsyncpa [#allocation3], 0  ;;  %s3204_s0 = inlined_call_operand.hbm [shape: f32[2,128], index: 0, kind: input, shape index: {}]   ;;  %s3205_s1 = inlined_call_operand.hbm [shape: f32[2,256], index: 1, kind: input, shape index: {}]   ;;  %s3206_s2 = inlined_call_operand.hbm [shape: f32[2,256], index: 2, kind: input, shape index: {}]   ;;  %s3207_s3 = inlined_call_operand.hbm [shape: f32[128,512], index: 3, kind: input, shape index: {}]   ;;  %s3208_s4 = inlined_call_operand.hbm [shape: f32[256,512], index: 4, kind: input, shape index: {}]   ;;  %s3209_s5 = inlined_call_operand.hbm [shape: f32[256,512], index: 5, kind: input, shape index: {}]   ;;  %s3210_s6 = inlined_call_operand.hbm [shape: f32[512,512], index: 6, kind: input, shape index: {}]   ;;  %s3211_s7 = inlined_call_operand.hbm [shape: f32[512,512], index: 7, kind: input, shape index: {}]   ;;  %s3212_s8 = inlined_call_operand.hbm [shape: f32[512,512], index: 8, kind: input, shape index: {}]   ;;  %s3213_s9 = inlined_call_operand.vmem [shape: f32[1,512], index: 9, kind: input, shape index: {}]   ;;  %s3214_s10 = inlined_call_operand.hbm [shape: f32[2,512], index: 10, kind: output, shape index: {}]  }
   0x1   :  { %16 = vsyncpa [#allocation6], 0 }
   0x2   :  { %17 = vsyncpa [#allocation9], 0 }
   0x3   :  { %18 = vsyncpa [#allocation12], 0 }
   0x4   :  { %19 = vsyncpa [#allocation15], 0  ;;  %s37_s15 = sshll.u32 %s3205_s1, 4  ;;  %s38_s15 = int_to_ptr.hbm [resolvable:$true] %s37_s15 }
   0x5   :  { %20 = vsyncpa [#allocation4], 0  ;;  %s2951_s16 = smov [#allocation5]   ;;  %s58_s20 = sshll.u32 %s3207_s3, 4  ;;  %s59_s20 = int_to_ptr.hbm [resolvable:$true] %s58_s20 }
   0x6   :  { %s39_s17 = sshll.u32 %s2951_s16, 4  ;;  %s2952_s21 = smov [#allocation8]   ;;  %s40_s17 = int_to_ptr.vmem [resolvable:$true] %s39_s17 }
   0x7   :  { %42 = dma.hbm_to_vmem [thread:$0]  %s38_s15, 64, %s40_s17, [#allocation6]  }
   0x8   :  { %s60_s22 = sshll.u32 %s2952_s21, 4  ;;  %s2953_s23 = smov 512   ;;  %s61_s22 = int_to_ptr.vmem [resolvable:$true] %s60_s22 }
   0x9   :  { %s2954_s24 = smov 32   ;;  %s84_s26 = sshll.u32 %s3209_s5, 4  ;;  %s85_s26 = int_to_ptr.hbm [resolvable:$true] %s84_s26 }
   0xa   :  { %66 = dma.hbm_to_vmem [thread:$0]  %s59_s20, 8192, %s61_s22, [#allocation9], %s2953_s23, %s2953_s23, %s2954_s24  }
   0xb   :  { %s2955_s27 = smov [#allocation11]   ;;  %s110_s30 = sshll.u32 %s3211_s7, 4  ;;  %s111_s30 = int_to_ptr.hbm [resolvable:$true] %s110_s30 }
   0xc   :  { %s86_s28 = sshll.u32 %s2955_s27, 4  ;;  %s2956_s11 = smov [#allocation14]   ;;  %s87_s28 = int_to_ptr.vmem [resolvable:$true] %s86_s28 }
   0xd   :  { %92 = dma.hbm_to_vmem [thread:$0]  %s85_s26, 16384, %s87_s28, [#allocation12], %s2953_s23, %s2953_s23, %s2954_s24  }
   0xe   :  { %s112_s12 = sshll.u32 %s2956_s11, 4  ;;  %s26_s15 = sshll.u32 %s3204_s0, 4  ;;  %s113_s12 = int_to_ptr.vmem [resolvable:$true] %s112_s12  ;;  %s27_s15 = int_to_ptr.hbm [resolvable:$true] %s26_s15 }
   0xf   :  { %118 = dma.hbm_to_vmem [thread:$0]  %s111_s30, 32768, %s113_s12, [#allocation15], %s2953_s23, %s2953_s23, %s2954_s24  }
  0x10   :  { %s48_s7 = sshll.u32 %s3206_s2, 4  ;;  %s2957_s17 = smov [#allocation2]   ;;  %s49_s7 = int_to_ptr.hbm [resolvable:$true] %s48_s7 }
  0x11   :  { %s28_s18 = sshll.u32 %s2957_s17, 4  ;;  %s2958_s19 = smov [#allocation7]   ;;  %s29_s18 = int_to_ptr.vmem [resolvable:$true] %s28_s18 }
  0x12   :  { %31 = dma.hbm_to_vmem [thread:$0]  %s27_s15, 32, %s29_s18, [#allocation3]  }
  0x13   :  { %s50_s20 = sshll.u32 %s2958_s19, 4  ;;  %s71_s0 = sshll.u32 %s3208_s4, 4  ;;  %s51_s20 = int_to_ptr.vmem [resolvable:$true] %s50_s20  ;;  %s72_s0 = int_to_ptr.hbm [resolvable:$true] %s71_s0 }
  0x14   :  { %53 = dma.hbm_to_vmem [thread:$0]  %s49_s7, 64, %s51_s20, [#allocation6]  }
  0x15   :  { %s97_s26 = sshll.u32 %s3210_s6, 4  ;;  %s2959_s27 = smov [#allocation10]   ;;  %s98_s26 = int_to_ptr.hbm [resolvable:$true] %s97_s26 }
  0x16   :  { %s73_s2 = sshll.u32 %s2959_s27, 4  ;;  %s2960_s28 = smov [#allocation13]   ;;  %s74_s2 = int_to_ptr.vmem [resolvable:$true] %s73_s2 }
  0x17   :  { %79 = dma.hbm_to_vmem [thread:$0]  %s72_s0, 16384, %s74_s2, [#allocation9], %s2953_s23, %s2953_s23, %s2954_s24  }
  0x18   :  { %s99_s3 = sshll.u32 %s2960_s28, 4  ;;  %s123_s4 = sshll.u32 %s3212_s8, 4  ;;  %s100_s3 = int_to_ptr.vmem [resolvable:$true] %s99_s3  ;;  %s124_s4 = int_to_ptr.hbm [resolvable:$true] %s123_s4 }
  0x19   :  { %105 = dma.hbm_to_vmem [thread:$0]  %s98_s26, 32768, %s100_s3, [#allocation12], %s2953_s23, %s2953_s23, %s2954_s24  }
  0x1a   :  { %s2961_s6 = smov [#allocation16]  }
  0x1b   :  { %s125_s11 = sshll.u32 %s2961_s6, 4  ;;  %s126_s11 = int_to_ptr.vmem [resolvable:$true] %s125_s11 }
  0x1c   :  { %131 = dma.hbm_to_vmem [thread:$0]  %s124_s4, 32768, %s126_s11, [#allocation15], %s2953_s23, %s2953_s23, %s2954_s24  }
  0x1d   :  { %2939 = dma.done.wait [#allocation3], 32  }
  0x1e   :  { %2940 = vsyncadd [#allocation3], 4294967264 }
  0x1f   :  { %2941 = dma.done.wait [#allocation6], 128  }
  0x20   :  { %2942 = vsyncadd [#allocation6], 4294967168 }
  0x21   :  { %2943 = dma.done.wait [#allocation9], 24576  }
  0x22   :  { %2944 = vsyncadd [#allocation9], 4294942720 }
  0x23   :  { %2945 = dma.done.wait [#allocation12], 49152  }
  0x24   :  { %2946 = vsyncadd [#allocation12], 4294918144 }
  0x25   :  { %2947 = dma.done.wait [#allocation15], 65536  }
  0x26   :  { %2948 = vsyncadd [#allocation15], 4294901760  ;;  %v231_v0 = vld [vmem:[#allocation8 + $0x1e0] sm:$0xff]  ;;  %v232_v1 = vld [vmem:[#allocation8 + $0x1e8] sm:$0xff]  ;;  %vm2658_vm0 = vcmask 1041408   ;;  %vm2660_vm1 = vcmask 1045508  }
  0x27   :  { %v233_v2 = vld [vmem:[#allocation8 + $0x1f0] sm:$0xff]  ;;  %235 = vmatpush.msra.mxu0 %v231_v0  ;;  %255 = vmatpush.msra.mxu1 %v232_v1  ;;  %v234_v3 = vld [vmem:[#allocation8 + $0x1f8] sm:$0xff]  ;;  %v227_v4 = vld [vmem:[#allocation8 + $0x1c0] sm:$0xff]  ;;  %s2673_s14 = sshll.u32 %s3214_s10, 4  ;;  %vm2662_vm2 = vcmask 1043456   ;;  %s2674_s14 = int_to_ptr.hbm [resolvable:$true] %s2673_s14 }
  0x28   :  { %v228_v5 = vld [vmem:[#allocation8 + $0x1c8] sm:$0xff]  ;;  %275 = vmatpush.msra.mxu2 %v233_v2  ;;  %295 = vmatpush.msra.mxu3 %v234_v3  ;;  %v229_v6 = vld [vmem:[#allocation8 + $0x1d0] sm:$0xff]  ;;  %v230_v7 = vld [vmem:[#allocation8 + $0x1d8] sm:$0xff] }
  0x29   :  { %v223_v8 = vld [vmem:[#allocation8 + $0x1a0] sm:$0xff]  ;;  %236 = vmatpush.msra.mxu0 %v227_v4  ;;  %256 = vmatpush.msra.mxu1 %v228_v5  ;;  %v224_v9 = vld [vmem:[#allocation8 + $0x1a8] sm:$0xff]  ;;  %v225_v10 = vld [vmem:[#allocation8 + $0x1b0] sm:$0xff] }
  0x2a   :  { %v226_v11 = vld [vmem:[#allocation8 + $0x1b8] sm:$0xff]  ;;  %276 = vmatpush.msra.mxu2 %v229_v6  ;;  %296 = vmatpush.msra.mxu3 %v230_v7  ;;  %v219_v12 = vld [vmem:[#allocation8 + $0x180] sm:$0xff]  ;;  %v220_v13 = vld [vmem:[#allocation8 + $0x188] sm:$0xff] }
  0x2b   :  { %237 = vmatpush.msra.mxu0 %v223_v8  ;;  %257 = vmatpush.msra.mxu1 %v224_v9  ;;  %v221_v14 = vld [vmem:[#allocation8 + $0x190] sm:$0xff]  ;;  %v222_v15 = vld [vmem:[#allocation8 + $0x198] sm:$0xff]  ;;  %v215_v16 = vld [vmem:[#allocation8 + $0x160] sm:$0xff] }
  0x2c   :  { %277 = vmatpush.msra.mxu2 %v225_v10  ;;  %297 = vmatpush.msra.mxu3 %v226_v11  ;;  %v216_v17 = vld [vmem:[#allocation8 + $0x168] sm:$0xff]  ;;  %v217_v18 = vld [vmem:[#allocation8 + $0x170] sm:$0xff]  ;;  %v218_v19 = vld [vmem:[#allocation8 + $0x178] sm:$0xff] }
  0x2d   :  { %238 = vmatpush.msra.mxu0 %v219_v12  ;;  %258 = vmatpush.msra.mxu1 %v220_v13  ;;  %v211_v20 = vld [vmem:[#allocation8 + $0x140] sm:$0xff]  ;;  %v212_v21 = vld [vmem:[#allocation8 + $0x148] sm:$0xff]  ;;  %v213_v22 = vld [vmem:[#allocation8 + $0x150] sm:$0xff] }
  0x2e   :  { %278 = vmatpush.msra.mxu2 %v221_v14  ;;  %298 = vmatpush.msra.mxu3 %v222_v15  ;;  %v214_v23 = vld [vmem:[#allocation8 + $0x158] sm:$0xff]  ;;  %v207_v24 = vld [vmem:[#allocation8 + $0x120] sm:$0xff]  ;;  %v208_v25 = vld [vmem:[#allocation8 + $0x128] sm:$0xff] }
  0x2f   :  { %239 = vmatpush.msra.mxu0 %v215_v16  ;;  %259 = vmatpush.msra.mxu1 %v216_v17  ;;  %v209_v26 = vld [vmem:[#allocation8 + $0x130] sm:$0xff]  ;;  %v210_v27 = vld [vmem:[#allocation8 + $0x138] sm:$0xff]  ;;  %v203_v28 = vld [vmem:[#allocation8 + $0x100] sm:$0xff] }
  0x30   :  { %279 = vmatpush.msra.mxu2 %v217_v18  ;;  %299 = vmatpush.msra.mxu3 %v218_v19  ;;  %v204_v29 = vld [vmem:[#allocation8 + $0x108] sm:$0xff]  ;;  %v205_v30 = vld [vmem:[#allocation8 + $0x110] sm:$0xff]  ;;  %v206_v31 = vld [vmem:[#allocation8 + $0x118] sm:$0xff] }
  0x31   :  { %240 = vmatpush.msra.mxu0 %v211_v20  ;;  %260 = vmatpush.msra.mxu1 %v212_v21  ;;  %v199_v32 = vld [vmem:[#allocation8 + $0xe0] sm:$0xff]  ;;  %v200_v33 = vld [vmem:[#allocation8 + $0xe8] sm:$0xff]  ;;  %v201_v34 = vld [vmem:[#allocation8 + $0xf0] sm:$0xff] }
  0x32   :  { %280 = vmatpush.msra.mxu2 %v213_v22  ;;  %300 = vmatpush.msra.mxu3 %v214_v23  ;;  %v202_v35 = vld [vmem:[#allocation8 + $0xf8] sm:$0xff]  ;;  %v195_v36 = vld [vmem:[#allocation8 + $0xc0] sm:$0xff]  ;;  %v196_v37 = vld [vmem:[#allocation8 + $0xc8] sm:$0xff] }
  0x33   :  { %241 = vmatpush.msra.mxu0 %v207_v24  ;;  %261 = vmatpush.msra.mxu1 %v208_v25  ;;  %v197_v38 = vld [vmem:[#allocation8 + $0xd0] sm:$0xff]  ;;  %v198_v39 = vld [vmem:[#allocation8 + $0xd8] sm:$0xff]  ;;  %v191_v40 = vld [vmem:[#allocation8 + $0xa0] sm:$0xff] }
  0x34   :  { %281 = vmatpush.msra.mxu2 %v209_v26  ;;  %301 = vmatpush.msra.mxu3 %v210_v27  ;;  %v192_v41 = vld [vmem:[#allocation8 + $0xa8] sm:$0xff]  ;;  %v193_v42 = vld [vmem:[#allocation8 + $0xb0] sm:$0xff]  ;;  %v194_v43 = vld [vmem:[#allocation8 + $0xb8] sm:$0xff] }
  0x35   :  { %242 = vmatpush.msra.mxu0 %v203_v28  ;;  %262 = vmatpush.msra.mxu1 %v204_v29  ;;  %v187_v44 = vld [vmem:[#allocation8 + $0x80] sm:$0xff]  ;;  %v188_v45 = vld [vmem:[#allocation8 + $0x88] sm:$0xff]  ;;  %v189_v46 = vld [vmem:[#allocation8 + $0x90] sm:$0xff] }
  0x36   :  { %282 = vmatpush.msra.mxu2 %v205_v30  ;;  %302 = vmatpush.msra.mxu3 %v206_v31  ;;  %v190_v47 = vld [vmem:[#allocation8 + $0x98] sm:$0xff]  ;;  %v183_v48 = vld [vmem:[#allocation8 + $0x60] sm:$0xff]  ;;  %v184_v49 = vld [vmem:[#allocation8 + $0x68] sm:$0xff] }
  0x37   :  { %243 = vmatpush.msra.mxu0 %v199_v32  ;;  %263 = vmatpush.msra.mxu1 %v200_v33  ;;  %v185_v50 = vld [vmem:[#allocation8 + $0x70] sm:$0xff]  ;;  %v186_v51 = vld [vmem:[#allocation8 + $0x78] sm:$0xff]  ;;  %v179_v52 = vld [vmem:[#allocation8 + $0x40] sm:$0xff] }
  0x38   :  { %283 = vmatpush.msra.mxu2 %v201_v34  ;;  %303 = vmatpush.msra.mxu3 %v202_v35  ;;  %v180_v53 = vld [vmem:[#allocation8 + $0x48] sm:$0xff]  ;;  %v181_v54 = vld [vmem:[#allocation8 + $0x50] sm:$0xff]  ;;  %v182_v55 = vld [vmem:[#allocation8 + $0x58] sm:$0xff] }
  0x39   :  { %244 = vmatpush.msra.mxu0 %v195_v36  ;;  %264 = vmatpush.msra.mxu1 %v196_v37  ;;  %v175_v56 = vld [vmem:[#allocation8 + $0x20] sm:$0xff]  ;;  %v176_v57 = vld [vmem:[#allocation8 + $0x28] sm:$0xff]  ;;  %v177_v58 = vld [vmem:[#allocation8 + $0x30] sm:$0xff] }
  0x3a   :  { %284 = vmatpush.msra.mxu2 %v197_v38  ;;  %304 = vmatpush.msra.mxu3 %v198_v39  ;;  %v178_v59 = vld [vmem:[#allocation8 + $0x38] sm:$0xff]  ;;  %v171_v60 = vld [vmem:[#allocation8] sm:$0xff]  ;;  %v172_v61 = vld [vmem:[#allocation8 + $0x8] sm:$0xff] }
  0x3b   :  { %245 = vmatpush.msra.mxu0 %v191_v40  ;;  %265 = vmatpush.msra.mxu1 %v192_v41  ;;  %v173_v62 = vld [vmem:[#allocation8 + $0x10] sm:$0xff]  ;;  %v174_v63 = vld [vmem:[#allocation8 + $0x18] sm:$0xff]  ;;  %v376_v0 = vld [vmem:[#allocation10 + $0x1e0] sm:$0xff] }
  0x3c   :  { %285 = vmatpush.msra.mxu2 %v193_v42  ;;  %305 = vmatpush.msra.mxu3 %v194_v43  ;;  %v440_v1 = vld [vmem:[#allocation10 + $0x3e0] sm:$0xff]  ;;  %v377_v2 = vld [vmem:[#allocation10 + $0x1e8] sm:$0xff] }
  0x3d   :  { %246 = vmatpush.msra.mxu0 %v187_v44  ;;  %266 = vmatpush.msra.mxu1 %v188_v45  ;;  %v441_v3 = vld [vmem:[#allocation10 + $0x3e8] sm:$0xff]  ;;  %v372_v4 = vld [vmem:[#allocation10 + $0x1c0] sm:$0xff] }
  0x3e   :  { %286 = vmatpush.msra.mxu2 %v189_v46  ;;  %306 = vmatpush.msra.mxu3 %v190_v47  ;;  %v436_v5 = vld [vmem:[#allocation10 + $0x3c0] sm:$0xff]  ;;  %v373_v6 = vld [vmem:[#allocation10 + $0x1c8] sm:$0xff]  ;;  %v315_v46 = vld [vmem:[#allocation5] sm:$0xf] }
  0x3f   :  { %247 = vmatpush.msra.mxu0 %v183_v48  ;;  %267 = vmatpush.msra.mxu1 %v184_v49  ;;  %v437_v7 = vld [vmem:[#allocation10 + $0x3c8] sm:$0xff]  ;;  %v368_v8 = vld [vmem:[#allocation10 + $0x1a0] sm:$0xff]  ;;  %445 = vst [vmem:[#allocation1] ss:$4 sm:$0xff] %v315_v46  ;;  %v402_v46 = vld [vmem:[#allocation10 + $0x2b0] sm:$0xff] }
  0x40   :  { %287 = vmatpush.msra.mxu2 %v185_v50  ;;  %307 = vmatpush.msra.mxu3 %v186_v51  ;;  %v432_v9 = vld [vmem:[#allocation10 + $0x3a0] sm:$0xff]  ;;  %v369_v10 = vld [vmem:[#allocation10 + $0x1a8] sm:$0xff] }
  0x41   :  { %248 = vmatpush.msra.mxu0 %v179_v52  ;;  %268 = vmatpush.msra.mxu1 %v180_v53  ;;  %v433_v11 = vld [vmem:[#allocation10 + $0x3a8] sm:$0xff]  ;;  %v364_v12 = vld [vmem:[#allocation10 + $0x180] sm:$0xff] }
  0x42   :  { %288 = vmatpush.msra.mxu2 %v181_v54  ;;  %308 = vmatpush.msra.mxu3 %v182_v55  ;;  %v428_v13 = vld [vmem:[#allocation10 + $0x380] sm:$0xff]  ;;  %v365_v14 = vld [vmem:[#allocation10 + $0x188] sm:$0xff] }
  0x43   :  { %249 = vmatpush.msra.mxu0 %v175_v56  ;;  %269 = vmatpush.msra.mxu1 %v176_v57  ;;  %v429_v15 = vld [vmem:[#allocation10 + $0x388] sm:$0xff]  ;;  %v360_v16 = vld [vmem:[#allocation10 + $0x160] sm:$0xff] }
  0x44   :  { %289 = vmatpush.msra.mxu2 %v177_v58  ;;  %309 = vmatpush.msra.mxu3 %v178_v59  ;;  %v424_v17 = vld [vmem:[#allocation10 + $0x360] sm:$0xff]  ;;  %v361_v18 = vld [vmem:[#allocation10 + $0x168] sm:$0xff] }
  0x45   :  { %250 = vmatpush.msra.mxu0 %v171_v60  ;;  %270 = vmatpush.msra.mxu1 %v172_v61  ;;  %v425_v19 = vld [vmem:[#allocation10 + $0x368] sm:$0xff]  ;;  %v356_v20 = vld [vmem:[#allocation10 + $0x140] sm:$0xff]  ;;  %v610_v60 = vld [vmem:[#allocation7] sm:$0xf] }
  0x46   :  { %290 = vmatpush.msra.mxu2 %v173_v62  ;;  %310 = vmatpush.msra.mxu3 %v174_v63  ;;  %v420_v21 = vld [vmem:[#allocation10 + $0x340] sm:$0xff]  ;;  %v357_v22 = vld [vmem:[#allocation10 + $0x148] sm:$0xff] }
  0x47   :  { %450 = vmatpush.msrb.mxu0 %v376_v0  ;;  %470 = vmatpush.msrb.mxu1 %v440_v1  ;;  %v421_v23 = vld [vmem:[#allocation10 + $0x348] sm:$0xff]  ;;  %v352_v24 = vld [vmem:[#allocation10 + $0x120] sm:$0xff]  ;;  %v3065_v1 = vld.sshfl [vmem:[#allocation1 + $0x8] sm:$0xff pattern:$0x73625140] }
  0x48   :  { %490 = vmatpush.msrb.mxu2 %v377_v2  ;;  %510 = vmatpush.msrb.mxu3 %v441_v3  ;;  %v416_v25 = vld [vmem:[#allocation10 + $0x320] sm:$0xff]  ;;  %v353_v26 = vld [vmem:[#allocation10 + $0x128] sm:$0xff] }
  0x49   :  { %451 = vmatpush.msrb.mxu0 %v372_v4  ;;  %471 = vmatpush.msrb.mxu1 %v436_v5  ;;  %v417_v27 = vld [vmem:[#allocation10 + $0x328] sm:$0xff]  ;;  %v348_v28 = vld [vmem:[#allocation10 + $0x100] sm:$0xff]  ;;  %v170_v4 = vld [vmem:[#allocation2] sm:$0x3] }
  0x4a   :  { %491 = vmatpush.msrb.mxu2 %v373_v6  ;;  %511 = vmatpush.msrb.mxu3 %v437_v7  ;;  %v412_v29 = vld [vmem:[#allocation10 + $0x300] sm:$0xff]  ;;  %v349_v30 = vld [vmem:[#allocation10 + $0x108] sm:$0xff]  ;;  %v378_v5 = vld [vmem:[#allocation10 + $0x1f0] sm:$0xff] }
  0x4b   :  { %452 = vmatpush.msrb.mxu0 %v368_v8  ;;  %472 = vmatpush.msrb.mxu1 %v432_v9  ;;  %v413_v31 = vld [vmem:[#allocation10 + $0x308] sm:$0xff]  ;;  %v344_v32 = vld [vmem:[#allocation10 + $0xe0] sm:$0xff]  ;;  %v442_v6 = vld [vmem:[#allocation10 + $0x3f0] sm:$0xff] }
  0x4c   :  { %492 = vmatpush.msrb.mxu2 %v369_v10  ;;  %512 = vmatpush.msrb.mxu3 %v433_v11  ;;  %v408_v33 = vld [vmem:[#allocation10 + $0x2e0] sm:$0xff]  ;;  %v345_v34 = vld [vmem:[#allocation10 + $0xe8] sm:$0xff]  ;;  %v379_v7 = vld [vmem:[#allocation10 + $0x1f8] sm:$0xff] }
  0x4d   :  { %453 = vmatpush.msrb.mxu0 %v364_v12  ;;  %473 = vmatpush.msrb.mxu1 %v428_v13  ;;  %v409_v35 = vld [vmem:[#allocation10 + $0x2e8] sm:$0xff]  ;;  %v340_v36 = vld [vmem:[#allocation10 + $0xc0] sm:$0xff]  ;;  %v443_v8 = vld [vmem:[#allocation10 + $0x3f8] sm:$0xff] }
  0x4e   :  { %493 = vmatpush.msrb.mxu2 %v365_v14  ;;  %513 = vmatpush.msrb.mxu3 %v429_v15  ;;  %v404_v37 = vld [vmem:[#allocation10 + $0x2c0] sm:$0xff]  ;;  %v341_v38 = vld [vmem:[#allocation10 + $0xc8] sm:$0xff]  ;;  %v374_v9 = vld [vmem:[#allocation10 + $0x1d0] sm:$0xff] }
  0x4f   :  { %454 = vmatpush.msrb.mxu0 %v360_v16  ;;  %474 = vmatpush.msrb.mxu1 %v424_v17  ;;  %v405_v39 = vld [vmem:[#allocation10 + $0x2c8] sm:$0xff]  ;;  %v336_v40 = vld [vmem:[#allocation10 + $0xa0] sm:$0xff]  ;;  %v438_v10 = vld [vmem:[#allocation10 + $0x3d0] sm:$0xff] }
  0x50   :  { %494 = vmatpush.msrb.mxu2 %v361_v18  ;;  %514 = vmatpush.msrb.mxu3 %v425_v19  ;;  %v400_v41 = vld [vmem:[#allocation10 + $0x2a0] sm:$0xff]  ;;  %v337_v42 = vld [vmem:[#allocation10 + $0xa8] sm:$0xff]  ;;  %v375_v11 = vld [vmem:[#allocation10 + $0x1d8] sm:$0xff] }
  0x51   :  { %455 = vmatpush.msrb.mxu0 %v356_v20  ;;  %475 = vmatpush.msrb.mxu1 %v420_v21  ;;  %v401_v43 = vld [vmem:[#allocation10 + $0x2a8] sm:$0xff]  ;;  %v332_v44 = vld [vmem:[#allocation10 + $0x80] sm:$0xff]  ;;  %v439_v12 = vld [vmem:[#allocation10 + $0x3d8] sm:$0xff] }
  0x52   :  { %495 = vmatpush.msrb.mxu2 %v357_v22  ;;  %515 = vmatpush.msrb.mxu3 %v421_v23  ;;  %v396_v45 = vld [vmem:[#allocation10 + $0x280] sm:$0xff]  ;;  %v333_v47 = vld [vmem:[#allocation10 + $0x88] sm:$0xff]  ;;  %v370_v13 = vld [vmem:[#allocation10 + $0x1b0] sm:$0xff] }
  0x53   :  { %456 = vmatpush.msrb.mxu0 %v352_v24  ;;  %476 = vmatpush.msrb.mxu1 %v416_v25  ;;  %v397_v48 = vld [vmem:[#allocation10 + $0x288] sm:$0xff]  ;;  %v328_v49 = vld [vmem:[#allocation10 + $0x60] sm:$0xff]  ;;  %v434_v14 = vld [vmem:[#allocation10 + $0x3b0] sm:$0xff] }
  0x54   :  { %496 = vmatpush.msrb.mxu2 %v353_v26  ;;  %516 = vmatpush.msrb.mxu3 %v417_v27  ;;  %v392_v50 = vld [vmem:[#allocation10 + $0x260] sm:$0xff]  ;;  %v329_v51 = vld [vmem:[#allocation10 + $0x68] sm:$0xff]  ;;  %v371_v15 = vld [vmem:[#allocation10 + $0x1b8] sm:$0xff] }
  0x55   :  { %457 = vmatpush.msrb.mxu0 %v348_v28  ;;  %477 = vmatpush.msrb.mxu1 %v412_v29  ;;  %v393_v52 = vld [vmem:[#allocation10 + $0x268] sm:$0xff]  ;;  %v324_v53 = vld [vmem:[#allocation10 + $0x40] sm:$0xff]  ;;  %v435_v16 = vld [vmem:[#allocation10 + $0x3b8] sm:$0xff] }
  0x56   :  { %497 = vmatpush.msrb.mxu2 %v349_v30  ;;  %517 = vmatpush.msrb.mxu3 %v413_v31  ;;  %v388_v54 = vld [vmem:[#allocation10 + $0x240] sm:$0xff]  ;;  %v325_v55 = vld [vmem:[#allocation10 + $0x48] sm:$0xff]  ;;  %v366_v17 = vld [vmem:[#allocation10 + $0x190] sm:$0xff] }
  0x57   :  { %458 = vmatpush.msrb.mxu0 %v344_v32  ;;  %478 = vmatpush.msrb.mxu1 %v408_v33  ;;  %v389_v56 = vld [vmem:[#allocation10 + $0x248] sm:$0xff]  ;;  %v320_v57 = vld [vmem:[#allocation10 + $0x20] sm:$0xff]  ;;  %v430_v18 = vld [vmem:[#allocation10 + $0x390] sm:$0xff] }
  0x58   :  { %498 = vmatpush.msrb.mxu2 %v345_v34  ;;  %518 = vmatpush.msrb.mxu3 %v409_v35  ;;  %v384_v58 = vld [vmem:[#allocation10 + $0x220] sm:$0xff]  ;;  %v321_v59 = vld [vmem:[#allocation10 + $0x28] sm:$0xff]  ;;  %v367_v19 = vld [vmem:[#allocation10 + $0x198] sm:$0xff] }
  0x59   :  { %459 = vmatpush.msrb.mxu0 %v340_v36  ;;  %479 = vmatpush.msrb.mxu1 %v404_v37  ;;  %v385_v61 = vld [vmem:[#allocation10 + $0x228] sm:$0xff]  ;;  %v316_v62 = vld [vmem:[#allocation10] sm:$0xff]  ;;  %v431_v20 = vld [vmem:[#allocation10 + $0x398] sm:$0xff] }
  0x5a   :  { %499 = vmatpush.msrb.mxu2 %v341_v38  ;;  %519 = vmatpush.msrb.mxu3 %v405_v39  ;;  %v380_v63 = vld [vmem:[#allocation10 + $0x200] sm:$0xff]  ;;  %v3063_v0 = vld.sshfl [vmem:[#allocation1] sm:$0xff pattern:$0x73625140]  ;;  %v363_v23 = vld [vmem:[#allocation10 + $0x178] sm:$0xff] }
  0x5b   :  { %460 = vmatpush.msrb.mxu0 %v336_v40  ;;  %480 = vmatpush.msrb.mxu1 %v400_v41  ;;  %v317_v2 = vld [vmem:[#allocation10 + $0x8] sm:$0xff]  ;;  %740 = vst [vmem:[#allocation1] ss:$4 sm:$0xff] %v610_v60  ;;  %v362_v21 = vld [vmem:[#allocation10 + $0x170] sm:$0xff]  ;;  %v427_v24 = vld [vmem:[#allocation10 + $0x378] sm:$0xff] }
  0x5c   :  { %500 = vmatpush.msrb.mxu2 %v337_v42  ;;  %520 = vmatpush.msrb.mxu3 %v401_v43  ;;  %v381_v3 = vld [vmem:[#allocation10 + $0x208] sm:$0xff]  ;;  %v426_v22 = vld [vmem:[#allocation10 + $0x370] sm:$0xff]  ;;  %v359_v27 = vld [vmem:[#allocation10 + $0x158] sm:$0xff] }
  0x5d   :  { %461 = vmatpush.msrb.mxu0 %v332_v44  ;;  %481 = vmatpush.msrb.mxu1 %v396_v45  ;;  %v358_v25 = vld [vmem:[#allocation10 + $0x150] sm:$0xff]  ;;  %v423_v28 = vld [vmem:[#allocation10 + $0x358] sm:$0xff] }
  0x5e   :  { %501 = vmatpush.msrb.mxu2 %v333_v47  ;;  %521 = vmatpush.msrb.mxu3 %v397_v48  ;;  %v422_v26 = vld [vmem:[#allocation10 + $0x350] sm:$0xff]  ;;  %v355_v31 = vld [vmem:[#allocation10 + $0x138] sm:$0xff] }
  0x5f   :  { %462 = vmatpush.msrb.mxu0 %v328_v49  ;;  %482 = vmatpush.msrb.mxu1 %v392_v50  ;;  %v354_v29 = vld [vmem:[#allocation10 + $0x130] sm:$0xff]  ;;  %v419_v32 = vld [vmem:[#allocation10 + $0x338] sm:$0xff] }
  0x60   :  { %502 = vmatpush.msrb.mxu2 %v329_v51  ;;  %522 = vmatpush.msrb.mxu3 %v393_v52  ;;  %v418_v30 = vld [vmem:[#allocation10 + $0x330] sm:$0xff]  ;;  %v351_v35 = vld [vmem:[#allocation10 + $0x118] sm:$0xff] }
  0x61   :  { %463 = vmatpush.msrb.mxu0 %v324_v53  ;;  %483 = vmatpush.msrb.mxu1 %v388_v54  ;;  %v350_v33 = vld [vmem:[#allocation10 + $0x110] sm:$0xff]  ;;  %v415_v36 = vld [vmem:[#allocation10 + $0x318] sm:$0xff] }
  0x62   :  { %503 = vmatpush.msrb.mxu2 %v325_v55  ;;  %523 = vmatpush.msrb.mxu3 %v389_v56  ;;  %v414_v34 = vld [vmem:[#allocation10 + $0x310] sm:$0xff]  ;;  %v347_v39 = vld [vmem:[#allocation10 + $0xf8] sm:$0xff] }
  0x63   :  { %464 = vmatpush.msrb.mxu0 %v320_v57  ;;  %484 = vmatpush.msrb.mxu1 %v384_v58  ;;  %v346_v37 = vld [vmem:[#allocation10 + $0xf0] sm:$0xff]  ;;  %v411_v40 = vld [vmem:[#allocation10 + $0x2f8] sm:$0xff] }
  0x64   :  { %504 = vmatpush.msrb.mxu2 %v321_v59  ;;  %524 = vmatpush.msrb.mxu3 %v385_v61  ;;  %v410_v38 = vld [vmem:[#allocation10 + $0x2f0] sm:$0xff]  ;;  %v343_v43 = vld [vmem:[#allocation10 + $0xd8] sm:$0xff] }
  0x65   :  { %465 = vmatpush.msrb.mxu0 %v316_v62  ;;  %485 = vmatpush.msrb.mxu1 %v380_v63  ;;  %v342_v41 = vld [vmem:[#allocation10 + $0xd0] sm:$0xff]  ;;  %v407_v44 = vld [vmem:[#allocation10 + $0x2d8] sm:$0xff] }
  0x66   :  { %505 = vmatpush.msrb.mxu2 %v317_v2  ;;  %525 = vmatpush.msrb.mxu3 %v381_v3  ;;  %v406_v42 = vld [vmem:[#allocation10 + $0x2d0] sm:$0xff]  ;;  %v339_v47 = vld [vmem:[#allocation10 + $0xb8] sm:$0xff] }
  0x67   :  { %251 = vmatmul.f32.vlgmr.msra.gmra.mxu0 %v170_v4  ;;  %271 = vmatmul.f32.vlgmr.msra.gmra.mxu1 %v170_v4  ;;  %v338_v45 = vld [vmem:[#allocation10 + $0xb0] sm:$0xff]  ;;  %v403_v48 = vld [vmem:[#allocation10 + $0x2b8] sm:$0xff] }
  0x68   :  { %291 = vmatmul.f32.vlgmr.msra.gmra.mxu2 %v170_v4  ;;  %311 = vmatmul.f32.vlgmr.msra.gmra.mxu3 %v170_v4  ;;  %v334_v49 = vld [vmem:[#allocation10 + $0x90] sm:$0xff]  ;;  %v335_v51 = vld [vmem:[#allocation10 + $0x98] sm:$0xff] }
  0x69   :  { %530 = vmatpush.msra.mxu0 %v378_v5  ;;  %550 = vmatpush.msra.mxu1 %v442_v6  ;;  %v398_v50 = vld [vmem:[#allocation10 + $0x290] sm:$0xff]  ;;  %v399_v52 = vld [vmem:[#allocation10 + $0x298] sm:$0xff] }
  0x6a   :  { %570 = vmatpush.msra.mxu2 %v379_v7  ;;  %590 = vmatpush.msra.mxu3 %v443_v8  ;;  %v330_v53 = vld [vmem:[#allocation10 + $0x70] sm:$0xff]  ;;  %v331_v55 = vld [vmem:[#allocation10 + $0x78] sm:$0xff]  ;;  %v671_v7 = vld [vmem:[#allocation11 + $0x1e0] sm:$0xff] }
  0x6b   :  { %531 = vmatpush.msra.mxu0 %v374_v9  ;;  %551 = vmatpush.msra.mxu1 %v438_v10  ;;  %v394_v54 = vld [vmem:[#allocation10 + $0x270] sm:$0xff]  ;;  %v395_v56 = vld [vmem:[#allocation10 + $0x278] sm:$0xff]  ;;  %v735_v8 = vld [vmem:[#allocation11 + $0x3e0] sm:$0xff] }
  0x6c   :  { %571 = vmatpush.msra.mxu2 %v375_v11  ;;  %591 = vmatpush.msra.mxu3 %v439_v12  ;;  %v326_v57 = vld [vmem:[#allocation10 + $0x50] sm:$0xff]  ;;  %v327_v59 = vld [vmem:[#allocation10 + $0x58] sm:$0xff]  ;;  %v672_v9 = vld [vmem:[#allocation11 + $0x1e8] sm:$0xff] }
  0x6d   :  { %532 = vmatpush.msra.mxu0 %v370_v13  ;;  %552 = vmatpush.msra.mxu1 %v434_v14  ;;  %v390_v58 = vld [vmem:[#allocation10 + $0x250] sm:$0xff]  ;;  %v391_v60 = vld [vmem:[#allocation10 + $0x258] sm:$0xff]  ;;  %v736_v10 = vld [vmem:[#allocation11 + $0x3e8] sm:$0xff] }
  0x6e   :  { %572 = vmatpush.msra.mxu2 %v371_v15  ;;  %592 = vmatpush.msra.mxu3 %v435_v16  ;;  %v322_v61 = vld [vmem:[#allocation10 + $0x30] sm:$0xff]  ;;  %v323_v63 = vld [vmem:[#allocation10 + $0x38] sm:$0xff]  ;;  %v667_v11 = vld [vmem:[#allocation11 + $0x1c0] sm:$0xff] }
  0x6f   :  { %533 = vmatpush.msra.mxu0 %v366_v17  ;;  %553 = vmatpush.msra.mxu1 %v430_v18  ;;  %v386_v62 = vld [vmem:[#allocation10 + $0x230] sm:$0xff]  ;;  %v387_v2 = vld [vmem:[#allocation10 + $0x238] sm:$0xff]  ;;  %v731_v12 = vld [vmem:[#allocation11 + $0x3c0] sm:$0xff] }
  0x70   :  { %573 = vmatpush.msra.mxu2 %v367_v19  ;;  %593 = vmatpush.msra.mxu3 %v431_v20  ;;  %v318_v3 = vld [vmem:[#allocation10 + $0x10] sm:$0xff]  ;;  %v319_v5 = vld [vmem:[#allocation10 + $0x18] sm:$0xff]  ;;  %v668_v13 = vld [vmem:[#allocation11 + $0x1c8] sm:$0xff] }
  0x71   :  { %534 = vmatpush.msra.mxu0 %v362_v21  ;;  %554 = vmatpush.msra.mxu1 %v426_v22  ;;  %v382_v4 = vld [vmem:[#allocation10 + $0x210] sm:$0xff]  ;;  %v383_v6 = vld [vmem:[#allocation10 + $0x218] sm:$0xff]  ;;  %v732_v14 = vld [vmem:[#allocation11 + $0x3c8] sm:$0xff] }
  0x72   :  { %574 = vmatpush.msra.mxu2 %v363_v23  ;;  %594 = vmatpush.msra.mxu3 %v427_v24  ;;  %v663_v15 = vld [vmem:[#allocation11 + $0x1a0] sm:$0xff]  ;;  %v664_v17 = vld [vmem:[#allocation11 + $0x1a8] sm:$0xff] }
  0x73   :  { %535 = vmatpush.msra.mxu0 %v358_v25  ;;  %555 = vmatpush.msra.mxu1 %v422_v26  ;;  %v727_v16 = vld [vmem:[#allocation11 + $0x3a0] sm:$0xff]  ;;  %v728_v18 = vld [vmem:[#allocation11 + $0x3a8] sm:$0xff] }
  0x74   :  { %575 = vmatpush.msra.mxu2 %v359_v27  ;;  %595 = vmatpush.msra.mxu3 %v423_v28  ;;  %v659_v19 = vld [vmem:[#allocation11 + $0x180] sm:$0xff]  ;;  %v656_v23 = vld [vmem:[#allocation11 + $0x168] sm:$0xff] }
  0x75   :  { %536 = vmatpush.msra.mxu0 %v354_v29  ;;  %556 = vmatpush.msra.mxu1 %v418_v30  ;;  %v723_v20 = vld [vmem:[#allocation11 + $0x380] sm:$0xff]  ;;  %v720_v24 = vld [vmem:[#allocation11 + $0x368] sm:$0xff] }
  0x76   :  { %576 = vmatpush.msra.mxu2 %v355_v31  ;;  %596 = vmatpush.msra.mxu3 %v419_v32  ;;  %v655_v21 = vld [vmem:[#allocation11 + $0x160] sm:$0xff]  ;;  %v652_v27 = vld [vmem:[#allocation11 + $0x148] sm:$0xff] }
  0x77   :  { %506 = vmatmul.f32.vlgmr.msrb.gmra.mxu2 %v3063_v0  ;;  %526 = vmatmul.f32.vlgmr.msrb.gmra.mxu3 %v3065_v1  ;;  %v719_v22 = vld [vmem:[#allocation11 + $0x360] sm:$0xff]  ;;  %v716_v28 = vld [vmem:[#allocation11 + $0x348] sm:$0xff] }
  0x78   :  { %537 = vmatpush.msra.mxu0 %v350_v33  ;;  %557 = vmatpush.msra.mxu1 %v414_v34  ;;  %v651_v25 = vld [vmem:[#allocation11 + $0x140] sm:$0xff]  ;;  %v648_v31 = vld [vmem:[#allocation11 + $0x128] sm:$0xff] }
  0x79   :  { %577 = vmatpush.msra.mxu2 %v351_v35  ;;  %597 = vmatpush.msra.mxu3 %v415_v36  ;;  %v715_v26 = vld [vmem:[#allocation11 + $0x340] sm:$0xff]  ;;  %v712_v32 = vld [vmem:[#allocation11 + $0x328] sm:$0xff] }
  0x7a   :  { %538 = vmatpush.msra.mxu0 %v346_v37  ;;  %558 = vmatpush.msra.mxu1 %v410_v38  ;;  %v647_v29 = vld [vmem:[#allocation11 + $0x120] sm:$0xff]  ;;  %v644_v35 = vld [vmem:[#allocation11 + $0x108] sm:$0xff] }
  0x7b   :  { %578 = vmatpush.msra.mxu2 %v347_v39  ;;  %598 = vmatpush.msra.mxu3 %v411_v40  ;;  %v711_v30 = vld [vmem:[#allocation11 + $0x320] sm:$0xff]  ;;  %v708_v36 = vld [vmem:[#allocation11 + $0x308] sm:$0xff] }
  0x7c   :  { %539 = vmatpush.msra.mxu0 %v342_v41  ;;  %559 = vmatpush.msra.mxu1 %v406_v42  ;;  %v643_v33 = vld [vmem:[#allocation11 + $0x100] sm:$0xff]  ;;  %v640_v39 = vld [vmem:[#allocation11 + $0xe8] sm:$0xff] }
  0x7d   :  { %579 = vmatpush.msra.mxu2 %v343_v43  ;;  %599 = vmatpush.msra.mxu3 %v407_v44  ;;  %v707_v34 = vld [vmem:[#allocation11 + $0x300] sm:$0xff]  ;;  %v704_v40 = vld [vmem:[#allocation11 + $0x2e8] sm:$0xff] }
  0x7e   :  { %466 = vmatmul.f32.vlgmr.msrb.gmra.mxu0 %v3063_v0  ;;  %486 = vmatmul.f32.vlgmr.msrb.gmra.mxu1 %v3065_v1  ;;  %v639_v37 = vld [vmem:[#allocation11 + $0xe0] sm:$0xff]  ;;  %v636_v43 = vld [vmem:[#allocation11 + $0xc8] sm:$0xff] }
  0x7f   :  { %540 = vmatpush.msra.mxu0 %v338_v45  ;;  %560 = vmatpush.msra.mxu1 %v402_v46  ;;  %v703_v38 = vld [vmem:[#allocation11 + $0x2e0] sm:$0xff]  ;;  %v700_v44 = vld [vmem:[#allocation11 + $0x2c8] sm:$0xff] }
  0x80   :  { %580 = vmatpush.msra.mxu2 %v339_v47  ;;  %600 = vmatpush.msra.mxu3 %v403_v48  ;;  %v635_v41 = vld [vmem:[#allocation11 + $0xc0] sm:$0xff]  ;;  %v632_v47 = vld [vmem:[#allocation11 + $0xa8] sm:$0xff] }
  0x81   :  { %541 = vmatpush.msra.mxu0 %v334_v49  ;;  %561 = vmatpush.msra.mxu1 %v398_v50  ;;  %v699_v42 = vld [vmem:[#allocation11 + $0x2c0] sm:$0xff]  ;;  %v696_v48 = vld [vmem:[#allocation11 + $0x2a8] sm:$0xff] }
  0x82   :  { %581 = vmatpush.msra.mxu2 %v335_v51  ;;  %601 = vmatpush.msra.mxu3 %v399_v52  ;;  %v631_v45 = vld [vmem:[#allocation11 + $0xa0] sm:$0xff]  ;;  %v628_v51 = vld [vmem:[#allocation11 + $0x88] sm:$0xff] }
  0x83   :  { %542 = vmatpush.msra.mxu0 %v330_v53  ;;  %562 = vmatpush.msra.mxu1 %v394_v54  ;;  %v695_v46 = vld [vmem:[#allocation11 + $0x2a0] sm:$0xff]  ;;  %v692_v52 = vld [vmem:[#allocation11 + $0x288] sm:$0xff] }
  0x84   :  { %582 = vmatpush.msra.mxu2 %v331_v55  ;;  %602 = vmatpush.msra.mxu3 %v395_v56  ;;  %v627_v49 = vld [vmem:[#allocation11 + $0x80] sm:$0xff]  ;;  %v624_v55 = vld [vmem:[#allocation11 + $0x68] sm:$0xff] }
  0x85   :  { %543 = vmatpush.msra.mxu0 %v326_v57  ;;  %563 = vmatpush.msra.mxu1 %v390_v58  ;;  %v691_v50 = vld [vmem:[#allocation11 + $0x280] sm:$0xff]  ;;  %v688_v56 = vld [vmem:[#allocation11 + $0x268] sm:$0xff] }
  0x86   :  { %583 = vmatpush.msra.mxu2 %v327_v59  ;;  %603 = vmatpush.msra.mxu3 %v391_v60  ;;  %v623_v53 = vld [vmem:[#allocation11 + $0x60] sm:$0xff]  ;;  %v620_v59 = vld [vmem:[#allocation11 + $0x48] sm:$0xff] }
  0x87   :  { %544 = vmatpush.msra.mxu0 %v322_v61  ;;  %564 = vmatpush.msra.mxu1 %v386_v62  ;;  %v687_v54 = vld [vmem:[#allocation11 + $0x260] sm:$0xff]  ;;  %v684_v60 = vld [vmem:[#allocation11 + $0x248] sm:$0xff] }
  0x88   :  { %584 = vmatpush.msra.mxu2 %v323_v63  ;;  %604 = vmatpush.msra.mxu3 %v387_v2  ;;  %v619_v57 = vld [vmem:[#allocation11 + $0x40] sm:$0xff]  ;;  %v616_v63 = vld [vmem:[#allocation11 + $0x28] sm:$0xff] }
  0x89   :  { %545 = vmatpush.msra.mxu0 %v318_v3  ;;  %565 = vmatpush.msra.mxu1 %v382_v4  ;;  %v683_v58 = vld [vmem:[#allocation11 + $0x240] sm:$0xff]  ;;  %v680_v2 = vld [vmem:[#allocation11 + $0x228] sm:$0xff] }
  0x8a   :  { %585 = vmatpush.msra.mxu2 %v319_v5  ;;  %605 = vmatpush.msra.mxu3 %v383_v6  ;;  %v615_v61 = vld [vmem:[#allocation11 + $0x20] sm:$0xff]  ;;  %v673_v5 = vld [vmem:[#allocation11 + $0x1f0] sm:$0xff] }
  0x8b   :  { %546 = vmatmul.f32.vlgmr.msra.gmra.mxu0 %v3063_v0  ;;  %566 = vmatmul.f32.vlgmr.msra.gmra.mxu1 %v3065_v1  ;;  %v679_v62 = vld [vmem:[#allocation11 + $0x220] sm:$0xff]  ;;  %v737_v6 = vld [vmem:[#allocation11 + $0x3f0] sm:$0xff] }
  0x8c   :  { %586 = vmatmul.f32.vlgmr.msra.gmra.mxu2 %v3063_v0  ;;  %606 = vmatmul.f32.vlgmr.msra.gmra.mxu3 %v3065_v1  ;;  %v660_v0 = vld [vmem:[#allocation11 + $0x188] sm:$0xff]  ;;  %v611_v3 = vld [vmem:[#allocation11] sm:$0xff] }
  0x8d   :  { %745 = vmatpush.msrb.mxu0 %v671_v7  ;;  %765 = vmatpush.msrb.mxu1 %v735_v8  ;;  %v724_v1 = vld [vmem:[#allocation11 + $0x388] sm:$0xff]  ;;  %v675_v4 = vld [vmem:[#allocation11 + $0x200] sm:$0xff] }
  0x8e   :  { %785 = vmatpush.msrb.mxu2 %v672_v9  ;;  %805 = vmatpush.msrb.mxu3 %v736_v10  ;;  %v612_v7 = vld [vmem:[#allocation11 + $0x8] sm:$0xff]  ;;  %v669_v9 = vld [vmem:[#allocation11 + $0x1d0] sm:$0xff] }
  0x8f   :  { %746 = vmatpush.msrb.mxu0 %v667_v11  ;;  %766 = vmatpush.msrb.mxu1 %v731_v12  ;;  %v676_v8 = vld [vmem:[#allocation11 + $0x208] sm:$0xff]  ;;  %v733_v10 = vld [vmem:[#allocation11 + $0x3d0] sm:$0xff]  ;;  %v674_v11 = vld [vmem:[#allocation11 + $0x1f8] sm:$0xff] }
  0x90   :  { %786 = vmatpush.msrb.mxu2 %v668_v13  ;;  %806 = vmatpush.msrb.mxu3 %v732_v14  ;;  %v738_v12 = vld [vmem:[#allocation11 + $0x3f8] sm:$0xff]  ;;  %v665_v13 = vld [vmem:[#allocation11 + $0x1b0] sm:$0xff] }
  0x91   :  { %747 = vmatpush.msrb.mxu0 %v663_v15  ;;  %767 = vmatpush.msrb.mxu1 %v727_v16  ;;  %v729_v14 = vld [vmem:[#allocation11 + $0x3b0] sm:$0xff]  ;;  %v670_v15 = vld [vmem:[#allocation11 + $0x1d8] sm:$0xff] }
  0x92   :  { %787 = vmatpush.msrb.mxu2 %v664_v17  ;;  %807 = vmatpush.msrb.mxu3 %v728_v18  ;;  %v734_v16 = vld [vmem:[#allocation11 + $0x3d8] sm:$0xff]  ;;  %v661_v17 = vld [vmem:[#allocation11 + $0x190] sm:$0xff] }
  0x93   :  { %748 = vmatpush.msrb.mxu0 %v659_v19  ;;  %768 = vmatpush.msrb.mxu1 %v723_v20  ;;  %v725_v18 = vld [vmem:[#allocation11 + $0x390] sm:$0xff]  ;;  %v666_v19 = vld [vmem:[#allocation11 + $0x1b8] sm:$0xff] }
  0x94   :  { %788 = vmatpush.msrb.mxu2 %v660_v0  ;;  %808 = vmatpush.msrb.mxu3 %v724_v1  ;;  %v730_v20 = vld [vmem:[#allocation11 + $0x3b8] sm:$0xff]  ;;  %v657_v0 = vld [vmem:[#allocation11 + $0x170] sm:$0xff] }
  0x95   :  { %749 = vmatpush.msrb.mxu0 %v655_v21  ;;  %769 = vmatpush.msrb.mxu1 %v719_v22  ;;  %v721_v1 = vld [vmem:[#allocation11 + $0x370] sm:$0xff]  ;;  %v662_v21 = vld [vmem:[#allocation11 + $0x198] sm:$0xff] }
  0x96   :  { %789 = vmatpush.msrb.mxu2 %v656_v23  ;;  %809 = vmatpush.msrb.mxu3 %v720_v24  ;;  %v726_v22 = vld [vmem:[#allocation11 + $0x398] sm:$0xff]  ;;  %v653_v23 = vld [vmem:[#allocation11 + $0x150] sm:$0xff] }
  0x97   :  { %750 = vmatpush.msrb.mxu0 %v651_v25  ;;  %770 = vmatpush.msrb.mxu1 %v715_v26  ;;  %v717_v24 = vld [vmem:[#allocation11 + $0x350] sm:$0xff]  ;;  %v658_v25 = vld [vmem:[#allocation11 + $0x178] sm:$0xff] }
  0x98   :  { %790 = vmatpush.msrb.mxu2 %v652_v27  ;;  %810 = vmatpush.msrb.mxu3 %v716_v28  ;;  %v722_v26 = vld [vmem:[#allocation11 + $0x378] sm:$0xff]  ;;  %v649_v27 = vld [vmem:[#allocation11 + $0x130] sm:$0xff] }
  0x99   :  { %751 = vmatpush.msrb.mxu0 %v647_v29  ;;  %771 = vmatpush.msrb.mxu1 %v711_v30  ;;  %v713_v28 = vld [vmem:[#allocation11 + $0x330] sm:$0xff]  ;;  %v654_v29 = vld [vmem:[#allocation11 + $0x158] sm:$0xff] }
  0x9a   :  { %791 = vmatpush.msrb.mxu2 %v648_v31  ;;  %811 = vmatpush.msrb.mxu3 %v712_v32  ;;  %v718_v30 = vld [vmem:[#allocation11 + $0x358] sm:$0xff]  ;;  %v645_v31 = vld [vmem:[#allocation11 + $0x110] sm:$0xff] }
  0x9b   :  { %752 = vmatpush.msrb.mxu0 %v643_v33  ;;  %772 = vmatpush.msrb.mxu1 %v707_v34  ;;  %v709_v32 = vld [vmem:[#allocation11 + $0x310] sm:$0xff]  ;;  %v650_v33 = vld [vmem:[#allocation11 + $0x138] sm:$0xff] }
  0x9c   :  { %792 = vmatpush.msrb.mxu2 %v644_v35  ;;  %812 = vmatpush.msrb.mxu3 %v708_v36  ;;  %v714_v34 = vld [vmem:[#allocation11 + $0x338] sm:$0xff]  ;;  %v641_v35 = vld [vmem:[#allocation11 + $0xf0] sm:$0xff] }
  0x9d   :  { %753 = vmatpush.msrb.mxu0 %v639_v37  ;;  %773 = vmatpush.msrb.mxu1 %v703_v38  ;;  %v705_v36 = vld [vmem:[#allocation11 + $0x2f0] sm:$0xff]  ;;  %v646_v37 = vld [vmem:[#allocation11 + $0x118] sm:$0xff] }
  0x9e   :  { %793 = vmatpush.msrb.mxu2 %v640_v39  ;;  %813 = vmatpush.msrb.mxu3 %v704_v40  ;;  %v710_v38 = vld [vmem:[#allocation11 + $0x318] sm:$0xff]  ;;  %v637_v39 = vld [vmem:[#allocation11 + $0xd0] sm:$0xff] }
  0x9f   :  { %754 = vmatpush.msrb.mxu0 %v635_v41  ;;  %774 = vmatpush.msrb.mxu1 %v699_v42  ;;  %v701_v40 = vld [vmem:[#allocation11 + $0x2d0] sm:$0xff]  ;;  %v642_v41 = vld [vmem:[#allocation11 + $0xf8] sm:$0xff] }
  0xa0   :  { %794 = vmatpush.msrb.mxu2 %v636_v43  ;;  %814 = vmatpush.msrb.mxu3 %v700_v44  ;;  %v706_v42 = vld [vmem:[#allocation11 + $0x2f8] sm:$0xff]  ;;  %v633_v43 = vld [vmem:[#allocation11 + $0xb0] sm:$0xff] }
  0xa1   :  { %755 = vmatpush.msrb.mxu0 %v631_v45  ;;  %775 = vmatpush.msrb.mxu1 %v695_v46  ;;  %v697_v44 = vld [vmem:[#allocation11 + $0x2b0] sm:$0xff]  ;;  %v638_v45 = vld [vmem:[#allocation11 + $0xd8] sm:$0xff] }
  0xa2   :  { %795 = vmatpush.msrb.mxu2 %v632_v47  ;;  %815 = vmatpush.msrb.mxu3 %v696_v48  ;;  %v702_v46 = vld [vmem:[#allocation11 + $0x2d8] sm:$0xff]  ;;  %v629_v47 = vld [vmem:[#allocation11 + $0x90] sm:$0xff] }
  0xa3   :  { %756 = vmatpush.msrb.mxu0 %v627_v49  ;;  %776 = vmatpush.msrb.mxu1 %v691_v50  ;;  %v693_v48 = vld [vmem:[#allocation11 + $0x290] sm:$0xff]  ;;  %v634_v49 = vld [vmem:[#allocation11 + $0xb8] sm:$0xff] }
  0xa4   :  { %796 = vmatpush.msrb.mxu2 %v628_v51  ;;  %816 = vmatpush.msrb.mxu3 %v692_v52  ;;  %v698_v50 = vld [vmem:[#allocation11 + $0x2b8] sm:$0xff]  ;;  %v625_v51 = vld [vmem:[#allocation11 + $0x70] sm:$0xff] }
  0xa5   :  { %757 = vmatpush.msrb.mxu0 %v623_v53  ;;  %777 = vmatpush.msrb.mxu1 %v687_v54  ;;  %v689_v52 = vld [vmem:[#allocation11 + $0x270] sm:$0xff]  ;;  %v630_v53 = vld [vmem:[#allocation11 + $0x98] sm:$0xff] }
  0xa6   :  { %797 = vmatpush.msrb.mxu2 %v624_v55  ;;  %817 = vmatpush.msrb.mxu3 %v688_v56  ;;  %v3075_v54 = vld.sshfl [vmem:[#allocation1] sm:$0xff pattern:$0x73625140] }
  0xa7   :  { %758 = vmatpush.msrb.mxu0 %v619_v57  ;;  %778 = vmatpush.msrb.mxu1 %v683_v58  ;;  %v621_v55 = vld [vmem:[#allocation11 + $0x50] sm:$0xff]  ;;  %v626_v57 = vld [vmem:[#allocation11 + $0x78] sm:$0xff] }
  0xa8   :  { %798 = vmatpush.msrb.mxu2 %v620_v59  ;;  %818 = vmatpush.msrb.mxu3 %v684_v60  ;;  %v685_v56 = vld [vmem:[#allocation11 + $0x250] sm:$0xff] }
  0xa9   :  { %759 = vmatpush.msrb.mxu0 %v615_v61  ;;  %779 = vmatpush.msrb.mxu1 %v679_v62  ;;  %v3077_v58 = vld.sshfl [vmem:[#allocation1 + $0x8] sm:$0xff pattern:$0x73625140] }
  0xaa   :  { %799 = vmatpush.msrb.mxu2 %v616_v63  ;;  %819 = vmatpush.msrb.mxu3 %v680_v2  ;;  %v617_v59 = vld [vmem:[#allocation11 + $0x30] sm:$0xff]  ;;  %v622_v61 = vld [vmem:[#allocation11 + $0x58] sm:$0xff] }
  0xab   :  { %760 = vmatpush.msrb.mxu0 %v611_v3  ;;  %780 = vmatpush.msrb.mxu1 %v675_v4  ;;  %v681_v60 = vld [vmem:[#allocation11 + $0x230] sm:$0xff]  ;;  %v694_v62 = vld [vmem:[#allocation11 + $0x298] sm:$0xff]  ;;  %v1221_v3 = vld [vmem:[#allocation14 + $0x1e0] sm:$0xff] }
  0xac   :  { %800 = vmatpush.msrb.mxu2 %v612_v7  ;;  %820 = vmatpush.msrb.mxu3 %v676_v8  ;;  %v613_v63 = vld [vmem:[#allocation11 + $0x10] sm:$0xff]  ;;  %v1285_v4 = vld [vmem:[#allocation14 + $0x3e0] sm:$0xff] }
  0xad   :  { %825 = vmatpush.msra.mxu0 %v673_v5  ;;  %845 = vmatpush.msra.mxu1 %v737_v6  ;;  %v677_v2 = vld [vmem:[#allocation11 + $0x210] sm:$0xff]  ;;  %v618_v5 = vld [vmem:[#allocation11 + $0x38] sm:$0xff]  ;;  %v1217_v7 = vld [vmem:[#allocation14 + $0x1c0] sm:$0xff] }
  0xae   :  { %865 = vmatpush.msra.mxu2 %v674_v11  ;;  %885 = vmatpush.msra.mxu3 %v738_v12  ;;  %v690_v6 = vld [vmem:[#allocation11 + $0x278] sm:$0xff]  ;;  %v1281_v8 = vld [vmem:[#allocation14 + $0x3c0] sm:$0xff] }
  0xaf   :  { %826 = vmatpush.msra.mxu0 %v669_v9  ;;  %846 = vmatpush.msra.mxu1 %v733_v10  ;;  %v614_v9 = vld [vmem:[#allocation11 + $0x18] sm:$0xff]  ;;  %v1213_v11 = vld [vmem:[#allocation14 + $0x1a0] sm:$0xff] }
  0xb0   :  { %866 = vmatpush.msra.mxu2 %v670_v15  ;;  %886 = vmatpush.msra.mxu3 %v734_v16  ;;  %v686_v10 = vld [vmem:[#allocation11 + $0x258] sm:$0xff]  ;;  %v1277_v12 = vld [vmem:[#allocation14 + $0x3a0] sm:$0xff] }
  0xb1   :  { %827 = vmatpush.msra.mxu0 %v665_v13  ;;  %847 = vmatpush.msra.mxu1 %v729_v14  ;;  %v1349_v13 = vld [vmem:[#allocation14 + $0x5e0] sm:$0xff]  ;;  %v682_v15 = vld [vmem:[#allocation11 + $0x238] sm:$0xff] }
  0xb2   :  { %867 = vmatpush.msra.mxu2 %v666_v19  ;;  %887 = vmatpush.msra.mxu3 %v730_v20  ;;  %v1209_v14 = vld [vmem:[#allocation14 + $0x180] sm:$0xff] }
  0xb3   :  { %828 = vmatpush.msra.mxu0 %v661_v17  ;;  %848 = vmatpush.msra.mxu1 %v725_v18  ;;  %v1273_v16 = vld [vmem:[#allocation14 + $0x380] sm:$0xff] }
  0xb4   :  { %868 = vmatpush.msra.mxu2 %v662_v21  ;;  %888 = vmatpush.msra.mxu3 %v726_v22  ;;  %v1345_v17 = vld [vmem:[#allocation14 + $0x5c0] sm:$0xff] }
  0xb5   :  { %829 = vmatpush.msra.mxu0 %v657_v0  ;;  %849 = vmatpush.msra.mxu1 %v721_v1  ;;  %v1205_v18 = vld [vmem:[#allocation14 + $0x160] sm:$0xff]  ;;  %v678_v0 = vld [vmem:[#allocation11 + $0x218] sm:$0xff] }
  0xb6   :  { %869 = vmatpush.msra.mxu2 %v658_v25  ;;  %889 = vmatpush.msra.mxu3 %v722_v26  ;;  %v1269_v19 = vld [vmem:[#allocation14 + $0x360] sm:$0xff] }
  0xb7   :  { %830 = vmatpush.msra.mxu0 %v653_v23  ;;  %850 = vmatpush.msra.mxu1 %v717_v24  ;;  %v1341_v20 = vld [vmem:[#allocation14 + $0x5a0] sm:$0xff] }
  0xb8   :  { %870 = vmatpush.msra.mxu2 %v654_v29  ;;  %890 = vmatpush.msra.mxu3 %v718_v30  ;;  %v1201_v1 = vld [vmem:[#allocation14 + $0x140] sm:$0xff] }
  0xb9   :  { %831 = vmatpush.msra.mxu0 %v649_v27  ;;  %851 = vmatpush.msra.mxu1 %v713_v28  ;;  %v1265_v21 = vld [vmem:[#allocation14 + $0x340] sm:$0xff] }
  0xba   :  { %871 = vmatpush.msra.mxu2 %v650_v33  ;;  %891 = vmatpush.msra.mxu3 %v714_v34  ;;  %v1337_v22 = vld [vmem:[#allocation14 + $0x580] sm:$0xff] }
  0xbb   :  { %832 = vmatpush.msra.mxu0 %v645_v31  ;;  %852 = vmatpush.msra.mxu1 %v709_v32  ;;  %v1413_v23 = vld [vmem:[#allocation14 + $0x7e0] sm:$0xff] }
  0xbc   :  { %872 = vmatpush.msra.mxu2 %v646_v37  ;;  %892 = vmatpush.msra.mxu3 %v710_v38  ;;  %v1197_v24 = vld [vmem:[#allocation14 + $0x120] sm:$0xff] }
  0xbd   :  { %833 = vmatpush.msra.mxu0 %v641_v35  ;;  %853 = vmatpush.msra.mxu1 %v705_v36  ;;  %v1261_v25 = vld [vmem:[#allocation14 + $0x320] sm:$0xff] }
  0xbe   :  { %873 = vmatpush.msra.mxu2 %v642_v41  ;;  %893 = vmatpush.msra.mxu3 %v706_v42  ;;  %v1333_v26 = vld [vmem:[#allocation14 + $0x560] sm:$0xff] }
  0xbf   :  { %834 = vmatpush.msra.mxu0 %v637_v39  ;;  %854 = vmatpush.msra.mxu1 %v701_v40  ;;  %v1409_v27 = vld [vmem:[#allocation14 + $0x7c0] sm:$0xff] }
  0xc0   :  { %874 = vmatpush.msra.mxu2 %v638_v45  ;;  %894 = vmatpush.msra.mxu3 %v702_v46  ;;  %v1193_v28 = vld [vmem:[#allocation14 + $0x100] sm:$0xff] }
  0xc1   :  { %835 = vmatpush.msra.mxu0 %v633_v43  ;;  %855 = vmatpush.msra.mxu1 %v697_v44  ;;  %v1257_v29 = vld [vmem:[#allocation14 + $0x300] sm:$0xff] }
  0xc2   :  { %875 = vmatpush.msra.mxu2 %v634_v49  ;;  %895 = vmatpush.msra.mxu3 %v698_v50  ;;  %v1329_v30 = vld [vmem:[#allocation14 + $0x540] sm:$0xff] }
  0xc3   :  { %836 = vmatpush.msra.mxu0 %v629_v47  ;;  %856 = vmatpush.msra.mxu1 %v693_v48  ;;  %v1405_v31 = vld [vmem:[#allocation14 + $0x7a0] sm:$0xff] }
  0xc4   :  { %876 = vmatpush.msra.mxu2 %v630_v53  ;;  %761 = vmatmul.f32.vlgmr.msrb.gmra.mxu0 %v3075_v54  ;;  %v1189_v32 = vld [vmem:[#allocation14 + $0xe0] sm:$0xff] }
  0xc5   :  { %837 = vmatpush.msra.mxu0 %v625_v51  ;;  %857 = vmatpush.msra.mxu1 %v689_v52  ;;  %v1253_v33 = vld [vmem:[#allocation14 + $0x2e0] sm:$0xff] }
  0xc6   :  { %877 = vmatpush.msra.mxu2 %v626_v57  ;;  %781 = vmatmul.f32.vlgmr.msrb.gmra.mxu1 %v3077_v58  ;;  %v1325_v34 = vld [vmem:[#allocation14 + $0x520] sm:$0xff] }
  0xc7   :  { %838 = vmatpush.msra.mxu0 %v621_v55  ;;  %858 = vmatpush.msra.mxu1 %v685_v56  ;;  %v1401_v35 = vld [vmem:[#allocation14 + $0x780] sm:$0xff] }
  0xc8   :  { %878 = vmatpush.msra.mxu2 %v622_v61  ;;  %896 = vmatpush.msra.mxu3 %v694_v62  ;;  %v1185_v36 = vld [vmem:[#allocation14 + $0xc0] sm:$0xff] }
  0xc9   :  { %839 = vmatpush.msra.mxu0 %v617_v59  ;;  %859 = vmatpush.msra.mxu1 %v681_v60  ;;  %v1249_v37 = vld [vmem:[#allocation14 + $0x2c0] sm:$0xff] }
  0xca   :  { %879 = vmatpush.msra.mxu2 %v618_v5  ;;  %897 = vmatpush.msra.mxu3 %v690_v6  ;;  %v1321_v38 = vld [vmem:[#allocation14 + $0x500] sm:$0xff]  ;;  %v1286_v5 = vld [vmem:[#allocation14 + $0x3e8] sm:$0xff] }
  0xcb   :  { %840 = vmatpush.msra.mxu0 %v613_v63  ;;  %860 = vmatpush.msra.mxu1 %v677_v2  ;;  %v1397_v39 = vld [vmem:[#allocation14 + $0x760] sm:$0xff] }
  0xcc   :  { %880 = vmatpush.msra.mxu2 %v614_v9  ;;  %898 = vmatpush.msra.mxu3 %v686_v10  ;;  %v1181_v40 = vld [vmem:[#allocation14 + $0xa0] sm:$0xff]  ;;  %v1282_v9 = vld [vmem:[#allocation14 + $0x3c8] sm:$0xff] }
  0xcd   :  { %1417 = vmatpush.msrb.mxu0 %v1221_v3  ;;  %1437 = vmatpush.msrb.mxu1 %v1285_v4  ;;  %v1245_v41 = vld [vmem:[#allocation14 + $0x2a0] sm:$0xff]  ;;  %v1222_v4 = vld [vmem:[#allocation14 + $0x1e8] sm:$0xff] }
  0xce   :  { %801 = vmatmul.f32.vlgmr.msrb.gmra.mxu2 %v3075_v54  ;;  %899 = vmatpush.msra.mxu3 %v682_v15  ;;  %v1317_v42 = vld [vmem:[#allocation14 + $0x4e0] sm:$0xff] }
  0xcf   :  { %1418 = vmatpush.msrb.mxu0 %v1217_v7  ;;  %1438 = vmatpush.msrb.mxu1 %v1281_v8  ;;  %v1393_v43 = vld [vmem:[#allocation14 + $0x740] sm:$0xff]  ;;  %v1218_v8 = vld [vmem:[#allocation14 + $0x1c8] sm:$0xff] }
  0xd0   :  { %1457 = vmatpush.msrb.mxu2 %v1349_v13  ;;  %821 = vmatmul.f32.vlgmr.msrb.gmra.mxu3 %v3077_v58  ;;  %v1177_v44 = vld [vmem:[#allocation14 + $0x80] sm:$0xff]  ;;  %v1278_v13 = vld [vmem:[#allocation14 + $0x3a8] sm:$0xff] }
  0xd1   :  { %1419 = vmatpush.msrb.mxu0 %v1213_v11  ;;  %1439 = vmatpush.msrb.mxu1 %v1277_v12  ;;  %v1241_v45 = vld [vmem:[#allocation14 + $0x280] sm:$0xff]  ;;  %v1214_v12 = vld [vmem:[#allocation14 + $0x1a8] sm:$0xff] }
  0xd2   :  { %1458 = vmatpush.msrb.mxu2 %v1345_v17  ;;  %900 = vmatpush.msra.mxu3 %v678_v0  ;;  %v1313_v46 = vld [vmem:[#allocation14 + $0x4c0] sm:$0xff]  ;;  %v1274_v17 = vld [vmem:[#allocation14 + $0x388] sm:$0xff] }
  0xd3   :  { %1420 = vmatpush.msrb.mxu0 %v1209_v14  ;;  %1440 = vmatpush.msrb.mxu1 %v1273_v16  ;;  %v1389_v47 = vld [vmem:[#allocation14 + $0x720] sm:$0xff]  ;;  %v1350_v14 = vld [vmem:[#allocation14 + $0x5e8] sm:$0xff] }
  0xd4   :  { %1459 = vmatpush.msrb.mxu2 %v1341_v20  ;;  %1477 = vmatpush.msrb.mxu3 %v1413_v23  ;;  %v1173_v48 = vld [vmem:[#allocation14 + $0x60] sm:$0xff]  ;;  %v1210_v16 = vld [vmem:[#allocation14 + $0x188] sm:$0xff] }
  0xd5   :  { %1421 = vmatpush.msrb.mxu0 %v1205_v18  ;;  %1441 = vmatpush.msrb.mxu1 %v1269_v19  ;;  %v1237_v49 = vld [vmem:[#allocation14 + $0x260] sm:$0xff]  ;;  %v1346_v18 = vld [vmem:[#allocation14 + $0x5c8] sm:$0xff] }
  0xd6   :  { %1460 = vmatpush.msrb.mxu2 %v1337_v22  ;;  %1478 = vmatpush.msrb.mxu3 %v1409_v27  ;;  %v1309_v50 = vld [vmem:[#allocation14 + $0x4a0] sm:$0xff]  ;;  %v1206_v20 = vld [vmem:[#allocation14 + $0x168] sm:$0xff] }
  0xd7   :  { %1422 = vmatpush.msrb.mxu0 %v1201_v1  ;;  %1442 = vmatpush.msrb.mxu1 %v1265_v21  ;;  %v1385_v51 = vld [vmem:[#allocation14 + $0x700] sm:$0xff]  ;;  %v1270_v0 = vld [vmem:[#allocation14 + $0x368] sm:$0xff] }
  0xd8   :  { %1461 = vmatpush.msrb.mxu2 %v1333_v26  ;;  %1479 = vmatpush.msrb.mxu3 %v1405_v31  ;;  %v1169_v52 = vld [vmem:[#allocation14 + $0x40] sm:$0xff]  ;;  %v1342_v1 = vld [vmem:[#allocation14 + $0x5a8] sm:$0xff] }
  0xd9   :  { %1423 = vmatpush.msrb.mxu0 %v1197_v24  ;;  %1443 = vmatpush.msrb.mxu1 %v1261_v25  ;;  %v1233_v53 = vld [vmem:[#allocation14 + $0x240] sm:$0xff]  ;;  %v1202_v22 = vld [vmem:[#allocation14 + $0x148] sm:$0xff] }
  0xda   :  { %1462 = vmatpush.msrb.mxu2 %v1329_v30  ;;  %1480 = vmatpush.msrb.mxu3 %v1401_v35  ;;  %v1305_v55 = vld [vmem:[#allocation14 + $0x480] sm:$0xff]  ;;  %v1338_v23 = vld [vmem:[#allocation14 + $0x588] sm:$0xff] }
  0xdb   :  { %1424 = vmatpush.msrb.mxu0 %v1193_v28  ;;  %1444 = vmatpush.msrb.mxu1 %v1257_v29  ;;  %v1381_v56 = vld [vmem:[#allocation14 + $0x6e0] sm:$0xff]  ;;  %v1414_v26 = vld [vmem:[#allocation14 + $0x7e8] sm:$0xff] }
  0xdc   :  { %1463 = vmatpush.msrb.mxu2 %v1325_v34  ;;  %1481 = vmatpush.msrb.mxu3 %v1397_v39  ;;  %v1165_v57 = vld [vmem:[#allocation14 + $0x20] sm:$0xff]  ;;  %v1198_v27 = vld [vmem:[#allocation14 + $0x128] sm:$0xff] }
  0xdd   :  { %1425 = vmatpush.msrb.mxu0 %v1189_v32  ;;  %1445 = vmatpush.msrb.mxu1 %v1253_v33  ;;  %v1229_v59 = vld [vmem:[#allocation14 + $0x220] sm:$0xff]  ;;  %v1262_v30 = vld [vmem:[#allocation14 + $0x328] sm:$0xff] }
  0xde   :  { %1464 = vmatpush.msrb.mxu2 %v1321_v38  ;;  %1482 = vmatpush.msrb.mxu3 %v1393_v43  ;;  %v1301_v60 = vld [vmem:[#allocation14 + $0x460] sm:$0xff]  ;;  %v1334_v31 = vld [vmem:[#allocation14 + $0x568] sm:$0xff] }
  0xdf   :  { %1426 = vmatpush.msrb.mxu0 %v1185_v36  ;;  %1446 = vmatpush.msrb.mxu1 %v1249_v37  ;;  %v1377_v61 = vld [vmem:[#allocation14 + $0x6c0] sm:$0xff]  ;;  %v1194_v32 = vld [vmem:[#allocation14 + $0x108] sm:$0xff] }
  0xe0   :  { %1465 = vmatpush.msrb.mxu2 %v1317_v42  ;;  %1483 = vmatpush.msrb.mxu3 %v1389_v47  ;;  %v1161_v62 = vld [vmem:[#allocation14] sm:$0xff]  ;;  %v1258_v33 = vld [vmem:[#allocation14 + $0x308] sm:$0xff] }
  0xe1   :  { %1427 = vmatpush.msrb.mxu0 %v1181_v40  ;;  %1447 = vmatpush.msrb.mxu1 %v1245_v41  ;;  %v1225_v63 = vld [vmem:[#allocation14 + $0x200] sm:$0xff]  ;;  %v1330_v34 = vld [vmem:[#allocation14 + $0x548] sm:$0xff] }
  0xe2   :  { %1466 = vmatpush.msrb.mxu2 %v1313_v46  ;;  %1484 = vmatpush.msrb.mxu3 %v1385_v51  ;;  %v1297_v2 = vld [vmem:[#allocation14 + $0x440] sm:$0xff]  ;;  %v1406_v35 = vld [vmem:[#allocation14 + $0x7a8] sm:$0xff] }
  0xe3   :  { %1428 = vmatpush.msrb.mxu0 %v1177_v44  ;;  %1448 = vmatpush.msrb.mxu1 %v1241_v45  ;;  %v1373_v3 = vld [vmem:[#allocation14 + $0x6a0] sm:$0xff]  ;;  %v1190_v36 = vld [vmem:[#allocation14 + $0xe8] sm:$0xff] }
  0xe4   :  { %1467 = vmatpush.msrb.mxu2 %v1309_v50  ;;  %1485 = vmatpush.msrb.mxu3 %v1381_v56  ;;  %v1293_v6 = vld [vmem:[#allocation14 + $0x420] sm:$0xff]  ;;  %v3087_v24 = vpop.f32.mrf.mxu0  ;;  %v3089_v25 = vpop.f32.mrf.mxu1  ;;  %v1254_v37 = vld [vmem:[#allocation14 + $0x2e8] sm:$0xff] }
  0xe5   :  { %1429 = vmatpush.msrb.mxu0 %v1173_v48  ;;  %1449 = vmatpush.msrb.mxu1 %v1237_v49  ;;  %v1369_v7 = vld [vmem:[#allocation14 + $0x680] sm:$0xff]  ;;  %v1326_v38 = vld [vmem:[#allocation14 + $0x528] sm:$0xff] }
  0xe6   :  { %1468 = vmatpush.msrb.mxu2 %v1305_v55  ;;  %1486 = vmatpush.msrb.mxu3 %v1377_v61  ;;  %v1289_v10 = vld [vmem:[#allocation14 + $0x400] sm:$0xff]  ;;  %v1402_v39 = vld [vmem:[#allocation14 + $0x788] sm:$0xff] }
  0xe7   :  { %1430 = vmatpush.msrb.mxu0 %v1169_v52  ;;  %1450 = vmatpush.msrb.mxu1 %v1233_v53  ;;  %v1365_v11 = vld [vmem:[#allocation14 + $0x660] sm:$0xff]  ;;  %v1186_v40 = vld [vmem:[#allocation14 + $0xc8] sm:$0xff] }
  0xe8   :  { %1469 = vmatpush.msrb.mxu2 %v1301_v60  ;;  %1487 = vmatpush.msrb.mxu3 %v1373_v3  ;;  %v1361_v15 = vld [vmem:[#allocation14 + $0x640] sm:$0xff]  ;;  %v1250_v41 = vld [vmem:[#allocation14 + $0x2c8] sm:$0xff] }
  0xe9   :  { %1431 = vmatpush.msrb.mxu0 %v1165_v57  ;;  %1451 = vmatpush.msrb.mxu1 %v1229_v59  ;;  %v1357_v19 = vld [vmem:[#allocation14 + $0x620] sm:$0xff]  ;;  %v1322_v42 = vld [vmem:[#allocation14 + $0x508] sm:$0xff] }
  0xea   :  { %1470 = vmatpush.msrb.mxu2 %v1297_v2  ;;  %841 = vmatmul.f32.vlgmr.msra.gmra.mxu0 %v3075_v54  ;;  %v1353_v21 = vld [vmem:[#allocation14 + $0x600] sm:$0xff]  ;;  %v1398_v43 = vld [vmem:[#allocation14 + $0x768] sm:$0xff] }
  0xeb   :  { %1432 = vmatpush.msrb.mxu0 %v1161_v62  ;;  %1452 = vmatpush.msrb.mxu1 %v1225_v63  ;;  %v3091_v28 = vpop.f32.mrf.mxu2  ;;  %v3093_v29 = vpop.f32.mrf.mxu3  ;;  %v1182_v46 = vld [vmem:[#allocation14 + $0xa8] sm:$0xff] }
  0xec   :  { %861 = vmatmul.f32.vlgmr.msra.gmra.mxu1 %v3077_v58  ;;  %1471 = vmatpush.msrb.mxu2 %v1293_v6  ;;  %v1246_v49 = vld [vmem:[#allocation14 + $0x2a8] sm:$0xff] }
  0xed   :  { %1497 = vmatpush.msra.mxu0 %v1222_v4  ;;  %1517 = vmatpush.msra.mxu1 %v1286_v5  ;;  %v1318_v50 = vld [vmem:[#allocation14 + $0x4e8] sm:$0xff] }
  0xee   :  { %1488 = vmatpush.msrb.mxu3 %v1369_v7  ;;  %1472 = vmatpush.msrb.mxu2 %v1289_v10  ;;  %v1394_v51 = vld [vmem:[#allocation14 + $0x748] sm:$0xff] }
  0xef   :  { %1498 = vmatpush.msra.mxu0 %v1218_v8  ;;  %1518 = vmatpush.msra.mxu1 %v1282_v9  ;;  %v1178_v52 = vld [vmem:[#allocation14 + $0x88] sm:$0xff] }
  0xf0   :  { %1489 = vmatpush.msrb.mxu3 %v1365_v11  ;;  %881 = vmatmul.f32.vlgmr.msra.gmra.mxu2 %v3075_v54  ;;  %v1266_v54 = vld [vmem:[#allocation14 + $0x348] sm:$0xff] }
  0xf1   :  { %1499 = vmatpush.msra.mxu0 %v1214_v12  ;;  %1519 = vmatpush.msra.mxu1 %v1278_v13  ;;  %v1242_v55 = vld [vmem:[#allocation14 + $0x288] sm:$0xff] }
  0xf2   :  { %1537 = vmatpush.msra.mxu2 %v1350_v14  ;;  %1490 = vmatpush.msrb.mxu3 %v1361_v15  ;;  %v1314_v56 = vld [vmem:[#allocation14 + $0x4c8] sm:$0xff]  ;;  %v1223_v14 = vld [vmem:[#allocation14 + $0x1f0] sm:$0xff] }
  0xf3   :  { %1500 = vmatpush.msra.mxu0 %v1210_v16  ;;  %1520 = vmatpush.msra.mxu1 %v1274_v17  ;;  %v1390_v59 = vld [vmem:[#allocation14 + $0x728] sm:$0xff]  ;;  %v1287_v17 = vld [vmem:[#allocation14 + $0x3f0] sm:$0xff] }
  0xf4   :  { %1538 = vmatpush.msra.mxu2 %v1346_v18  ;;  %1491 = vmatpush.msrb.mxu3 %v1357_v19  ;;  %v1174_v60 = vld [vmem:[#allocation14 + $0x68] sm:$0xff] }
  0xf5   :  { %901 = vmatmul.f32.vlgmr.msra.gmra.mxu3 %v3077_v58  ;;  %1501 = vmatpush.msra.mxu0 %v1206_v20  ;;  %v1410_v58 = vld [vmem:[#allocation14 + $0x7c8] sm:$0xff]  ;;  %v1219_v20 = vld [vmem:[#allocation14 + $0x1d0] sm:$0xff] }
  0xf6   :  { %1521 = vmatpush.msra.mxu1 %v1270_v0  ;;  %1539 = vmatpush.msra.mxu2 %v1342_v1  ;;  %v1238_v61 = vld [vmem:[#allocation14 + $0x268] sm:$0xff]  ;;  %v1283_v1 = vld [vmem:[#allocation14 + $0x3d0] sm:$0xff] }
  0xf7   :  { %1492 = vmatpush.msrb.mxu3 %v1353_v21  ;;  %1502 = vmatpush.msra.mxu0 %v1202_v22  ;;  %v1310_v62 = vld [vmem:[#allocation14 + $0x4a8] sm:$0xff] }
  0xf8   :  { %1522 = vmatpush.msra.mxu1 %v1266_v54  ;;  %1540 = vmatpush.msra.mxu2 %v1338_v23  ;;  %v1386_v63 = vld [vmem:[#allocation14 + $0x708] sm:$0xff]  ;;  %v1215_v54 = vld [vmem:[#allocation14 + $0x1b0] sm:$0xff] }
  0xf9   :  { %1557 = vmatpush.msra.mxu3 %v1414_v26  ;;  %1503 = vmatpush.msra.mxu0 %v1198_v27  ;;  %v1170_v2 = vld [vmem:[#allocation14 + $0x48] sm:$0xff]  ;;  %v1279_v23 = vld [vmem:[#allocation14 + $0x3b0] sm:$0xff] }
  0xfa   :  { %1523 = vmatpush.msra.mxu1 %v1262_v30  ;;  %1541 = vmatpush.msra.mxu2 %v1334_v31  ;;  %v507_v47 = vpop.f32.mrf.mxu2  ;;  %v527_v48 = vpop.f32.mrf.mxu3  ;;  %v1234_v3 = vld [vmem:[#allocation14 + $0x248] sm:$0xff]  ;;  %v1351_v26 = vld [vmem:[#allocation14 + $0x5f0] sm:$0xff] }
  0xfb   :  { %1558 = vmatpush.msra.mxu3 %v1410_v58  ;;  %1504 = vmatpush.msra.mxu0 %v1194_v32  ;;  %v467_v44 = vpop.f32.mrf.mxu0  ;;  %v487_v45 = vpop.f32.mrf.mxu1  ;;  %v3097_v57 = vadd.f32 %v527_v48, %v507_v47  ;;  %v1306_v4 = vld [vmem:[#allocation14 + $0x488] sm:$0xff]  ;;  %v1211_v30 = vld [vmem:[#allocation14 + $0x190] sm:$0xff] }
  0xfc   :  { %1524 = vmatpush.msra.mxu1 %v1258_v33  ;;  %1542 = vmatpush.msra.mxu2 %v1330_v34  ;;  %v3095_v53 = vadd.f32 %v487_v45, %v467_v44  ;;  %v1382_v5 = vld [vmem:[#allocation14 + $0x6e8] sm:$0xff]  ;;  %v1275_v31 = vld [vmem:[#allocation14 + $0x390] sm:$0xff] }
  0xfd   :  { %1559 = vmatpush.msra.mxu3 %v1406_v35  ;;  %1505 = vmatpush.msra.mxu0 %v1190_v36  ;;  %v1166_v6 = vld [vmem:[#allocation14 + $0x28] sm:$0xff]  ;;  %v1347_v33 = vld [vmem:[#allocation14 + $0x5d0] sm:$0xff] }
  0xfe   :  { %1525 = vmatpush.msra.mxu1 %v1254_v37  ;;  %1543 = vmatpush.msra.mxu2 %v1326_v38  ;;  %v1230_v7 = vld [vmem:[#allocation14 + $0x228] sm:$0xff]  ;;  %v1207_v35 = vld [vmem:[#allocation14 + $0x170] sm:$0xff] }
  0xff   :  { %1560 = vmatpush.msra.mxu3 %v1402_v39  ;;  %1506 = vmatpush.msra.mxu0 %v1186_v40  ;;  %v1302_v8 = vld [vmem:[#allocation14 + $0x468] sm:$0xff]  ;;  %v1271_v36 = vld [vmem:[#allocation14 + $0x370] sm:$0xff] }
 0x100   :  { %1526 = vmatpush.msra.mxu1 %v1250_v41  ;;  %1544 = vmatpush.msra.mxu2 %v1322_v42  ;;  %v1378_v9 = vld [vmem:[#allocation14 + $0x6c8] sm:$0xff]  ;;  %v1343_v38 = vld [vmem:[#allocation14 + $0x5b0] sm:$0xff] }
 0x101   :  { %1561 = vmatpush.msra.mxu3 %v1398_v43  ;;  %1507 = vmatpush.msra.mxu0 %v1182_v46  ;;  %v1162_v10 = vld [vmem:[#allocation14 + $0x8] sm:$0xff]  ;;  %v1203_v40 = vld [vmem:[#allocation14 + $0x150] sm:$0xff] }
 0x102   :  { %1527 = vmatpush.msra.mxu1 %v1246_v49  ;;  %1545 = vmatpush.msra.mxu2 %v1318_v50  ;;  %v1226_v11 = vld [vmem:[#allocation14 + $0x208] sm:$0xff]  ;;  %v1267_v41 = vld [vmem:[#allocation14 + $0x350] sm:$0xff] }
 0x103   :  { %1562 = vmatpush.msra.mxu3 %v1394_v51  ;;  %1508 = vmatpush.msra.mxu0 %v1178_v52  ;;  %v1298_v12 = vld [vmem:[#allocation14 + $0x448] sm:$0xff]  ;;  %v1339_v42 = vld [vmem:[#allocation14 + $0x590] sm:$0xff] }
 0x104   :  { %1528 = vmatpush.msra.mxu1 %v1242_v55  ;;  %1546 = vmatpush.msra.mxu2 %v1314_v56  ;;  %v1374_v13 = vld [vmem:[#allocation14 + $0x6a8] sm:$0xff]  ;;  %v1415_v43 = vld [vmem:[#allocation14 + $0x7f0] sm:$0xff] }
 0x105   :  { %1563 = vmatpush.msra.mxu3 %v1390_v59  ;;  %1433 = vmatmul.f32.vlgmr.msrb.gmra.mxu0 %v3095_v53  ;;  %v1294_v18 = vld [vmem:[#allocation14 + $0x428] sm:$0xff]  ;;  %v1199_v44 = vld [vmem:[#allocation14 + $0x130] sm:$0xff] }
 0x106   :  { %1453 = vmatmul.f32.vlgmr.msrb.gmra.mxu1 %v3097_v57  ;;  %1509 = vmatpush.msra.mxu0 %v1174_v60  ;;  %v1370_v19 = vld [vmem:[#allocation14 + $0x688] sm:$0xff]  ;;  %v1263_v45 = vld [vmem:[#allocation14 + $0x330] sm:$0xff] }
 0x107   :  { %1529 = vmatpush.msra.mxu1 %v1238_v61  ;;  %1547 = vmatpush.msra.mxu2 %v1310_v62  ;;  %v1290_v21 = vld [vmem:[#allocation14 + $0x408] sm:$0xff]  ;;  %v1335_v46 = vld [vmem:[#allocation14 + $0x570] sm:$0xff] }
 0x108   :  { %1564 = vmatpush.msra.mxu3 %v1386_v63  ;;  %1510 = vmatpush.msra.mxu0 %v1170_v2  ;;  %v547_v15 = vpop.f32.mrf.mxu0  ;;  %v567_v16 = vpop.f32.mrf.mxu1  ;;  %v1366_v22 = vld [vmem:[#allocation14 + $0x668] sm:$0xff]  ;;  %v1411_v47 = vld [vmem:[#allocation14 + $0x7d0] sm:$0xff] }
 0x109   :  { %1530 = vmatpush.msra.mxu1 %v1234_v3  ;;  %1548 = vmatpush.msra.mxu2 %v1306_v4  ;;  %v3103_v0 = vadd.f32 %v567_v16, %v547_v15  ;;  %v1362_v27 = vld [vmem:[#allocation14 + $0x648] sm:$0xff]  ;;  %v1195_v48 = vld [vmem:[#allocation14 + $0x110] sm:$0xff] }
 0x10a   :  { %1565 = vmatpush.msra.mxu3 %v1382_v5  ;;  %1511 = vmatpush.msra.mxu0 %v1166_v6  ;;  %v1358_v34 = vld [vmem:[#allocation14 + $0x628] sm:$0xff]  ;;  %v1259_v49 = vld [vmem:[#allocation14 + $0x310] sm:$0xff] }
 0x10b   :  { %1531 = vmatpush.msra.mxu1 %v1230_v7  ;;  %1549 = vmatpush.msra.mxu2 %v1302_v8  ;;  %v1354_v39 = vld [vmem:[#allocation14 + $0x608] sm:$0xff]  ;;  %v1331_v50 = vld [vmem:[#allocation14 + $0x550] sm:$0xff] }
 0x10c   :  { %1566 = vmatpush.msra.mxu3 %v1378_v9  ;;  %1512 = vmatpush.msra.mxu0 %v1162_v10  ;;  %v1407_v51 = vld [vmem:[#allocation14 + $0x7b0] sm:$0xff] }
 0x10d   :  { %1532 = vmatpush.msra.mxu1 %v1226_v11  ;;  %1550 = vmatpush.msra.mxu2 %v1298_v12  ;;  %v1191_v52 = vld [vmem:[#allocation14 + $0xf0] sm:$0xff] }
 0x10e   :  { %1567 = vmatpush.msra.mxu3 %v1374_v13  ;;  %1513 = vmatmul.f32.vlgmr.msra.gmra.mxu0 %v3095_v53  ;;  %v1255_v55 = vld [vmem:[#allocation14 + $0x2f0] sm:$0xff] }
 0x10f   :  { %1533 = vmatmul.f32.vlgmr.msra.gmra.mxu1 %v3097_v57  ;;  %1577 = vmatpush.msrb.mxu0 %v1223_v14  ;;  %v587_v58 = vpop.f32.mrf.mxu2  ;;  %v607_v32 = vpop.f32.mrf.mxu3  ;;  %v1327_v56 = vld [vmem:[#allocation14 + $0x530] sm:$0xff] }
 0x110   :  { %1597 = vmatpush.msrb.mxu1 %v1287_v17  ;;  %1551 = vmatpush.msra.mxu2 %v1294_v18  ;;  %v3106_v37 = vadd.f32 %v607_v32, %v587_v58  ;;  %v1403_v59 = vld [vmem:[#allocation14 + $0x790] sm:$0xff]  ;;  %v1220_v58 = vld [vmem:[#allocation14 + $0x1d8] sm:$0xff] }
 0x111   :  { %1568 = vmatpush.msra.mxu3 %v1370_v19  ;;  %1578 = vmatpush.msrb.mxu0 %v1219_v20  ;;  %v1187_v60 = vld [vmem:[#allocation14 + $0xd0] sm:$0xff]  ;;  %v1284_v32 = vld [vmem:[#allocation14 + $0x3d8] sm:$0xff] }
 0x112   :  { %1598 = vmatpush.msrb.mxu1 %v1283_v1  ;;  %1552 = vmatpush.msra.mxu2 %v1290_v21  ;;  %v1251_v61 = vld [vmem:[#allocation14 + $0x2d0] sm:$0xff] }
 0x113   :  { %1569 = vmatpush.msra.mxu3 %v1366_v22  ;;  %1473 = vmatmul.f32.vlgmr.msrb.gmra.mxu2 %v3103_v0  ;;  %v1323_v62 = vld [vmem:[#allocation14 + $0x510] sm:$0xff] }
 0x114   :  { %1579 = vmatpush.msrb.mxu0 %v1215_v54  ;;  %1599 = vmatpush.msrb.mxu1 %v1279_v23  ;;  %v1399_v63 = vld [vmem:[#allocation14 + $0x770] sm:$0xff] }
 0x115   :  { %1617 = vmatpush.msrb.mxu2 %v1351_v26  ;;  %1570 = vmatpush.msra.mxu3 %v1362_v27  ;;  %v1183_v2 = vld [vmem:[#allocation14 + $0xb0] sm:$0xff]  ;;  %v1224_v26 = vld [vmem:[#allocation14 + $0x1f8] sm:$0xff] }
 0x116   :  { %1580 = vmatpush.msrb.mxu0 %v1211_v30  ;;  %1600 = vmatpush.msrb.mxu1 %v1275_v31  ;;  %v1247_v3 = vld [vmem:[#allocation14 + $0x2b0] sm:$0xff]  ;;  %v1288_v27 = vld [vmem:[#allocation14 + $0x3f8] sm:$0xff] }
 0x117   :  { %1618 = vmatpush.msrb.mxu2 %v1347_v33  ;;  %1571 = vmatpush.msra.mxu3 %v1358_v34  ;;  %v1319_v4 = vld [vmem:[#allocation14 + $0x4f0] sm:$0xff] }
 0x118   :  { %1581 = vmatpush.msrb.mxu0 %v1207_v35  ;;  %1601 = vmatpush.msrb.mxu1 %v1271_v36  ;;  %v1395_v5 = vld [vmem:[#allocation14 + $0x750] sm:$0xff]  ;;  %v1216_v35 = vld [vmem:[#allocation14 + $0x1b8] sm:$0xff] }
 0x119   :  { %1619 = vmatpush.msrb.mxu2 %v1343_v38  ;;  %1572 = vmatpush.msra.mxu3 %v1354_v39  ;;  %v1179_v6 = vld [vmem:[#allocation14 + $0x90] sm:$0xff]  ;;  %v1280_v36 = vld [vmem:[#allocation14 + $0x3b8] sm:$0xff] }
 0x11a   :  { %1493 = vmatmul.f32.vlgmr.msrb.gmra.mxu3 %v3106_v37  ;;  %1582 = vmatpush.msrb.mxu0 %v1203_v40  ;;  %v1243_v7 = vld [vmem:[#allocation14 + $0x290] sm:$0xff]  ;;  %v1352_v38 = vld [vmem:[#allocation14 + $0x5f8] sm:$0xff] }
 0x11b   :  { %1602 = vmatpush.msrb.mxu1 %v1267_v41  ;;  %1620 = vmatpush.msrb.mxu2 %v1339_v42  ;;  %v1315_v8 = vld [vmem:[#allocation14 + $0x4d0] sm:$0xff]  ;;  %v1212_v40 = vld [vmem:[#allocation14 + $0x198] sm:$0xff] }
 0x11c   :  { %1637 = vmatpush.msrb.mxu3 %v1415_v43  ;;  %1553 = vmatmul.f32.vlgmr.msra.gmra.mxu2 %v3103_v0  ;;  %v1391_v9 = vld [vmem:[#allocation14 + $0x730] sm:$0xff]  ;;  %v1276_v41 = vld [vmem:[#allocation14 + $0x398] sm:$0xff] }
 0x11d   :  { %1583 = vmatpush.msrb.mxu0 %v1199_v44  ;;  %1603 = vmatpush.msrb.mxu1 %v1263_v45  ;;  %v1175_v10 = vld [vmem:[#allocation14 + $0x70] sm:$0xff]  ;;  %v1348_v42 = vld [vmem:[#allocation14 + $0x5d8] sm:$0xff] }
 0x11e   :  { %1621 = vmatpush.msrb.mxu2 %v1335_v46  ;;  %1638 = vmatpush.msrb.mxu3 %v1411_v47  ;;  %v1239_v11 = vld [vmem:[#allocation14 + $0x270] sm:$0xff]  ;;  %v1208_v44 = vld [vmem:[#allocation14 + $0x178] sm:$0xff] }
 0x11f   :  { %1584 = vmatpush.msrb.mxu0 %v1195_v48  ;;  %1604 = vmatpush.msrb.mxu1 %v1259_v49  ;;  %v1311_v12 = vld [vmem:[#allocation14 + $0x4b0] sm:$0xff]  ;;  %v1272_v45 = vld [vmem:[#allocation14 + $0x378] sm:$0xff] }
 0x120   :  { %1622 = vmatpush.msrb.mxu2 %v1331_v50  ;;  %1639 = vmatpush.msrb.mxu3 %v1407_v51  ;;  %v1387_v13 = vld [vmem:[#allocation14 + $0x710] sm:$0xff]  ;;  %v1344_v46 = vld [vmem:[#allocation14 + $0x5b8] sm:$0xff] }
 0x121   :  { %1585 = vmatpush.msrb.mxu0 %v1191_v52  ;;  %1605 = vmatpush.msrb.mxu1 %v1255_v55  ;;  %v1171_v14 = vld [vmem:[#allocation14 + $0x50] sm:$0xff]  ;;  %v1204_v48 = vld [vmem:[#allocation14 + $0x158] sm:$0xff] }
 0x122   :  { %1623 = vmatpush.msrb.mxu2 %v1327_v56  ;;  %1640 = vmatpush.msrb.mxu3 %v1403_v59  ;;  %v1235_v15 = vld [vmem:[#allocation14 + $0x250] sm:$0xff]  ;;  %v1268_v49 = vld [vmem:[#allocation14 + $0x358] sm:$0xff] }
 0x123   :  { %1573 = vmatmul.f32.vlgmr.msra.gmra.mxu3 %v3106_v37  ;;  %1586 = vmatpush.msrb.mxu0 %v1187_v60  ;;  %v1307_v16 = vld [vmem:[#allocation14 + $0x490] sm:$0xff]  ;;  %v1340_v50 = vld [vmem:[#allocation14 + $0x598] sm:$0xff] }
 0x124   :  { %1606 = vmatpush.msrb.mxu1 %v1251_v61  ;;  %1624 = vmatpush.msrb.mxu2 %v1323_v62  ;;  %v1383_v17 = vld [vmem:[#allocation14 + $0x6f0] sm:$0xff]  ;;  %v1416_v51 = vld [vmem:[#allocation14 + $0x7f8] sm:$0xff] }
 0x125   :  { %1641 = vmatpush.msrb.mxu3 %v1399_v63  ;;  %1587 = vmatpush.msrb.mxu0 %v1183_v2  ;;  %v1167_v18 = vld [vmem:[#allocation14 + $0x30] sm:$0xff]  ;;  %v1200_v52 = vld [vmem:[#allocation14 + $0x138] sm:$0xff] }
 0x126   :  { %1607 = vmatpush.msrb.mxu1 %v1247_v3  ;;  %1625 = vmatpush.msrb.mxu2 %v1319_v4  ;;  %v1231_v19 = vld [vmem:[#allocation14 + $0x230] sm:$0xff]  ;;  %v1264_v55 = vld [vmem:[#allocation14 + $0x338] sm:$0xff] }
 0x127   :  { %1642 = vmatpush.msrb.mxu3 %v1395_v5  ;;  %1588 = vmatpush.msrb.mxu0 %v1179_v6  ;;  %v1303_v20 = vld [vmem:[#allocation14 + $0x470] sm:$0xff]  ;;  %v1336_v56 = vld [vmem:[#allocation14 + $0x578] sm:$0xff] }
 0x128   :  { %1608 = vmatpush.msrb.mxu1 %v1243_v7  ;;  %1626 = vmatpush.msrb.mxu2 %v1315_v8  ;;  %v1379_v1 = vld [vmem:[#allocation14 + $0x6d0] sm:$0xff]  ;;  %v1412_v59 = vld [vmem:[#allocation14 + $0x7d8] sm:$0xff] }
 0x129   :  { %1643 = vmatpush.msrb.mxu3 %v1391_v9  ;;  %1589 = vmatpush.msrb.mxu0 %v1175_v10  ;;  %v1163_v21 = vld [vmem:[#allocation14 + $0x10] sm:$0xff]  ;;  %v1196_v60 = vld [vmem:[#allocation14 + $0x118] sm:$0xff] }
 0x12a   :  { %1609 = vmatpush.msrb.mxu1 %v1239_v11  ;;  %1627 = vmatpush.msrb.mxu2 %v1311_v12  ;;  %v1227_v22 = vld [vmem:[#allocation14 + $0x210] sm:$0xff]  ;;  %v1260_v61 = vld [vmem:[#allocation14 + $0x318] sm:$0xff] }
 0x12b   :  { %1644 = vmatpush.msrb.mxu3 %v1387_v13  ;;  %1590 = vmatpush.msrb.mxu0 %v1171_v14  ;;  %v1299_v54 = vld [vmem:[#allocation14 + $0x450] sm:$0xff]  ;;  %v1332_v62 = vld [vmem:[#allocation14 + $0x558] sm:$0xff] }
 0x12c   :  { %1610 = vmatpush.msrb.mxu1 %v1235_v15  ;;  %1628 = vmatpush.msrb.mxu2 %v1307_v16  ;;  %v1375_v23 = vld [vmem:[#allocation14 + $0x6b0] sm:$0xff]  ;;  %v1408_v63 = vld [vmem:[#allocation14 + $0x7b8] sm:$0xff] }
 0x12d   :  { %1645 = vmatpush.msrb.mxu3 %v1383_v17  ;;  %1591 = vmatpush.msrb.mxu0 %v1167_v18  ;;  %v1295_v30 = vld [vmem:[#allocation14 + $0x430] sm:$0xff]  ;;  %v1192_v2 = vld [vmem:[#allocation14 + $0xf8] sm:$0xff] }
 0x12e   :  { %1611 = vmatpush.msrb.mxu1 %v1231_v19  ;;  %1629 = vmatpush.msrb.mxu2 %v1303_v20  ;;  %v1371_v31 = vld [vmem:[#allocation14 + $0x690] sm:$0xff]  ;;  %v1256_v3 = vld [vmem:[#allocation14 + $0x2f8] sm:$0xff] }
 0x12f   :  { %1646 = vmatpush.msrb.mxu3 %v1379_v1  ;;  %1592 = vmatpush.msrb.mxu0 %v1163_v21  ;;  %v1291_v33 = vld [vmem:[#allocation14 + $0x410] sm:$0xff]  ;;  %v1328_v4 = vld [vmem:[#allocation14 + $0x538] sm:$0xff] }
 0x130   :  { %1612 = vmatpush.msrb.mxu1 %v1227_v22  ;;  %1630 = vmatpush.msrb.mxu2 %v1299_v54  ;;  %v1367_v34 = vld [vmem:[#allocation14 + $0x670] sm:$0xff]  ;;  %v1404_v5 = vld [vmem:[#allocation14 + $0x798] sm:$0xff] }
 0x131   :  { %1647 = vmatpush.msrb.mxu3 %v1375_v23  ;;  %1593 = vmatmul.f32.vlgmr.msrb.gmra.mxu0 %v3095_v53  ;;  %v1363_v39 = vld [vmem:[#allocation14 + $0x650] sm:$0xff]  ;;  %v1188_v6 = vld [vmem:[#allocation14 + $0xd8] sm:$0xff] }
 0x132   :  { %1613 = vmatmul.f32.vlgmr.msrb.gmra.mxu1 %v3097_v57  ;;  %1657 = vmatpush.msra.mxu0 %v1224_v26  ;;  %v1359_v43 = vld [vmem:[#allocation14 + $0x630] sm:$0xff]  ;;  %v1252_v7 = vld [vmem:[#allocation14 + $0x2d8] sm:$0xff] }
 0x133   :  { %1677 = vmatpush.msra.mxu1 %v1288_v27  ;;  %1631 = vmatpush.msrb.mxu2 %v1295_v30  ;;  %v1355_v47 = vld [vmem:[#allocation14 + $0x610] sm:$0xff]  ;;  %v1324_v8 = vld [vmem:[#allocation14 + $0x518] sm:$0xff] }
 0x134   :  { %1648 = vmatpush.msrb.mxu3 %v1371_v31  ;;  %1658 = vmatpush.msra.mxu0 %v1220_v58  ;;  %v1400_v9 = vld [vmem:[#allocation14 + $0x778] sm:$0xff] }
 0x135   :  { %1678 = vmatpush.msra.mxu1 %v1284_v32  ;;  %1632 = vmatpush.msrb.mxu2 %v1291_v33  ;;  %v1184_v10 = vld [vmem:[#allocation14 + $0xb8] sm:$0xff] }
 0x136   :  { %1649 = vmatpush.msrb.mxu3 %v1367_v34  ;;  %1633 = vmatmul.f32.vlgmr.msrb.gmra.mxu2 %v3103_v0  ;;  %v1248_v11 = vld [vmem:[#allocation14 + $0x2b8] sm:$0xff] }
 0x137   :  { %1659 = vmatpush.msra.mxu0 %v1216_v35  ;;  %1679 = vmatpush.msra.mxu1 %v1280_v36  ;;  %v1320_v12 = vld [vmem:[#allocation14 + $0x4f8] sm:$0xff]  ;;  %v965_v35 = vld [vmem:[#allocation13 + $0x1e0] sm:$0xff] }
 0x138   :  { %1697 = vmatpush.msra.mxu2 %v1352_v38  ;;  %1650 = vmatpush.msrb.mxu3 %v1363_v39  ;;  %v1396_v13 = vld [vmem:[#allocation14 + $0x758] sm:$0xff]  ;;  %v1029_v36 = vld [vmem:[#allocation13 + $0x3e0] sm:$0xff] }
 0x139   :  { %1660 = vmatpush.msra.mxu0 %v1212_v40  ;;  %1680 = vmatpush.msra.mxu1 %v1276_v41  ;;  %v1180_v14 = vld [vmem:[#allocation14 + $0x98] sm:$0xff]  ;;  %v961_v40 = vld [vmem:[#allocation13 + $0x1c0] sm:$0xff] }
 0x13a   :  { %1698 = vmatpush.msra.mxu2 %v1348_v42  ;;  %1651 = vmatpush.msrb.mxu3 %v1359_v43  ;;  %v1244_v15 = vld [vmem:[#allocation14 + $0x298] sm:$0xff]  ;;  %v1025_v41 = vld [vmem:[#allocation13 + $0x3c0] sm:$0xff] }
 0x13b   :  { %1661 = vmatpush.msra.mxu0 %v1208_v44  ;;  %1681 = vmatpush.msra.mxu1 %v1272_v45  ;;  %v1316_v16 = vld [vmem:[#allocation14 + $0x4d8] sm:$0xff]  ;;  %v957_v44 = vld [vmem:[#allocation13 + $0x1a0] sm:$0xff] }
 0x13c   :  { %1699 = vmatpush.msra.mxu2 %v1344_v46  ;;  %1652 = vmatpush.msrb.mxu3 %v1355_v47  ;;  %v1392_v17 = vld [vmem:[#allocation14 + $0x738] sm:$0xff]  ;;  %v1021_v45 = vld [vmem:[#allocation13 + $0x3a0] sm:$0xff] }
 0x13d   :  { %1653 = vmatmul.f32.vlgmr.msrb.gmra.mxu3 %v3106_v37  ;;  %1662 = vmatpush.msra.mxu0 %v1204_v48  ;;  %v1176_v18 = vld [vmem:[#allocation14 + $0x78] sm:$0xff]  ;;  %v1093_v46 = vld [vmem:[#allocation13 + $0x5e0] sm:$0xff] }
 0x13e   :  { %1682 = vmatpush.msra.mxu1 %v1268_v49  ;;  %1700 = vmatpush.msra.mxu2 %v1340_v50  ;;  %v1240_v19 = vld [vmem:[#allocation14 + $0x278] sm:$0xff]  ;;  %v1017_v48 = vld [vmem:[#allocation13 + $0x380] sm:$0xff] }
 0x13f   :  { %1717 = vmatpush.msra.mxu3 %v1416_v51  ;;  %1663 = vmatpush.msra.mxu0 %v1200_v52  ;;  %v1312_v20 = vld [vmem:[#allocation14 + $0x4b8] sm:$0xff]  ;;  %v949_v50 = vld [vmem:[#allocation13 + $0x160] sm:$0xff] }
 0x140   :  { %1683 = vmatpush.msra.mxu1 %v1264_v55  ;;  %1701 = vmatpush.msra.mxu2 %v1336_v56  ;;  %v1388_v1 = vld [vmem:[#allocation14 + $0x718] sm:$0xff]  ;;  %v1013_v51 = vld [vmem:[#allocation13 + $0x360] sm:$0xff] }
 0x141   :  { %1718 = vmatpush.msra.mxu3 %v1412_v59  ;;  %1664 = vmatpush.msra.mxu0 %v1196_v60  ;;  %v1172_v21 = vld [vmem:[#allocation14 + $0x58] sm:$0xff]  ;;  %v1085_v52 = vld [vmem:[#allocation13 + $0x5a0] sm:$0xff] }
 0x142   :  { %1684 = vmatpush.msra.mxu1 %v1260_v61  ;;  %1702 = vmatpush.msra.mxu2 %v1332_v62  ;;  %v1236_v22 = vld [vmem:[#allocation14 + $0x258] sm:$0xff]  ;;  %v945_v56 = vld [vmem:[#allocation13 + $0x140] sm:$0xff] }
 0x143   :  { %1719 = vmatpush.msra.mxu3 %v1408_v63  ;;  %1665 = vmatpush.msra.mxu0 %v1192_v2  ;;  %v1308_v54 = vld [vmem:[#allocation14 + $0x498] sm:$0xff]  ;;  %v1081_v59 = vld [vmem:[#allocation13 + $0x580] sm:$0xff] }
 0x144   :  { %1685 = vmatpush.msra.mxu1 %v1256_v3  ;;  %1703 = vmatpush.msra.mxu2 %v1328_v4  ;;  %v1384_v23 = vld [vmem:[#allocation14 + $0x6f8] sm:$0xff]  ;;  %v1157_v60 = vld [vmem:[#allocation13 + $0x7e0] sm:$0xff] }
 0x145   :  { %1720 = vmatpush.msra.mxu3 %v1404_v5  ;;  %1666 = vmatpush.msra.mxu0 %v1188_v6  ;;  %v1168_v26 = vld [vmem:[#allocation14 + $0x38] sm:$0xff]  ;;  %v941_v61 = vld [vmem:[#allocation13 + $0x120] sm:$0xff] }
 0x146   :  { %1686 = vmatpush.msra.mxu1 %v1252_v7  ;;  %1704 = vmatpush.msra.mxu2 %v1324_v8  ;;  %v1232_v27 = vld [vmem:[#allocation14 + $0x238] sm:$0xff]  ;;  %v1005_v62 = vld [vmem:[#allocation13 + $0x320] sm:$0xff] }
 0x147   :  { %1721 = vmatpush.msra.mxu3 %v1400_v9  ;;  %1667 = vmatpush.msra.mxu0 %v1184_v10  ;;  %v1304_v30 = vld [vmem:[#allocation14 + $0x478] sm:$0xff]  ;;  %v1077_v63 = vld [vmem:[#allocation13 + $0x560] sm:$0xff] }
 0x148   :  { %1687 = vmatpush.msra.mxu1 %v1248_v11  ;;  %1705 = vmatpush.msra.mxu2 %v1320_v12  ;;  %v1380_v31 = vld [vmem:[#allocation14 + $0x6d8] sm:$0xff]  ;;  %v1153_v2 = vld [vmem:[#allocation13 + $0x7c0] sm:$0xff] }
 0x149   :  { %1722 = vmatpush.msra.mxu3 %v1396_v13  ;;  %1668 = vmatpush.msra.mxu0 %v1180_v14  ;;  %v1164_v58 = vld [vmem:[#allocation14 + $0x18] sm:$0xff]  ;;  %v937_v3 = vld [vmem:[#allocation13 + $0x100] sm:$0xff] }
 0x14a   :  { %1688 = vmatpush.msra.mxu1 %v1244_v15  ;;  %1706 = vmatpush.msra.mxu2 %v1316_v16  ;;  %v1228_v32 = vld [vmem:[#allocation14 + $0x218] sm:$0xff]  ;;  %v1001_v4 = vld [vmem:[#allocation13 + $0x300] sm:$0xff] }
 0x14b   :  { %1723 = vmatpush.msra.mxu3 %v1392_v17  ;;  %1669 = vmatpush.msra.mxu0 %v1176_v18  ;;  %v1300_v33 = vld [vmem:[#allocation14 + $0x458] sm:$0xff]  ;;  %v1073_v5 = vld [vmem:[#allocation13 + $0x540] sm:$0xff] }
 0x14c   :  { %1689 = vmatpush.msra.mxu1 %v1240_v19  ;;  %1707 = vmatpush.msra.mxu2 %v1312_v20  ;;  %v1376_v34 = vld [vmem:[#allocation14 + $0x6b8] sm:$0xff]  ;;  %v1149_v6 = vld [vmem:[#allocation13 + $0x7a0] sm:$0xff] }
 0x14d   :  { %1724 = vmatpush.msra.mxu3 %v1388_v1  ;;  %1670 = vmatpush.msra.mxu0 %v1172_v21  ;;  %v1296_v38 = vld [vmem:[#allocation14 + $0x438] sm:$0xff]  ;;  %v933_v7 = vld [vmem:[#allocation13 + $0xe0] sm:$0xff] }
 0x14e   :  { %1690 = vmatpush.msra.mxu1 %v1236_v22  ;;  %1708 = vmatpush.msra.mxu2 %v1308_v54  ;;  %v1372_v39 = vld [vmem:[#allocation14 + $0x698] sm:$0xff]  ;;  %v997_v8 = vld [vmem:[#allocation13 + $0x2e0] sm:$0xff] }
 0x14f   :  { %1725 = vmatpush.msra.mxu3 %v1384_v23  ;;  %1671 = vmatpush.msra.mxu0 %v1168_v26  ;;  %v1292_v42 = vld [vmem:[#allocation14 + $0x418] sm:$0xff]  ;;  %v1069_v9 = vld [vmem:[#allocation13 + $0x520] sm:$0xff] }
 0x150   :  { %1691 = vmatpush.msra.mxu1 %v1232_v27  ;;  %1709 = vmatpush.msra.mxu2 %v1304_v30  ;;  %v1368_v43 = vld [vmem:[#allocation14 + $0x678] sm:$0xff]  ;;  %v929_v10 = vld [vmem:[#allocation13 + $0xc0] sm:$0xff] }
 0x151   :  { %1726 = vmatpush.msra.mxu3 %v1380_v31  ;;  %1672 = vmatpush.msra.mxu0 %v1164_v58  ;;  %v1364_v47 = vld [vmem:[#allocation14 + $0x658] sm:$0xff]  ;;  %v993_v11 = vld [vmem:[#allocation13 + $0x2c0] sm:$0xff] }
 0x152   :  { %1692 = vmatpush.msra.mxu1 %v1228_v32  ;;  %1710 = vmatpush.msra.mxu2 %v1300_v33  ;;  %v1360_v49 = vld [vmem:[#allocation14 + $0x638] sm:$0xff]  ;;  %v1065_v12 = vld [vmem:[#allocation13 + $0x500] sm:$0xff] }
 0x153   :  { %1727 = vmatpush.msra.mxu3 %v1376_v34  ;;  %1673 = vmatmul.f32.vlgmr.msra.gmra.mxu0 %v3095_v53  ;;  %v953_v53 = vld [vmem:[#allocation13 + $0x180] sm:$0xff]  ;;  %v1356_v55 = vld [vmem:[#allocation14 + $0x618] sm:$0xff] }
 0x154   :  { %1693 = vmatmul.f32.vlgmr.msra.gmra.mxu1 %v3097_v57  ;;  %1737 = vmatpush.msrb.mxu0 %v965_v35  ;;  %v1089_v57 = vld [vmem:[#allocation13 + $0x5c0] sm:$0xff] }
 0x155   :  { %1757 = vmatpush.msrb.mxu1 %v1029_v36  ;;  %1711 = vmatpush.msra.mxu2 %v1296_v38  ;;  %v1141_v13 = vld [vmem:[#allocation13 + $0x760] sm:$0xff] }
 0x156   :  { %1728 = vmatpush.msra.mxu3 %v1372_v39  ;;  %1738 = vmatpush.msrb.mxu0 %v961_v40  ;;  %v925_v14 = vld [vmem:[#allocation13 + $0xa0] sm:$0xff]  ;;  %v3119_v39 = vpop.f32.mrf.mxu0 }
 0x157   :  { %1758 = vmatpush.msrb.mxu1 %v1025_v41  ;;  %1712 = vmatpush.msra.mxu2 %v1292_v42  ;;  %v989_v15 = vld [vmem:[#allocation13 + $0x2a0] sm:$0xff]  ;;  %v3121_v41 = vpop.f32.mrf.mxu1  ;;  %v966_v42 = vld [vmem:[#allocation13 + $0x1e8] sm:$0xff] }
 0x158   :  { %1729 = vmatpush.msra.mxu3 %v1368_v43  ;;  %1713 = vmatmul.f32.vlgmr.msra.gmra.mxu2 %v3103_v0  ;;  %v1009_v0 = vld [vmem:[#allocation13 + $0x340] sm:$0xff]  ;;  %v1030_v43 = vld [vmem:[#allocation13 + $0x3e8] sm:$0xff] }
 0x159   :  { %1739 = vmatpush.msrb.mxu0 %v957_v44  ;;  %1759 = vmatpush.msrb.mxu1 %v1021_v45  ;;  %v1061_v16 = vld [vmem:[#allocation13 + $0x4e0] sm:$0xff] }
 0x15a   :  { %1777 = vmatpush.msrb.mxu2 %v1093_v46  ;;  %1730 = vmatpush.msra.mxu3 %v1364_v47  ;;  %v1137_v17 = vld [vmem:[#allocation13 + $0x740] sm:$0xff]  ;;  %v962_v46 = vld [vmem:[#allocation13 + $0x1c8] sm:$0xff] }
 0x15b   :  { %1740 = vmatpush.msrb.mxu0 %v953_v53  ;;  %1760 = vmatpush.msrb.mxu1 %v1017_v48  ;;  %v921_v18 = vld [vmem:[#allocation13 + $0x80] sm:$0xff]  ;;  %v1026_v47 = vld [vmem:[#allocation13 + $0x3c8] sm:$0xff] }
 0x15c   :  { %1778 = vmatpush.msrb.mxu2 %v1089_v57  ;;  %1731 = vmatpush.msra.mxu3 %v1360_v49  ;;  %v985_v19 = vld [vmem:[#allocation13 + $0x280] sm:$0xff]  ;;  %v958_v57 = vld [vmem:[#allocation13 + $0x1a8] sm:$0xff] }
 0x15d   :  { %1741 = vmatpush.msrb.mxu0 %v949_v50  ;;  %1761 = vmatpush.msrb.mxu1 %v1013_v51  ;;  %v1057_v20 = vld [vmem:[#allocation13 + $0x4c0] sm:$0xff]  ;;  %v1022_v49 = vld [vmem:[#allocation13 + $0x3a8] sm:$0xff] }
 0x15e   :  { %1779 = vmatpush.msrb.mxu2 %v1085_v52  ;;  %1732 = vmatpush.msra.mxu3 %v1356_v55  ;;  %v1133_v1 = vld [vmem:[#allocation13 + $0x720] sm:$0xff]  ;;  %v1094_v50 = vld [vmem:[#allocation13 + $0x5e8] sm:$0xff] }
 0x15f   :  { %1733 = vmatmul.f32.vlgmr.msra.gmra.mxu3 %v3106_v37  ;;  %1742 = vmatpush.msrb.mxu0 %v945_v56  ;;  %v1145_v37 = vld [vmem:[#allocation13 + $0x780] sm:$0xff]  ;;  %v954_v52 = vld [vmem:[#allocation13 + $0x188] sm:$0xff] }
 0x160   :  { %1762 = vmatpush.msrb.mxu1 %v1009_v0  ;;  %1780 = vmatpush.msrb.mxu2 %v1081_v59  ;;  %v917_v21 = vld [vmem:[#allocation13 + $0x60] sm:$0xff]  ;;  %v1018_v55 = vld [vmem:[#allocation13 + $0x388] sm:$0xff] }
 0x161   :  { %1797 = vmatpush.msrb.mxu3 %v1157_v60  ;;  %1743 = vmatpush.msrb.mxu0 %v941_v61  ;;  %v981_v22 = vld [vmem:[#allocation13 + $0x260] sm:$0xff]  ;;  %v1090_v0 = vld [vmem:[#allocation13 + $0x5c8] sm:$0xff] }
 0x162   :  { %1763 = vmatpush.msrb.mxu1 %v1005_v62  ;;  %1781 = vmatpush.msrb.mxu2 %v1077_v63  ;;  %v1053_v54 = vld [vmem:[#allocation13 + $0x4a0] sm:$0xff]  ;;  %v950_v61 = vld [vmem:[#allocation13 + $0x168] sm:$0xff] }
 0x163   :  { %1798 = vmatpush.msrb.mxu3 %v1153_v2  ;;  %1744 = vmatpush.msrb.mxu0 %v937_v3  ;;  %v1129_v23 = vld [vmem:[#allocation13 + $0x700] sm:$0xff]  ;;  %v1014_v62 = vld [vmem:[#allocation13 + $0x368] sm:$0xff] }
 0x164   :  { %1764 = vmatpush.msrb.mxu1 %v1001_v4  ;;  %1782 = vmatpush.msrb.mxu2 %v1073_v5  ;;  %v913_v26 = vld [vmem:[#allocation13 + $0x40] sm:$0xff]  ;;  %v1086_v63 = vld [vmem:[#allocation13 + $0x5a8] sm:$0xff] }
 0x165   :  { %1799 = vmatpush.msrb.mxu3 %v1149_v6  ;;  %1745 = vmatpush.msrb.mxu0 %v933_v7  ;;  %v977_v27 = vld [vmem:[#allocation13 + $0x240] sm:$0xff]  ;;  %v946_v3 = vld [vmem:[#allocation13 + $0x148] sm:$0xff] }
 0x166   :  { %1765 = vmatpush.msrb.mxu1 %v997_v8  ;;  %1783 = vmatpush.msrb.mxu2 %v1069_v9  ;;  %v1049_v30 = vld [vmem:[#allocation13 + $0x480] sm:$0xff]  ;;  %v1010_v4 = vld [vmem:[#allocation13 + $0x348] sm:$0xff] }
 0x167   :  { %1800 = vmatpush.msrb.mxu3 %v1145_v37  ;;  %1746 = vmatpush.msrb.mxu0 %v929_v10  ;;  %v1125_v31 = vld [vmem:[#allocation13 + $0x6e0] sm:$0xff]  ;;  %v3126_v56 = vpop.f32.mrf.mxu0  ;;  %v1082_v5 = vld [vmem:[#allocation13 + $0x588] sm:$0xff] }
 0x168   :  { %1766 = vmatpush.msrb.mxu1 %v993_v11  ;;  %1784 = vmatpush.msrb.mxu2 %v1065_v12  ;;  %v909_v58 = vld [vmem:[#allocation13 + $0x20] sm:$0xff]  ;;  %v1158_v6 = vld [vmem:[#allocation13 + $0x7e8] sm:$0xff] }
 0x169   :  { %1801 = vmatpush.msrb.mxu3 %v1141_v13  ;;  %1747 = vmatpush.msrb.mxu0 %v925_v14  ;;  %v973_v32 = vld [vmem:[#allocation13 + $0x220] sm:$0xff]  ;;  %v3128_v60 = vpop.f32.mrf.mxu1  ;;  %v942_v7 = vld [vmem:[#allocation13 + $0x128] sm:$0xff] }
 0x16a   :  { %1767 = vmatpush.msrb.mxu1 %v989_v15  ;;  %1785 = vmatpush.msrb.mxu2 %v1061_v16  ;;  %v1045_v33 = vld [vmem:[#allocation13 + $0x460] sm:$0xff]  ;;  %v1006_v8 = vld [vmem:[#allocation13 + $0x328] sm:$0xff] }
 0x16b   :  { %1802 = vmatpush.msrb.mxu3 %v1137_v17  ;;  %1748 = vmatpush.msrb.mxu0 %v921_v18  ;;  %v1121_v34 = vld [vmem:[#allocation13 + $0x6c0] sm:$0xff]  ;;  %v1078_v9 = vld [vmem:[#allocation13 + $0x568] sm:$0xff] }
 0x16c   :  { %1768 = vmatpush.msrb.mxu1 %v985_v19  ;;  %1786 = vmatpush.msrb.mxu2 %v1057_v20  ;;  %v905_v35 = vld [vmem:[#allocation13] sm:$0xff]  ;;  %v1154_v37 = vld [vmem:[#allocation13 + $0x7c8] sm:$0xff]  ;;  %v3133_v20 = vpop.f32.mrf.mxu2 }
 0x16d   :  { %1803 = vmatpush.msrb.mxu3 %v1133_v1  ;;  %1749 = vmatpush.msrb.mxu0 %v917_v21  ;;  %v969_v36 = vld [vmem:[#allocation13 + $0x200] sm:$0xff]  ;;  %v938_v10 = vld [vmem:[#allocation13 + $0x108] sm:$0xff] }
 0x16e   :  { %1769 = vmatpush.msrb.mxu1 %v981_v22  ;;  %1787 = vmatpush.msrb.mxu2 %v1053_v54  ;;  %v1041_v38 = vld [vmem:[#allocation13 + $0x440] sm:$0xff]  ;;  %v1002_v12 = vld [vmem:[#allocation13 + $0x308] sm:$0xff] }
 0x16f   :  { %1804 = vmatpush.msrb.mxu3 %v1129_v23  ;;  %1750 = vmatpush.msrb.mxu0 %v913_v26  ;;  %v1117_v40 = vld [vmem:[#allocation13 + $0x6a0] sm:$0xff]  ;;  %v1074_v13 = vld [vmem:[#allocation13 + $0x548] sm:$0xff] }
 0x170   :  { %1770 = vmatpush.msrb.mxu1 %v977_v27  ;;  %1788 = vmatpush.msrb.mxu2 %v1049_v30  ;;  %v1037_v44 = vld [vmem:[#allocation13 + $0x420] sm:$0xff]  ;;  %v1150_v15 = vld [vmem:[#allocation13 + $0x7a8] sm:$0xff] }
 0x171   :  { %1805 = vmatpush.msrb.mxu3 %v1125_v31  ;;  %1751 = vmatpush.msrb.mxu0 %v909_v58  ;;  %v1113_v45 = vld [vmem:[#allocation13 + $0x680] sm:$0xff]  ;;  %v934_v16 = vld [vmem:[#allocation13 + $0xe8] sm:$0xff] }
 0x172   :  { %1771 = vmatpush.msrb.mxu1 %v973_v32  ;;  %1789 = vmatpush.msrb.mxu2 %v1045_v33  ;;  %v1033_v53 = vld [vmem:[#allocation13 + $0x400] sm:$0xff]  ;;  %v998_v18 = vld [vmem:[#allocation13 + $0x2e8] sm:$0xff] }
 0x173   :  { %1806 = vmatpush.msrb.mxu3 %v1121_v34  ;;  %1752 = vmatpush.msrb.mxu0 %v905_v35  ;;  %v1109_v48 = vld [vmem:[#allocation13 + $0x660] sm:$0xff]  ;;  %v1070_v19 = vld [vmem:[#allocation13 + $0x528] sm:$0xff] }
 0x174   :  { %1772 = vmatpush.msrb.mxu1 %v969_v36  ;;  %1790 = vmatpush.msrb.mxu2 %v1041_v38  ;;  %v1105_v51 = vld [vmem:[#allocation13 + $0x640] sm:$0xff]  ;;  %v1146_v1 = vld [vmem:[#allocation13 + $0x788] sm:$0xff] }
 0x175   :  { %1807 = vmatpush.msrb.mxu3 %v1117_v40  ;;  %1753 = vmatmul.f32.vlgmr.msrb.gmra.mxu0 %v3087_v24  ;;  %v1101_v59 = vld [vmem:[#allocation13 + $0x620] sm:$0xff]  ;;  %v930_v21 = vld [vmem:[#allocation13 + $0xc8] sm:$0xff]  ;;  %v3135_v40 = vpop.f32.mrf.mxu3 }
 0x176   :  { %1773 = vmatmul.f32.vlgmr.msrb.gmra.mxu1 %v3089_v25  ;;  %1817 = vmatpush.msra.mxu0 %v966_v42  ;;  %v1097_v2 = vld [vmem:[#allocation13 + $0x600] sm:$0xff]  ;;  %v994_v22 = vld [vmem:[#allocation13 + $0x2c8] sm:$0xff] }
 0x177   :  { %1837 = vmatpush.msra.mxu1 %v1030_v43  ;;  %1791 = vmatpush.msrb.mxu2 %v1037_v44  ;;  %v1066_v54 = vld [vmem:[#allocation13 + $0x508] sm:$0xff] }
 0x178   :  { %1808 = vmatpush.msrb.mxu3 %v1113_v45  ;;  %1818 = vmatpush.msra.mxu0 %v962_v46  ;;  %v1142_v23 = vld [vmem:[#allocation13 + $0x768] sm:$0xff]  ;;  %v3139_v45 = vpop.f32.mrf.mxu2 }
 0x179   :  { %1838 = vmatpush.msra.mxu1 %v1026_v47  ;;  %1792 = vmatpush.msrb.mxu2 %v1033_v53  ;;  %v926_v26 = vld [vmem:[#allocation13 + $0xa8] sm:$0xff] }
 0x17a   :  { %1809 = vmatpush.msrb.mxu3 %v1109_v48  ;;  %1793 = vmatmul.f32.vlgmr.msrb.gmra.mxu2 %v3091_v28  ;;  %v990_v27 = vld [vmem:[#allocation13 + $0x2a8] sm:$0xff] }
 0x17b   :  { %1819 = vmatpush.msra.mxu0 %v958_v57  ;;  %1839 = vmatpush.msra.mxu1 %v1022_v49  ;;  %v1062_v30 = vld [vmem:[#allocation13 + $0x4e8] sm:$0xff] }
 0x17c   :  { %1857 = vmatpush.msra.mxu2 %v1094_v50  ;;  %1810 = vmatpush.msrb.mxu3 %v1105_v51  ;;  %v1138_v31 = vld [vmem:[#allocation13 + $0x748] sm:$0xff] }
 0x17d   :  { %1820 = vmatpush.msra.mxu0 %v954_v52  ;;  %1840 = vmatpush.msra.mxu1 %v1018_v55  ;;  %v922_v58 = vld [vmem:[#allocation13 + $0x88] sm:$0xff] }
 0x17e   :  { %1858 = vmatpush.msra.mxu2 %v1090_v0  ;;  %1811 = vmatpush.msrb.mxu3 %v1101_v59  ;;  %v986_v32 = vld [vmem:[#allocation13 + $0x288] sm:$0xff] }
 0x17f   :  { %1821 = vmatpush.msra.mxu0 %v950_v61  ;;  %1841 = vmatpush.msra.mxu1 %v1014_v62  ;;  %v1058_v33 = vld [vmem:[#allocation13 + $0x4c8] sm:$0xff]  ;;  %v3141_v62 = vpop.f32.mrf.mxu3 }
 0x180   :  { %1859 = vmatpush.msra.mxu2 %v1086_v63  ;;  %1812 = vmatpush.msrb.mxu3 %v1097_v2  ;;  %v1134_v35 = vld [vmem:[#allocation13 + $0x728] sm:$0xff]  ;;  %v967_v63 = vld [vmem:[#allocation13 + $0x1f0] sm:$0xff] }
 0x181   :  { %1813 = vmatmul.f32.vlgmr.msrb.gmra.mxu3 %v3093_v29  ;;  %1822 = vmatpush.msra.mxu0 %v946_v3  ;;  %v918_v36 = vld [vmem:[#allocation13 + $0x68] sm:$0xff]  ;;  %v1031_v2 = vld [vmem:[#allocation13 + $0x3f0] sm:$0xff] }
 0x182   :  { %1842 = vmatpush.msra.mxu1 %v1010_v4  ;;  %1860 = vmatpush.msra.mxu2 %v1082_v5  ;;  %v1434_v11 = vpop.f32.mrf.mxu0  ;;  %v982_v42 = vld [vmem:[#allocation13 + $0x268] sm:$0xff] }
 0x183   :  { %1877 = vmatpush.msra.mxu3 %v1158_v6  ;;  %1823 = vmatpush.msra.mxu0 %v942_v7  ;;  %v1454_v14 = vpop.f32.mrf.mxu1  ;;  %v1054_v43 = vld [vmem:[#allocation13 + $0x4a8] sm:$0xff]  ;;  %v963_v6 = vld [vmem:[#allocation13 + $0x1d0] sm:$0xff] }
 0x184   :  { %1843 = vmatpush.msra.mxu1 %v1006_v8  ;;  %1861 = vmatpush.msra.mxu2 %v1078_v9  ;;  %v3131_v17 = vadd.f32 %v1454_v14, %v1434_v11  ;;  %v1130_v46 = vld [vmem:[#allocation13 + $0x708] sm:$0xff]  ;;  %v1027_v8 = vld [vmem:[#allocation13 + $0x3d0] sm:$0xff] }
 0x185   :  { %1878 = vmatpush.msra.mxu3 %v1154_v37  ;;  %1824 = vmatpush.msra.mxu0 %v938_v10  ;;  %v914_v47 = vld [vmem:[#allocation13 + $0x48] sm:$0xff]  ;;  %v959_v10 = vld [vmem:[#allocation13 + $0x1b0] sm:$0xff] }
 0x186   :  { %1844 = vmatpush.msra.mxu1 %v1002_v12  ;;  %1862 = vmatpush.msra.mxu2 %v1074_v13  ;;  %v978_v53 = vld [vmem:[#allocation13 + $0x248] sm:$0xff]  ;;  %v1023_v11 = vld [vmem:[#allocation13 + $0x3b0] sm:$0xff] }
 0x187   :  { %1879 = vmatpush.msra.mxu3 %v1150_v15  ;;  %1825 = vmatpush.msra.mxu0 %v934_v16  ;;  %v1050_v48 = vld [vmem:[#allocation13 + $0x488] sm:$0xff]  ;;  %v1095_v12 = vld [vmem:[#allocation13 + $0x5f0] sm:$0xff] }
 0x188   :  { %1845 = vmatpush.msra.mxu1 %v998_v18  ;;  %1863 = vmatpush.msra.mxu2 %v1070_v19  ;;  %v1126_v57 = vld [vmem:[#allocation13 + $0x6e8] sm:$0xff]  ;;  %v955_v14 = vld [vmem:[#allocation13 + $0x190] sm:$0xff] }
 0x189   :  { %1880 = vmatpush.msra.mxu3 %v1146_v1  ;;  %1826 = vmatpush.msra.mxu0 %v930_v21  ;;  %v910_v49 = vld [vmem:[#allocation13 + $0x28] sm:$0xff]  ;;  %v1019_v15 = vld [vmem:[#allocation13 + $0x390] sm:$0xff] }
 0x18a   :  { %1846 = vmatpush.msra.mxu1 %v994_v22  ;;  %1864 = vmatpush.msra.mxu2 %v1066_v54  ;;  %v974_v50 = vld [vmem:[#allocation13 + $0x228] sm:$0xff]  ;;  %v1091_v16 = vld [vmem:[#allocation13 + $0x5d0] sm:$0xff] }
 0x18b   :  { %1881 = vmatpush.msra.mxu3 %v1142_v23  ;;  %1827 = vmatpush.msra.mxu0 %v926_v26  ;;  %v1514_v34 = vpop.f32.mrf.mxu0  ;;  %v1046_v51 = vld [vmem:[#allocation13 + $0x468] sm:$0xff]  ;;  %v951_v19 = vld [vmem:[#allocation13 + $0x170] sm:$0xff] }
 0x18c   :  { %1847 = vmatpush.msra.mxu1 %v990_v27  ;;  %1865 = vmatpush.msra.mxu2 %v1062_v30  ;;  %v1534_v38 = vpop.f32.mrf.mxu1  ;;  %v1122_v52 = vld [vmem:[#allocation13 + $0x6c8] sm:$0xff]  ;;  %v1015_v1 = vld [vmem:[#allocation13 + $0x370] sm:$0xff] }
 0x18d   :  { %1882 = vmatpush.msra.mxu3 %v1138_v31  ;;  %1828 = vmatpush.msra.mxu0 %v922_v58  ;;  %v3137_v44 = vadd.f32 %v1534_v38, %v1514_v34  ;;  %v906_v55 = vld [vmem:[#allocation13 + $0x8] sm:$0xff]  ;;  %v1087_v22 = vld [vmem:[#allocation13 + $0x5b0] sm:$0xff] }
 0x18e   :  { %1848 = vmatpush.msra.mxu1 %v986_v32  ;;  %1866 = vmatpush.msra.mxu2 %v1058_v33  ;;  %v970_v0 = vld [vmem:[#allocation13 + $0x208] sm:$0xff]  ;;  %v947_v26 = vld [vmem:[#allocation13 + $0x150] sm:$0xff] }
 0x18f   :  { %1883 = vmatpush.msra.mxu3 %v1134_v35  ;;  %1829 = vmatpush.msra.mxu0 %v918_v36  ;;  %v1042_v59 = vld [vmem:[#allocation13 + $0x448] sm:$0xff]  ;;  %v1011_v30 = vld [vmem:[#allocation13 + $0x350] sm:$0xff] }
 0x190   :  { %1849 = vmatpush.msra.mxu1 %v982_v42  ;;  %1867 = vmatpush.msra.mxu2 %v1054_v43  ;;  %v1118_v61 = vld [vmem:[#allocation13 + $0x6a8] sm:$0xff]  ;;  %v1083_v31 = vld [vmem:[#allocation13 + $0x590] sm:$0xff] }
 0x191   :  { %1884 = vmatpush.msra.mxu3 %v1130_v46  ;;  %1830 = vmatpush.msra.mxu0 %v914_v47  ;;  %v1038_v3 = vld [vmem:[#allocation13 + $0x428] sm:$0xff]  ;;  %v1159_v58 = vld [vmem:[#allocation13 + $0x7f0] sm:$0xff] }
 0x192   :  { %1850 = vmatpush.msra.mxu1 %v978_v53  ;;  %1868 = vmatpush.msra.mxu2 %v1050_v48  ;;  %v1114_v5 = vld [vmem:[#allocation13 + $0x688] sm:$0xff]  ;;  %v943_v32 = vld [vmem:[#allocation13 + $0x130] sm:$0xff] }
 0x193   :  { %1885 = vmatpush.msra.mxu3 %v1126_v57  ;;  %1831 = vmatpush.msra.mxu0 %v910_v49  ;;  %v1034_v9 = vld [vmem:[#allocation13 + $0x408] sm:$0xff]  ;;  %v1007_v33 = vld [vmem:[#allocation13 + $0x330] sm:$0xff] }
 0x194   :  { %1851 = vmatpush.msra.mxu1 %v974_v50  ;;  %1869 = vmatpush.msra.mxu2 %v1046_v51  ;;  %v1110_v37 = vld [vmem:[#allocation13 + $0x668] sm:$0xff]  ;;  %v1079_v34 = vld [vmem:[#allocation13 + $0x570] sm:$0xff] }
 0x195   :  { %1886 = vmatpush.msra.mxu3 %v1122_v52  ;;  %1832 = vmatpush.msra.mxu0 %v906_v55  ;;  %v1106_v13 = vld [vmem:[#allocation13 + $0x648] sm:$0xff]  ;;  %v1155_v35 = vld [vmem:[#allocation13 + $0x7d0] sm:$0xff] }
 0x196   :  { %1852 = vmatpush.msra.mxu1 %v970_v0  ;;  %1870 = vmatpush.msra.mxu2 %v1042_v59  ;;  %v1474_v4 = vpop.f32.mrf.mxu2  ;;  %v1098_v54 = vld [vmem:[#allocation13 + $0x608] sm:$0xff]  ;;  %v939_v36 = vld [vmem:[#allocation13 + $0x110] sm:$0xff] }
 0x197   :  { %1887 = vmatpush.msra.mxu3 %v1118_v61  ;;  %1833 = vmatmul.f32.vlgmr.msra.gmra.mxu0 %v3087_v24  ;;  %v1475_v7 = vadd.f32 %v1474_v4, %v3131_v17  ;;  %v1102_v17 = vld [vmem:[#allocation13 + $0x628] sm:$0xff]  ;;  %v1003_v38 = vld [vmem:[#allocation13 + $0x310] sm:$0xff] }
 0x198   :  { %1853 = vmatmul.f32.vlgmr.msra.gmra.mxu1 %v3089_v25  ;;  %1897 = vmatpush.msrb.mxu0 %v967_v63  ;;  %v1075_v42 = vld [vmem:[#allocation13 + $0x550] sm:$0xff] }
 0x199   :  { %1917 = vmatpush.msrb.mxu1 %v1031_v2  ;;  %1871 = vmatpush.msra.mxu2 %v1038_v3  ;;  %v1151_v43 = vld [vmem:[#allocation13 + $0x7b0] sm:$0xff] }
 0x19a   :  { %1888 = vmatpush.msra.mxu3 %v1114_v5  ;;  %1898 = vmatpush.msrb.mxu0 %v963_v6  ;;  %v999_v47 = vld [vmem:[#allocation13 + $0x2f0] sm:$0xff] }
 0x19b   :  { %1918 = vmatpush.msrb.mxu1 %v1027_v8  ;;  %1872 = vmatpush.msra.mxu2 %v1034_v9  ;;  %v1071_v53 = vld [vmem:[#allocation13 + $0x530] sm:$0xff] }
 0x19c   :  { %1889 = vmatpush.msra.mxu3 %v1110_v37  ;;  %1873 = vmatmul.f32.vlgmr.msra.gmra.mxu2 %v3091_v28  ;;  %v1147_v57 = vld [vmem:[#allocation13 + $0x790] sm:$0xff] }
 0x19d   :  { %1899 = vmatpush.msrb.mxu0 %v959_v10  ;;  %1919 = vmatpush.msrb.mxu1 %v1023_v11  ;;  %v1494_v18 = vpop.f32.mrf.mxu3  ;;  %v931_v49 = vld [vmem:[#allocation13 + $0xd0] sm:$0xff] }
 0x19e   :  { %1937 = vmatpush.msrb.mxu2 %v1095_v12  ;;  %1890 = vmatpush.msra.mxu3 %v1106_v13  ;;  %v3147_v21 = vadd.f32 %v1494_v18, %v1475_v7  ;;  %v995_v50 = vld [vmem:[#allocation13 + $0x2d0] sm:$0xff] }
 0x19f   :  { %1900 = vmatpush.msrb.mxu0 %v955_v14  ;;  %1920 = vmatpush.msrb.mxu1 %v1019_v15  ;;  %v1554_v23 = vpop.f32.mrf.mxu2  ;;  %v1067_v51 = vld [vmem:[#allocation13 + $0x510] sm:$0xff] }
 0x1a0   :  { %1938 = vmatpush.msrb.mxu2 %v1091_v16  ;;  %1891 = vmatpush.msra.mxu3 %v1102_v17  ;;  %v1555_v27 = vadd.f32 %v1554_v23, %v3137_v44  ;;  %v935_v44 = vld [vmem:[#allocation13 + $0xf0] sm:$0xff]  ;;  %v968_v23 = vld [vmem:[#allocation13 + $0x1f8] sm:$0xff] }
 0x1a1   :  { %1901 = vmatpush.msrb.mxu0 %v951_v19  ;;  %1921 = vmatpush.msrb.mxu1 %v1015_v1  ;;  %v1143_v52 = vld [vmem:[#allocation13 + $0x770] sm:$0xff] }
 0x1a2   :  { %1939 = vmatpush.msrb.mxu2 %v1087_v22  ;;  %1892 = vmatpush.msra.mxu3 %v1098_v54  ;;  %v927_v55 = vld [vmem:[#allocation13 + $0xb0] sm:$0xff] }
 0x1a3   :  { %1893 = vmatmul.f32.vlgmr.msra.gmra.mxu3 %v3093_v29  ;;  %1902 = vmatpush.msrb.mxu0 %v947_v26  ;;  %v991_v0 = vld [vmem:[#allocation13 + $0x2b0] sm:$0xff]  ;;  %v1032_v26 = vld [vmem:[#allocation13 + $0x3f8] sm:$0xff] }
 0x1a4   :  { %1922 = vmatpush.msrb.mxu1 %v1011_v30  ;;  %1940 = vmatpush.msrb.mxu2 %v1083_v31  ;;  %v1063_v59 = vld [vmem:[#allocation13 + $0x4f0] sm:$0xff]  ;;  %v964_v31 = vld [vmem:[#allocation13 + $0x1d8] sm:$0xff] }
 0x1a5   :  { %1957 = vmatpush.msrb.mxu3 %v1159_v58  ;;  %1903 = vmatpush.msrb.mxu0 %v943_v32  ;;  %v1139_v61 = vld [vmem:[#allocation13 + $0x750] sm:$0xff]  ;;  %v1028_v32 = vld [vmem:[#allocation13 + $0x3d8] sm:$0xff] }
 0x1a6   :  { %1923 = vmatpush.msrb.mxu1 %v1007_v33  ;;  %1941 = vmatpush.msrb.mxu2 %v1079_v34  ;;  %v1574_v46 = vpop.f32.mrf.mxu3  ;;  %v923_v63 = vld [vmem:[#allocation13 + $0x90] sm:$0xff] }
 0x1a7   :  { %1958 = vmatpush.msrb.mxu3 %v1155_v35  ;;  %1904 = vmatpush.msrb.mxu0 %v939_v36  ;;  %v3151_v48 = vadd.f32 %v1574_v46, %v1555_v27  ;;  %v987_v2 = vld [vmem:[#allocation13 + $0x290] sm:$0xff]  ;;  %v960_v36 = vld [vmem:[#allocation13 + $0x1b8] sm:$0xff] }
 0x1a8   :  { %1924 = vmatpush.msrb.mxu1 %v1003_v38  ;;  %1942 = vmatpush.msrb.mxu2 %v1075_v42  ;;  %v1059_v3 = vld [vmem:[#allocation13 + $0x4d0] sm:$0xff]  ;;  %v1024_v38 = vld [vmem:[#allocation13 + $0x3b8] sm:$0xff] }
 0x1a9   :  { %1959 = vmatpush.msrb.mxu3 %v1151_v43  ;;  %1905 = vmatpush.msrb.mxu0 %v935_v44  ;;  %v1135_v4 = vld [vmem:[#allocation13 + $0x730] sm:$0xff]  ;;  %v1096_v42 = vld [vmem:[#allocation13 + $0x5f8] sm:$0xff] }
 0x1aa   :  { %1925 = vmatpush.msrb.mxu1 %v999_v47  ;;  %1943 = vmatpush.msrb.mxu2 %v1071_v53  ;;  %v919_v5 = vld [vmem:[#allocation13 + $0x70] sm:$0xff]  ;;  %v956_v44 = vld [vmem:[#allocation13 + $0x198] sm:$0xff] }
 0x1ab   :  { %1960 = vmatpush.msrb.mxu3 %v1147_v57  ;;  %1906 = vmatpush.msrb.mxu0 %v931_v49  ;;  %v983_v7 = vld [vmem:[#allocation13 + $0x270] sm:$0xff]  ;;  %v1020_v46 = vld [vmem:[#allocation13 + $0x398] sm:$0xff] }
 0x1ac   :  { %1926 = vmatpush.msrb.mxu1 %v995_v50  ;;  %1944 = vmatpush.msrb.mxu2 %v1067_v51  ;;  %v1055_v8 = vld [vmem:[#allocation13 + $0x4b0] sm:$0xff]  ;;  %v1092_v47 = vld [vmem:[#allocation13 + $0x5d8] sm:$0xff] }
 0x1ad   :  { %1961 = vmatpush.msrb.mxu3 %v1143_v52  ;;  %1907 = vmatpush.msrb.mxu0 %v927_v55  ;;  %v1131_v37 = vld [vmem:[#allocation13 + $0x710] sm:$0xff]  ;;  %v952_v57 = vld [vmem:[#allocation13 + $0x178] sm:$0xff] }
 0x1ae   :  { %1927 = vmatpush.msrb.mxu1 %v991_v0  ;;  %1945 = vmatpush.msrb.mxu2 %v1063_v59  ;;  %v1594_v6 = vpop.f32.mrf.mxu0  ;;  %v915_v10 = vld [vmem:[#allocation13 + $0x50] sm:$0xff]  ;;  %v1016_v49 = vld [vmem:[#allocation13 + $0x378] sm:$0xff] }
 0x1af   :  { %1962 = vmatpush.msrb.mxu3 %v1139_v61  ;;  %1908 = vmatpush.msrb.mxu0 %v923_v63  ;;  %v1614_v9 = vpop.f32.mrf.mxu1  ;;  %v979_v12 = vld [vmem:[#allocation13 + $0x250] sm:$0xff]  ;;  %v1088_v51 = vld [vmem:[#allocation13 + $0x5b8] sm:$0xff] }
 0x1b0   :  { %1928 = vmatpush.msrb.mxu1 %v987_v2  ;;  %1946 = vmatpush.msrb.mxu2 %v1059_v3  ;;  %v1615_v11 = vadd.f32 %v1614_v9, %v1594_v6  ;;  %v1051_v13 = vld [vmem:[#allocation13 + $0x490] sm:$0xff]  ;;  %v948_v0 = vld [vmem:[#allocation13 + $0x158] sm:$0xff] }
 0x1b1   :  { %1963 = vmatpush.msrb.mxu3 %v1135_v4  ;;  %1909 = vmatpush.msrb.mxu0 %v919_v5  ;;  %v1127_v14 = vld [vmem:[#allocation13 + $0x6f0] sm:$0xff]  ;;  %v1012_v59 = vld [vmem:[#allocation13 + $0x358] sm:$0xff] }
 0x1b2   :  { %1929 = vmatpush.msrb.mxu1 %v983_v7  ;;  %1947 = vmatpush.msrb.mxu2 %v1055_v8  ;;  %v911_v15 = vld [vmem:[#allocation13 + $0x30] sm:$0xff]  ;;  %v1084_v61 = vld [vmem:[#allocation13 + $0x598] sm:$0xff] }
 0x1b3   :  { %1964 = vmatpush.msrb.mxu3 %v1131_v37  ;;  %1910 = vmatpush.msrb.mxu0 %v915_v10  ;;  %v975_v16 = vld [vmem:[#allocation13 + $0x230] sm:$0xff]  ;;  %v1160_v63 = vld [vmem:[#allocation13 + $0x7f8] sm:$0xff] }
 0x1b4   :  { %v1047_v17 = vld [vmem:[#allocation13 + $0x470] sm:$0xff]  ;;  %1930 = vmatpush.msrb.mxu1 %v979_v12  ;;  %1948 = vmatpush.msrb.mxu2 %v1051_v13  ;;  %v944_v2 = vld [vmem:[#allocation13 + $0x138] sm:$0xff] }
 0x1b5   :  { %v1123_v18 = vld [vmem:[#allocation13 + $0x6d0] sm:$0xff]  ;;  %1965 = vmatpush.msrb.mxu3 %v1127_v14  ;;  %1911 = vmatpush.msrb.mxu0 %v911_v15  ;;  %v1008_v3 = vld [vmem:[#allocation13 + $0x338] sm:$0xff] }
 0x1b6   :  { %v907_v19 = vld [vmem:[#allocation13 + $0x10] sm:$0xff]  ;;  %1931 = vmatpush.msrb.mxu1 %v975_v16  ;;  %1949 = vmatpush.msrb.mxu2 %v1047_v17  ;;  %v1080_v4 = vld [vmem:[#allocation13 + $0x578] sm:$0xff] }
 0x1b7   :  { %v971_v1 = vld [vmem:[#allocation13 + $0x210] sm:$0xff]  ;;  %1966 = vmatpush.msrb.mxu3 %v1123_v18  ;;  %1912 = vmatpush.msrb.mxu0 %v907_v19  ;;  %v1156_v5 = vld [vmem:[#allocation13 + $0x7d8] sm:$0xff] }
 0x1b8   :  { %v1043_v22 = vld [vmem:[#allocation13 + $0x450] sm:$0xff]  ;;  %1932 = vmatpush.msrb.mxu1 %v971_v1  ;;  %1913 = vmatmul.f32.vlgmr.msrb.gmra.mxu0 %v3087_v24  ;;  %v940_v6 = vld [vmem:[#allocation13 + $0x118] sm:$0xff] }
 0x1b9   :  { %v1119_v54 = vld [vmem:[#allocation13 + $0x6b0] sm:$0xff]  ;;  %1950 = vmatpush.msrb.mxu2 %v1043_v22  ;;  %v1634_v58 = vpop.f32.mrf.mxu2  ;;  %1933 = vmatmul.f32.vlgmr.msrb.gmra.mxu1 %v3089_v25  ;;  %v1004_v7 = vld [vmem:[#allocation13 + $0x318] sm:$0xff] }
 0x1ba   :  { %v1039_v27 = vld [vmem:[#allocation13 + $0x430] sm:$0xff]  ;;  %1967 = vmatpush.msrb.mxu3 %v1119_v54  ;;  %1977 = vmatpush.msra.mxu0 %v968_v23  ;;  %v1635_v34 = vadd.f32 %v1634_v58, %v1615_v11  ;;  %v1076_v8 = vld [vmem:[#allocation13 + $0x558] sm:$0xff] }
 0x1bb   :  { %v1115_v30 = vld [vmem:[#allocation13 + $0x690] sm:$0xff]  ;;  %1997 = vmatpush.msra.mxu1 %v1032_v26  ;;  %1951 = vmatpush.msrb.mxu2 %v1039_v27  ;;  %v1152_v9 = vld [vmem:[#allocation13 + $0x7b8] sm:$0xff] }
 0x1bc   :  { %v1035_v33 = vld [vmem:[#allocation13 + $0x410] sm:$0xff]  ;;  %1968 = vmatpush.msrb.mxu3 %v1115_v30  ;;  %1978 = vmatpush.msra.mxu0 %v964_v31  ;;  %v936_v37 = vld [vmem:[#allocation13 + $0xf8] sm:$0xff] }
 0x1bd   :  { %v1111_v35 = vld [vmem:[#allocation13 + $0x670] sm:$0xff]  ;;  %1998 = vmatpush.msra.mxu1 %v1028_v32  ;;  %1952 = vmatpush.msrb.mxu2 %v1035_v33  ;;  %v1000_v10 = vld [vmem:[#allocation13 + $0x2f8] sm:$0xff] }
 0x1be   :  { %v1107_v43 = vld [vmem:[#allocation13 + $0x650] sm:$0xff]  ;;  %1969 = vmatpush.msrb.mxu3 %v1111_v35  ;;  %1953 = vmatmul.f32.vlgmr.msrb.gmra.mxu2 %v3091_v28  ;;  %v1072_v11 = vld [vmem:[#allocation13 + $0x538] sm:$0xff] }
 0x1bf   :  { %1979 = vmatpush.msra.mxu0 %v960_v36  ;;  %1999 = vmatpush.msra.mxu1 %v1024_v38  ;;  %v1103_v53 = vld [vmem:[#allocation13 + $0x630] sm:$0xff]  ;;  %v1148_v12 = vld [vmem:[#allocation13 + $0x798] sm:$0xff] }
 0x1c0   :  { %2017 = vmatpush.msra.mxu2 %v1096_v42  ;;  %1970 = vmatpush.msrb.mxu3 %v1107_v43  ;;  %v1654_v50 = vpop.f32.mrf.mxu3  ;;  %v1099_v52 = vld [vmem:[#allocation13 + $0x610] sm:$0xff]  ;;  %v932_v13 = vld [vmem:[#allocation13 + $0xd8] sm:$0xff] }
 0x1c1   :  { %1980 = vmatpush.msra.mxu0 %v956_v44  ;;  %2000 = vmatpush.msra.mxu1 %v1020_v46  ;;  %v3156_v55 = vadd.f32 %v1654_v50, %v1635_v34  ;;  %v996_v14 = vld [vmem:[#allocation13 + $0x2d8] sm:$0xff] }
 0x1c2   :  { %2018 = vmatpush.msra.mxu2 %v1092_v47  ;;  %1971 = vmatpush.msrb.mxu3 %v1103_v53  ;;  %v1068_v15 = vld [vmem:[#allocation13 + $0x518] sm:$0xff] }
 0x1c3   :  { %1981 = vmatpush.msra.mxu0 %v952_v57  ;;  %2001 = vmatpush.msra.mxu1 %v1016_v49  ;;  %v1144_v16 = vld [vmem:[#allocation13 + $0x778] sm:$0xff]  ;;  %v2117_v57 = vld [vmem:[#allocation16 + $0x1e0] sm:$0xff] }
 0x1c4   :  { %2019 = vmatpush.msra.mxu2 %v1088_v51  ;;  %1972 = vmatpush.msrb.mxu3 %v1099_v52  ;;  %v928_v17 = vld [vmem:[#allocation13 + $0xb8] sm:$0xff]  ;;  %v2181_v49 = vld [vmem:[#allocation16 + $0x3e0] sm:$0xff] }
 0x1c5   :  { %1973 = vmatmul.f32.vlgmr.msrb.gmra.mxu3 %v3093_v29  ;;  %1982 = vmatpush.msra.mxu0 %v948_v0  ;;  %v992_v18 = vld [vmem:[#allocation13 + $0x2b8] sm:$0xff]  ;;  %v2113_v52 = vld [vmem:[#allocation16 + $0x1c0] sm:$0xff] }
 0x1c6   :  { %2002 = vmatpush.msra.mxu1 %v1012_v59  ;;  %2020 = vmatpush.msra.mxu2 %v1084_v61  ;;  %v1064_v19 = vld [vmem:[#allocation13 + $0x4f8] sm:$0xff]  ;;  %v2177_v0 = vld [vmem:[#allocation16 + $0x3c0] sm:$0xff] }
 0x1c7   :  { %2037 = vmatpush.msra.mxu3 %v1160_v63  ;;  %1983 = vmatpush.msra.mxu0 %v944_v2  ;;  %v1140_v1 = vld [vmem:[#allocation13 + $0x758] sm:$0xff]  ;;  %v2109_v63 = vld [vmem:[#allocation16 + $0x1a0] sm:$0xff] }
 0x1c8   :  { %2003 = vmatpush.msra.mxu1 %v1008_v3  ;;  %2021 = vmatpush.msra.mxu2 %v1080_v4  ;;  %v924_v22 = vld [vmem:[#allocation13 + $0x98] sm:$0xff]  ;;  %v2173_v2 = vld [vmem:[#allocation16 + $0x3a0] sm:$0xff] }
 0x1c9   :  { %2038 = vmatpush.msra.mxu3 %v1156_v5  ;;  %1984 = vmatpush.msra.mxu0 %v940_v6  ;;  %v988_v54 = vld [vmem:[#allocation13 + $0x298] sm:$0xff]  ;;  %v2245_v3 = vld [vmem:[#allocation16 + $0x5e0] sm:$0xff] }
 0x1ca   :  { %2004 = vmatpush.msra.mxu1 %v1004_v7  ;;  %2022 = vmatpush.msra.mxu2 %v1076_v8  ;;  %v1060_v23 = vld [vmem:[#allocation13 + $0x4d8] sm:$0xff]  ;;  %v2169_v5 = vld [vmem:[#allocation16 + $0x380] sm:$0xff] }
 0x1cb   :  { %2039 = vmatpush.msra.mxu3 %v1152_v9  ;;  %1985 = vmatpush.msra.mxu0 %v936_v37  ;;  %v1136_v26 = vld [vmem:[#allocation13 + $0x738] sm:$0xff]  ;;  %v2101_v7 = vld [vmem:[#allocation16 + $0x160] sm:$0xff] }
 0x1cc   :  { %2005 = vmatpush.msra.mxu1 %v1000_v10  ;;  %2023 = vmatpush.msra.mxu2 %v1072_v11  ;;  %v920_v27 = vld [vmem:[#allocation13 + $0x78] sm:$0xff]  ;;  %v2165_v8 = vld [vmem:[#allocation16 + $0x360] sm:$0xff] }
 0x1cd   :  { %2040 = vmatpush.msra.mxu3 %v1148_v12  ;;  %1986 = vmatpush.msra.mxu0 %v932_v13  ;;  %v984_v30 = vld [vmem:[#allocation13 + $0x278] sm:$0xff]  ;;  %v2237_v9 = vld [vmem:[#allocation16 + $0x5a0] sm:$0xff] }
 0x1ce   :  { %2006 = vmatpush.msra.mxu1 %v996_v14  ;;  %2024 = vmatpush.msra.mxu2 %v1068_v15  ;;  %v1056_v31 = vld [vmem:[#allocation13 + $0x4b8] sm:$0xff]  ;;  %v2097_v10 = vld [vmem:[#allocation16 + $0x140] sm:$0xff] }
 0x1cf   :  { %2041 = vmatpush.msra.mxu3 %v1144_v16  ;;  %1987 = vmatpush.msra.mxu0 %v928_v17  ;;  %v1132_v58 = vld [vmem:[#allocation13 + $0x718] sm:$0xff]  ;;  %v2233_v11 = vld [vmem:[#allocation16 + $0x580] sm:$0xff] }
 0x1d0   :  { %2007 = vmatpush.msra.mxu1 %v992_v18  ;;  %2025 = vmatpush.msra.mxu2 %v1064_v19  ;;  %v916_v32 = vld [vmem:[#allocation13 + $0x58] sm:$0xff]  ;;  %v2309_v12 = vld [vmem:[#allocation16 + $0x7e0] sm:$0xff] }
 0x1d1   :  { %2042 = vmatpush.msra.mxu3 %v1140_v1  ;;  %1988 = vmatpush.msra.mxu0 %v924_v22  ;;  %v980_v33 = vld [vmem:[#allocation13 + $0x258] sm:$0xff]  ;;  %v2093_v13 = vld [vmem:[#allocation16 + $0x120] sm:$0xff] }
 0x1d2   :  { %2008 = vmatpush.msra.mxu1 %v988_v54  ;;  %2026 = vmatpush.msra.mxu2 %v1060_v23  ;;  %v1052_v34 = vld [vmem:[#allocation13 + $0x498] sm:$0xff]  ;;  %v2157_v14 = vld [vmem:[#allocation16 + $0x320] sm:$0xff] }
 0x1d3   :  { %2043 = vmatpush.msra.mxu3 %v1136_v26  ;;  %1989 = vmatpush.msra.mxu0 %v920_v27  ;;  %v1128_v35 = vld [vmem:[#allocation13 + $0x6f8] sm:$0xff]  ;;  %v2229_v15 = vld [vmem:[#allocation16 + $0x560] sm:$0xff] }
 0x1d4   :  { %2009 = vmatpush.msra.mxu1 %v984_v30  ;;  %2027 = vmatpush.msra.mxu2 %v1056_v31  ;;  %v912_v36 = vld [vmem:[#allocation13 + $0x38] sm:$0xff]  ;;  %v2305_v16 = vld [vmem:[#allocation16 + $0x7c0] sm:$0xff] }
 0x1d5   :  { %2044 = vmatpush.msra.mxu3 %v1132_v58  ;;  %1990 = vmatpush.msra.mxu0 %v916_v32  ;;  %v976_v38 = vld [vmem:[#allocation13 + $0x238] sm:$0xff]  ;;  %v2089_v17 = vld [vmem:[#allocation16 + $0x100] sm:$0xff] }
 0x1d6   :  { %v1048_v42 = vld [vmem:[#allocation13 + $0x478] sm:$0xff]  ;;  %2010 = vmatpush.msra.mxu1 %v980_v33  ;;  %2028 = vmatpush.msra.mxu2 %v1052_v34  ;;  %v2153_v18 = vld [vmem:[#allocation16 + $0x300] sm:$0xff] }
 0x1d7   :  { %v1124_v43 = vld [vmem:[#allocation13 + $0x6d8] sm:$0xff]  ;;  %2045 = vmatpush.msra.mxu3 %v1128_v35  ;;  %1991 = vmatpush.msra.mxu0 %v912_v36  ;;  %v2225_v19 = vld [vmem:[#allocation16 + $0x540] sm:$0xff] }
 0x1d8   :  { %v908_v44 = vld [vmem:[#allocation13 + $0x18] sm:$0xff]  ;;  %2011 = vmatpush.msra.mxu1 %v976_v38  ;;  %2029 = vmatpush.msra.mxu2 %v1048_v42  ;;  %v2301_v1 = vld [vmem:[#allocation16 + $0x7a0] sm:$0xff] }
 0x1d9   :  { %v972_v46 = vld [vmem:[#allocation13 + $0x218] sm:$0xff]  ;;  %2046 = vmatpush.msra.mxu3 %v1124_v43  ;;  %1992 = vmatpush.msra.mxu0 %v908_v44  ;;  %v2085_v22 = vld [vmem:[#allocation16 + $0xe0] sm:$0xff] }
 0x1da   :  { %v1044_v47 = vld [vmem:[#allocation13 + $0x458] sm:$0xff]  ;;  %2012 = vmatpush.msra.mxu1 %v972_v46  ;;  %1993 = vmatmul.f32.vlgmr.msra.gmra.mxu0 %v3087_v24  ;;  %v2105_v24 = vld [vmem:[#allocation16 + $0x180] sm:$0xff] }
 0x1db   :  { %v1120_v53 = vld [vmem:[#allocation13 + $0x6b8] sm:$0xff]  ;;  %2030 = vmatpush.msra.mxu2 %v1044_v47  ;;  %2013 = vmatmul.f32.vlgmr.msra.gmra.mxu1 %v3089_v25  ;;  %v2241_v25 = vld [vmem:[#allocation16 + $0x5c0] sm:$0xff] }
 0x1dc   :  { %v1040_v50 = vld [vmem:[#allocation13 + $0x438] sm:$0xff]  ;;  %2047 = vmatpush.msra.mxu3 %v1120_v53  ;;  %2313 = vmatpush.msrb.mxu0 %v2117_v57  ;;  %v2149_v54 = vld [vmem:[#allocation16 + $0x2e0] sm:$0xff] }
 0x1dd   :  { %v1116_v51 = vld [vmem:[#allocation13 + $0x698] sm:$0xff]  ;;  %2333 = vmatpush.msrb.mxu1 %v2181_v49  ;;  %2031 = vmatpush.msra.mxu2 %v1040_v50  ;;  %v2221_v23 = vld [vmem:[#allocation16 + $0x520] sm:$0xff] }
 0x1de   :  { %v1036_v59 = vld [vmem:[#allocation13 + $0x418] sm:$0xff]  ;;  %2048 = vmatpush.msra.mxu3 %v1116_v51  ;;  %2314 = vmatpush.msrb.mxu0 %v2113_v52  ;;  %v2081_v26 = vld [vmem:[#allocation16 + $0xc0] sm:$0xff] }
 0x1df   :  { %v1112_v61 = vld [vmem:[#allocation13 + $0x678] sm:$0xff]  ;;  %2334 = vmatpush.msrb.mxu1 %v2177_v0  ;;  %2032 = vmatpush.msra.mxu2 %v1036_v59  ;;  %v2145_v27 = vld [vmem:[#allocation16 + $0x2c0] sm:$0xff] }
 0x1e0   :  { %v1108_v4 = vld [vmem:[#allocation13 + $0x658] sm:$0xff]  ;;  %2049 = vmatpush.msra.mxu3 %v1112_v61  ;;  %2033 = vmatmul.f32.vlgmr.msra.gmra.mxu2 %v3091_v28  ;;  %v2161_v28 = vld [vmem:[#allocation16 + $0x340] sm:$0xff] }
 0x1e1   :  { %2315 = vmatpush.msrb.mxu0 %v2109_v63  ;;  %2335 = vmatpush.msrb.mxu1 %v2173_v2  ;;  %v1104_v6 = vld [vmem:[#allocation13 + $0x638] sm:$0xff]  ;;  %v2217_v30 = vld [vmem:[#allocation16 + $0x500] sm:$0xff] }
 0x1e2   :  { %2353 = vmatpush.msrb.mxu2 %v2245_v3  ;;  %2050 = vmatpush.msra.mxu3 %v1108_v4  ;;  %v1100_v37 = vld [vmem:[#allocation13 + $0x618] sm:$0xff]  ;;  %v2293_v31 = vld [vmem:[#allocation16 + $0x760] sm:$0xff]  ;;  %v3165_v4 = vadd.f32 %v3121_v41, %v3119_v39  ;;  %v2178_v39 = vld [vmem:[#allocation16 + $0x3c8] sm:$0xff] }
 0x1e3   :  { %2316 = vmatpush.msrb.mxu0 %v2105_v24  ;;  %2336 = vmatpush.msrb.mxu1 %v2169_v5  ;;  %v2077_v58 = vld [vmem:[#allocation16 + $0xa0] sm:$0xff]  ;;  %v2118_v24 = vld [vmem:[#allocation16 + $0x1e8] sm:$0xff]  ;;  %v3169_v5 = vadd.f32 %v3135_v40, %v3133_v20  ;;  %v3175_v20 = vadd.f32 %v3128_v60, %v3126_v56 }
 0x1e4   :  { %2354 = vmatpush.msrb.mxu2 %v2241_v25  ;;  %2051 = vmatpush.msra.mxu3 %v1104_v6  ;;  %v2141_v32 = vld [vmem:[#allocation16 + $0x2a0] sm:$0xff]  ;;  %v2182_v25 = vld [vmem:[#allocation16 + $0x3e8] sm:$0xff] }
 0x1e5   :  { %2317 = vmatpush.msrb.mxu0 %v2101_v7  ;;  %2337 = vmatpush.msrb.mxu1 %v2165_v8  ;;  %v2213_v33 = vld [vmem:[#allocation16 + $0x4e0] sm:$0xff]  ;;  %v2114_v8 = vld [vmem:[#allocation16 + $0x1c8] sm:$0xff] }
 0x1e6   :  { %2355 = vmatpush.msrb.mxu2 %v2237_v9  ;;  %2052 = vmatpush.msra.mxu3 %v1100_v37  ;;  %v2289_v34 = vld [vmem:[#allocation16 + $0x740] sm:$0xff]  ;;  %v2110_v40 = vld [vmem:[#allocation16 + $0x1a8] sm:$0xff] }
 0x1e7   :  { %2053 = vmatmul.f32.vlgmr.msra.gmra.mxu3 %v3093_v29  ;;  %2318 = vmatpush.msrb.mxu0 %v2097_v10  ;;  %v2297_v29 = vld [vmem:[#allocation16 + $0x780] sm:$0xff]  ;;  %v2174_v37 = vld [vmem:[#allocation16 + $0x3a8] sm:$0xff] }
 0x1e8   :  { %2338 = vmatpush.msrb.mxu1 %v2161_v28  ;;  %2356 = vmatpush.msrb.mxu2 %v2233_v11  ;;  %v2073_v35 = vld [vmem:[#allocation16 + $0x80] sm:$0xff]  ;;  %v2246_v10 = vld [vmem:[#allocation16 + $0x5e8] sm:$0xff] }
 0x1e9   :  { %2373 = vmatpush.msrb.mxu3 %v2309_v12  ;;  %2319 = vmatpush.msrb.mxu0 %v2093_v13  ;;  %v2137_v36 = vld [vmem:[#allocation16 + $0x280] sm:$0xff]  ;;  %v2106_v11 = vld [vmem:[#allocation16 + $0x188] sm:$0xff] }
 0x1ea   :  { %2339 = vmatpush.msrb.mxu1 %v2157_v14  ;;  %2357 = vmatpush.msrb.mxu2 %v2229_v15  ;;  %v2209_v38 = vld [vmem:[#allocation16 + $0x4c0] sm:$0xff]  ;;  %v2170_v12 = vld [vmem:[#allocation16 + $0x388] sm:$0xff] }
 0x1eb   :  { %2374 = vmatpush.msrb.mxu3 %v2305_v16  ;;  %2320 = vmatpush.msrb.mxu0 %v2089_v17  ;;  %v2285_v42 = vld [vmem:[#allocation16 + $0x720] sm:$0xff]  ;;  %v2242_v13 = vld [vmem:[#allocation16 + $0x5c8] sm:$0xff] }
 0x1ec   :  { %2340 = vmatpush.msrb.mxu1 %v2153_v18  ;;  %2358 = vmatpush.msrb.mxu2 %v2225_v19  ;;  %v2069_v43 = vld [vmem:[#allocation16 + $0x60] sm:$0xff]  ;;  %v2102_v56 = vld [vmem:[#allocation16 + $0x168] sm:$0xff]  ;;  %v3180_v18 = vadd.f32 %v3141_v62, %v3139_v45 }
 0x1ed   :  { %2375 = vmatpush.msrb.mxu3 %v2301_v1  ;;  %2321 = vmatpush.msrb.mxu0 %v2085_v22  ;;  %v2133_v44 = vld [vmem:[#allocation16 + $0x260] sm:$0xff]  ;;  %v2166_v60 = vld [vmem:[#allocation16 + $0x368] sm:$0xff] }
 0x1ee   :  { %2341 = vmatpush.msrb.mxu1 %v2149_v54  ;;  %2359 = vmatpush.msrb.mxu2 %v2221_v23  ;;  %v2205_v46 = vld [vmem:[#allocation16 + $0x4a0] sm:$0xff]  ;;  %v2238_v15 = vld [vmem:[#allocation16 + $0x5a8] sm:$0xff] }
 0x1ef   :  { %2376 = vmatpush.msrb.mxu3 %v2297_v29  ;;  %2322 = vmatpush.msrb.mxu0 %v2081_v26  ;;  %v2281_v47 = vld [vmem:[#allocation16 + $0x700] sm:$0xff]  ;;  %v2098_v17 = vld [vmem:[#allocation16 + $0x148] sm:$0xff] }
 0x1f0   :  { %2342 = vmatpush.msrb.mxu1 %v2145_v27  ;;  %2360 = vmatpush.msrb.mxu2 %v2217_v30  ;;  %v2065_v53 = vld [vmem:[#allocation16 + $0x40] sm:$0xff]  ;;  %v2162_v19 = vld [vmem:[#allocation16 + $0x348] sm:$0xff] }
 0x1f1   :  { %2377 = vmatpush.msrb.mxu3 %v2293_v31  ;;  %2323 = vmatpush.msrb.mxu0 %v2077_v58  ;;  %v2129_v57 = vld [vmem:[#allocation16 + $0x240] sm:$0xff]  ;;  %v2234_v1 = vld [vmem:[#allocation16 + $0x588] sm:$0xff] }
 0x1f2   :  { %2343 = vmatpush.msrb.mxu1 %v2141_v32  ;;  %2361 = vmatpush.msrb.mxu2 %v2213_v33  ;;  %v2201_v49 = vld [vmem:[#allocation16 + $0x480] sm:$0xff]  ;;  %v2310_v22 = vld [vmem:[#allocation16 + $0x7e8] sm:$0xff] }
 0x1f3   :  { %2378 = vmatpush.msrb.mxu3 %v2289_v34  ;;  %2324 = vmatpush.msrb.mxu0 %v2073_v35  ;;  %v2277_v50 = vld [vmem:[#allocation16 + $0x6e0] sm:$0xff]  ;;  %v2094_v54 = vld [vmem:[#allocation16 + $0x128] sm:$0xff] }
 0x1f4   :  { %2344 = vmatpush.msrb.mxu1 %v2137_v36  ;;  %2362 = vmatpush.msrb.mxu2 %v2209_v38  ;;  %v2061_v51 = vld [vmem:[#allocation16 + $0x20] sm:$0xff]  ;;  %v2158_v23 = vld [vmem:[#allocation16 + $0x328] sm:$0xff] }
 0x1f5   :  { %2379 = vmatpush.msrb.mxu3 %v2285_v42  ;;  %2325 = vmatpush.msrb.mxu0 %v2069_v43  ;;  %v2125_v52 = vld [vmem:[#allocation16 + $0x220] sm:$0xff]  ;;  %v2230_v29 = vld [vmem:[#allocation16 + $0x568] sm:$0xff] }
 0x1f6   :  { %2345 = vmatpush.msrb.mxu1 %v2133_v44  ;;  %2363 = vmatpush.msrb.mxu2 %v2205_v46  ;;  %v2197_v0 = vld [vmem:[#allocation16 + $0x460] sm:$0xff]  ;;  %v2306_v26 = vld [vmem:[#allocation16 + $0x7c8] sm:$0xff] }
 0x1f7   :  { %2380 = vmatpush.msrb.mxu3 %v2281_v47  ;;  %2326 = vmatpush.msrb.mxu0 %v2065_v53  ;;  %v2273_v59 = vld [vmem:[#allocation16 + $0x6c0] sm:$0xff]  ;;  %v2090_v27 = vld [vmem:[#allocation16 + $0x108] sm:$0xff] }
 0x1f8   :  { %2346 = vmatpush.msrb.mxu1 %v2129_v57  ;;  %2364 = vmatpush.msrb.mxu2 %v2201_v49  ;;  %v2057_v61 = vld [vmem:[#allocation16] sm:$0xff]  ;;  %v2154_v45 = vld [vmem:[#allocation16 + $0x308] sm:$0xff] }
 0x1f9   :  { %2381 = vmatpush.msrb.mxu3 %v2277_v50  ;;  %2327 = vmatpush.msrb.mxu0 %v2061_v51  ;;  %v2121_v63 = vld [vmem:[#allocation16 + $0x200] sm:$0xff]  ;;  %v2226_v62 = vld [vmem:[#allocation16 + $0x548] sm:$0xff] }
 0x1fa   :  { %v2193_v2 = vld [vmem:[#allocation16 + $0x440] sm:$0xff]  ;;  %2347 = vmatpush.msrb.mxu1 %v2125_v52  ;;  %2365 = vmatpush.msrb.mxu2 %v2197_v0  ;;  %v2302_v30 = vld [vmem:[#allocation16 + $0x7a8] sm:$0xff] }
 0x1fb   :  { %v2269_v3 = vld [vmem:[#allocation16 + $0x6a0] sm:$0xff]  ;;  %2382 = vmatpush.msrb.mxu3 %v2273_v59  ;;  %2328 = vmatpush.msrb.mxu0 %v2057_v61  ;;  %v2086_v31 = vld [vmem:[#allocation16 + $0xe8] sm:$0xff] }
 0x1fc   :  { %2348 = vmatpush.msrb.mxu1 %v2121_v63  ;;  %2366 = vmatpush.msrb.mxu2 %v2193_v2  ;;  %v2189_v6 = vld [vmem:[#allocation16 + $0x420] sm:$0xff]  ;;  %v2150_v58 = vld [vmem:[#allocation16 + $0x2e8] sm:$0xff] }
 0x1fd   :  { %2383 = vmatpush.msrb.mxu3 %v2269_v3  ;;  %2329 = vmatmul.f32.vlgmr.msrb.gmra.mxu0 %v3165_v4  ;;  %v2265_v7 = vld [vmem:[#allocation16 + $0x680] sm:$0xff]  ;;  %v2222_v32 = vld [vmem:[#allocation16 + $0x528] sm:$0xff] }
 0x1fe   :  { %2349 = vmatmul.f32.vlgmr.msrb.gmra.mxu1 %v3169_v5  ;;  %2393 = vmatpush.msra.mxu0 %v2118_v24  ;;  %v2185_v41 = vld [vmem:[#allocation16 + $0x400] sm:$0xff]  ;;  %v2298_v33 = vld [vmem:[#allocation16 + $0x788] sm:$0xff] }
 0x1ff   :  { %2413 = vmatpush.msra.mxu1 %v2182_v25  ;;  %2367 = vmatpush.msrb.mxu2 %v2189_v6  ;;  %v2261_v9 = vld [vmem:[#allocation16 + $0x660] sm:$0xff]  ;;  %v2082_v34 = vld [vmem:[#allocation16 + $0xc8] sm:$0xff] }
 0x200   :  { %2384 = vmatpush.msrb.mxu3 %v2265_v7  ;;  %2394 = vmatpush.msra.mxu0 %v2114_v8  ;;  %v2257_v28 = vld [vmem:[#allocation16 + $0x640] sm:$0xff]  ;;  %v2146_v35 = vld [vmem:[#allocation16 + $0x2c8] sm:$0xff] }
 0x201   :  { %2414 = vmatpush.msra.mxu1 %v2178_v39  ;;  %2368 = vmatpush.msrb.mxu2 %v2185_v41  ;;  %v2253_v14 = vld [vmem:[#allocation16 + $0x620] sm:$0xff]  ;;  %v2218_v36 = vld [vmem:[#allocation16 + $0x508] sm:$0xff] }
 0x202   :  { %2385 = vmatpush.msrb.mxu3 %v2261_v9  ;;  %2369 = vmatmul.f32.vlgmr.msrb.gmra.mxu2 %v3175_v20  ;;  %v2249_v16 = vld [vmem:[#allocation16 + $0x600] sm:$0xff]  ;;  %v2294_v38 = vld [vmem:[#allocation16 + $0x768] sm:$0xff]  ;;  %v2119_v9 = vld [vmem:[#allocation16 + $0x1f0] sm:$0xff] }
 0x203   :  { %2395 = vmatpush.msra.mxu0 %v2110_v40  ;;  %2415 = vmatpush.msra.mxu1 %v2174_v37  ;;  %v2078_v42 = vld [vmem:[#allocation16 + $0xa8] sm:$0xff]  ;;  %v2183_v40 = vld [vmem:[#allocation16 + $0x3f0] sm:$0xff] }
 0x204   :  { %2433 = vmatpush.msra.mxu2 %v2246_v10  ;;  %2386 = vmatpush.msrb.mxu3 %v2257_v28  ;;  %v2142_v43 = vld [vmem:[#allocation16 + $0x2a8] sm:$0xff]  ;;  %v2115_v28 = vld [vmem:[#allocation16 + $0x1d0] sm:$0xff] }
 0x205   :  { %2396 = vmatpush.msra.mxu0 %v2106_v11  ;;  %2416 = vmatpush.msra.mxu1 %v2170_v12  ;;  %v2214_v44 = vld [vmem:[#allocation16 + $0x4e8] sm:$0xff]  ;;  %v2179_v11 = vld [vmem:[#allocation16 + $0x3d0] sm:$0xff] }
 0x206   :  { %2434 = vmatpush.msra.mxu2 %v2242_v13  ;;  %2387 = vmatpush.msrb.mxu3 %v2253_v14  ;;  %v2290_v46 = vld [vmem:[#allocation16 + $0x748] sm:$0xff]  ;;  %v2111_v14 = vld [vmem:[#allocation16 + $0x1b0] sm:$0xff] }
 0x207   :  { %2397 = vmatpush.msra.mxu0 %v2102_v56  ;;  %2417 = vmatpush.msra.mxu1 %v2166_v60  ;;  %v2074_v47 = vld [vmem:[#allocation16 + $0x88] sm:$0xff]  ;;  %v2175_v56 = vld [vmem:[#allocation16 + $0x3b0] sm:$0xff] }
 0x208   :  { %2435 = vmatpush.msra.mxu2 %v2238_v15  ;;  %2388 = vmatpush.msrb.mxu3 %v2249_v16  ;;  %v2138_v53 = vld [vmem:[#allocation16 + $0x288] sm:$0xff]  ;;  %v2247_v60 = vld [vmem:[#allocation16 + $0x5f0] sm:$0xff] }
 0x209   :  { %2389 = vmatmul.f32.vlgmr.msrb.gmra.mxu3 %v3180_v18  ;;  %2398 = vmatpush.msra.mxu0 %v2098_v17  ;;  %v2210_v57 = vld [vmem:[#allocation16 + $0x4c8] sm:$0xff]  ;;  %v2107_v16 = vld [vmem:[#allocation16 + $0x190] sm:$0xff] }
 0x20a   :  { %2418 = vmatpush.msra.mxu1 %v2162_v19  ;;  %2436 = vmatpush.msra.mxu2 %v2234_v1  ;;  %v2286_v49 = vld [vmem:[#allocation16 + $0x728] sm:$0xff]  ;;  %v2171_v17 = vld [vmem:[#allocation16 + $0x390] sm:$0xff] }
 0x20b   :  { %2453 = vmatpush.msra.mxu3 %v2310_v22  ;;  %2399 = vmatpush.msra.mxu0 %v2094_v54  ;;  %v2070_v50 = vld [vmem:[#allocation16 + $0x68] sm:$0xff]  ;;  %v2243_v19 = vld [vmem:[#allocation16 + $0x5d0] sm:$0xff] }
 0x20c   :  { %2419 = vmatpush.msra.mxu1 %v2158_v23  ;;  %2437 = vmatpush.msra.mxu2 %v2230_v29  ;;  %v2134_v51 = vld [vmem:[#allocation16 + $0x268] sm:$0xff]  ;;  %v2103_v22 = vld [vmem:[#allocation16 + $0x170] sm:$0xff] }
 0x20d   :  { %2454 = vmatpush.msra.mxu3 %v2306_v26  ;;  %2400 = vmatpush.msra.mxu0 %v2090_v27  ;;  %v2206_v52 = vld [vmem:[#allocation16 + $0x4a8] sm:$0xff]  ;;  %v2167_v54 = vld [vmem:[#allocation16 + $0x370] sm:$0xff] }
 0x20e   :  { %2420 = vmatpush.msra.mxu1 %v2154_v45  ;;  %2438 = vmatpush.msra.mxu2 %v2226_v62  ;;  %v2282_v0 = vld [vmem:[#allocation16 + $0x708] sm:$0xff]  ;;  %v2239_v23 = vld [vmem:[#allocation16 + $0x5b0] sm:$0xff] }
 0x20f   :  { %2455 = vmatpush.msra.mxu3 %v2302_v30  ;;  %2401 = vmatpush.msra.mxu0 %v2086_v31  ;;  %v2066_v59 = vld [vmem:[#allocation16 + $0x48] sm:$0xff]  ;;  %v2099_v26 = vld [vmem:[#allocation16 + $0x150] sm:$0xff] }
 0x210   :  { %2421 = vmatpush.msra.mxu1 %v2150_v58  ;;  %2439 = vmatpush.msra.mxu2 %v2222_v32  ;;  %v2130_v61 = vld [vmem:[#allocation16 + $0x248] sm:$0xff]  ;;  %v2163_v27 = vld [vmem:[#allocation16 + $0x350] sm:$0xff] }
 0x211   :  { %2456 = vmatpush.msra.mxu3 %v2298_v33  ;;  %2402 = vmatpush.msra.mxu0 %v2082_v34  ;;  %v2202_v63 = vld [vmem:[#allocation16 + $0x488] sm:$0xff]  ;;  %v2235_v45 = vld [vmem:[#allocation16 + $0x590] sm:$0xff] }
 0x212   :  { %2422 = vmatpush.msra.mxu1 %v2146_v35  ;;  %2440 = vmatpush.msra.mxu2 %v2218_v36  ;;  %v2278_v2 = vld [vmem:[#allocation16 + $0x6e8] sm:$0xff]  ;;  %v2311_v62 = vld [vmem:[#allocation16 + $0x7f0] sm:$0xff] }
 0x213   :  { %2457 = vmatpush.msra.mxu3 %v2294_v38  ;;  %2403 = vmatpush.msra.mxu0 %v2078_v42  ;;  %v2062_v3 = vld [vmem:[#allocation16 + $0x28] sm:$0xff]  ;;  %v2095_v30 = vld [vmem:[#allocation16 + $0x130] sm:$0xff] }
 0x214   :  { %2423 = vmatpush.msra.mxu1 %v2142_v43  ;;  %2441 = vmatpush.msra.mxu2 %v2214_v44  ;;  %v2126_v24 = vld [vmem:[#allocation16 + $0x228] sm:$0xff]  ;;  %v2159_v31 = vld [vmem:[#allocation16 + $0x330] sm:$0xff] }
 0x215   :  { %2458 = vmatpush.msra.mxu3 %v2290_v46  ;;  %2404 = vmatpush.msra.mxu0 %v2074_v47  ;;  %v2198_v25 = vld [vmem:[#allocation16 + $0x468] sm:$0xff]  ;;  %v2231_v58 = vld [vmem:[#allocation16 + $0x570] sm:$0xff] }
 0x216   :  { %2424 = vmatpush.msra.mxu1 %v2138_v53  ;;  %2442 = vmatpush.msra.mxu2 %v2210_v57  ;;  %v2274_v6 = vld [vmem:[#allocation16 + $0x6c8] sm:$0xff]  ;;  %v2307_v32 = vld [vmem:[#allocation16 + $0x7d0] sm:$0xff] }
 0x217   :  { %2459 = vmatpush.msra.mxu3 %v2286_v49  ;;  %2405 = vmatpush.msra.mxu0 %v2070_v50  ;;  %v2058_v7 = vld [vmem:[#allocation16 + $0x8] sm:$0xff]  ;;  %v2091_v33 = vld [vmem:[#allocation16 + $0x110] sm:$0xff] }
 0x218   :  { %2425 = vmatpush.msra.mxu1 %v2134_v51  ;;  %2443 = vmatpush.msra.mxu2 %v2206_v52  ;;  %v2122_v8 = vld [vmem:[#allocation16 + $0x208] sm:$0xff]  ;;  %v2155_v34 = vld [vmem:[#allocation16 + $0x310] sm:$0xff] }
 0x219   :  { %2460 = vmatpush.msra.mxu3 %v2282_v0  ;;  %2406 = vmatpush.msra.mxu0 %v2066_v59  ;;  %v2194_v39 = vld [vmem:[#allocation16 + $0x448] sm:$0xff]  ;;  %v2227_v35 = vld [vmem:[#allocation16 + $0x550] sm:$0xff] }
 0x21a   :  { %2426 = vmatpush.msra.mxu1 %v2130_v61  ;;  %2444 = vmatpush.msra.mxu2 %v2202_v63  ;;  %v2270_v41 = vld [vmem:[#allocation16 + $0x6a8] sm:$0xff]  ;;  %v2303_v36 = vld [vmem:[#allocation16 + $0x7b0] sm:$0xff] }
 0x21b   :  { %2461 = vmatpush.msra.mxu3 %v2278_v2  ;;  %2407 = vmatpush.msra.mxu0 %v2062_v3  ;;  %v2190_v37 = vld [vmem:[#allocation16 + $0x428] sm:$0xff]  ;;  %v2087_v38 = vld [vmem:[#allocation16 + $0xf0] sm:$0xff] }
 0x21c   :  { %2427 = vmatpush.msra.mxu1 %v2126_v24  ;;  %2445 = vmatpush.msra.mxu2 %v2198_v25  ;;  %v2266_v10 = vld [vmem:[#allocation16 + $0x688] sm:$0xff]  ;;  %v2151_v42 = vld [vmem:[#allocation16 + $0x2f0] sm:$0xff] }
 0x21d   :  { %2462 = vmatpush.msra.mxu3 %v2274_v6  ;;  %2408 = vmatpush.msra.mxu0 %v2058_v7  ;;  %v2186_v12 = vld [vmem:[#allocation16 + $0x408] sm:$0xff]  ;;  %v2223_v43 = vld [vmem:[#allocation16 + $0x530] sm:$0xff] }
 0x21e   :  { %2428 = vmatpush.msra.mxu1 %v2122_v8  ;;  %2446 = vmatpush.msra.mxu2 %v2194_v39  ;;  %v2262_v13 = vld [vmem:[#allocation16 + $0x668] sm:$0xff]  ;;  %v2299_v44 = vld [vmem:[#allocation16 + $0x790] sm:$0xff] }
 0x21f   :  { %2463 = vmatpush.msra.mxu3 %v2270_v41  ;;  %2409 = vmatmul.f32.vlgmr.msra.gmra.mxu0 %v3165_v4  ;;  %v2258_v15 = vld [vmem:[#allocation16 + $0x648] sm:$0xff]  ;;  %v2083_v46 = vld [vmem:[#allocation16 + $0xd0] sm:$0xff] }
 0x220   :  { %2429 = vmatmul.f32.vlgmr.msra.gmra.mxu1 %v3169_v5  ;;  %2473 = vmatpush.msrb.mxu0 %v2119_v9  ;;  %v2254_v1 = vld [vmem:[#allocation16 + $0x628] sm:$0xff]  ;;  %v2147_v47 = vld [vmem:[#allocation16 + $0x2d0] sm:$0xff] }
 0x221   :  { %2493 = vmatpush.msrb.mxu1 %v2183_v40  ;;  %2447 = vmatpush.msra.mxu2 %v2190_v37  ;;  %v2250_v29 = vld [vmem:[#allocation16 + $0x608] sm:$0xff]  ;;  %v2219_v53 = vld [vmem:[#allocation16 + $0x510] sm:$0xff] }
 0x222   :  { %2464 = vmatpush.msra.mxu3 %v2266_v10  ;;  %2474 = vmatpush.msrb.mxu0 %v2115_v28  ;;  %v2295_v57 = vld [vmem:[#allocation16 + $0x770] sm:$0xff] }
 0x223   :  { %2494 = vmatpush.msrb.mxu1 %v2179_v11  ;;  %2448 = vmatpush.msra.mxu2 %v2186_v12  ;;  %v2079_v49 = vld [vmem:[#allocation16 + $0xb0] sm:$0xff] }
 0x224   :  { %2465 = vmatpush.msra.mxu3 %v2262_v13  ;;  %2449 = vmatmul.f32.vlgmr.msra.gmra.mxu2 %v3175_v20  ;;  %v2143_v50 = vld [vmem:[#allocation16 + $0x2b0] sm:$0xff]  ;;  %v2120_v13 = vld [vmem:[#allocation16 + $0x1f8] sm:$0xff] }
 0x225   :  { %2475 = vmatpush.msrb.mxu0 %v2111_v14  ;;  %2495 = vmatpush.msrb.mxu1 %v2175_v56  ;;  %v2215_v51 = vld [vmem:[#allocation16 + $0x4f0] sm:$0xff]  ;;  %v2184_v14 = vld [vmem:[#allocation16 + $0x3f8] sm:$0xff] }
 0x226   :  { %2513 = vmatpush.msrb.mxu2 %v2247_v60  ;;  %2466 = vmatpush.msra.mxu3 %v2258_v15  ;;  %v2291_v52 = vld [vmem:[#allocation16 + $0x750] sm:$0xff]  ;;  %v2116_v15 = vld [vmem:[#allocation16 + $0x1d8] sm:$0xff] }
 0x227   :  { %2476 = vmatpush.msrb.mxu0 %v2107_v16  ;;  %2496 = vmatpush.msrb.mxu1 %v2171_v17  ;;  %v2075_v0 = vld [vmem:[#allocation16 + $0x90] sm:$0xff]  ;;  %v2180_v16 = vld [vmem:[#allocation16 + $0x3d8] sm:$0xff] }
 0x228   :  { %2514 = vmatpush.msrb.mxu2 %v2243_v19  ;;  %2467 = vmatpush.msra.mxu3 %v2254_v1  ;;  %v2139_v59 = vld [vmem:[#allocation16 + $0x290] sm:$0xff]  ;;  %v2112_v1 = vld [vmem:[#allocation16 + $0x1b8] sm:$0xff] }
 0x229   :  { %2477 = vmatpush.msrb.mxu0 %v2103_v22  ;;  %2497 = vmatpush.msrb.mxu1 %v2167_v54  ;;  %v2211_v61 = vld [vmem:[#allocation16 + $0x4d0] sm:$0xff]  ;;  %v2176_v22 = vld [vmem:[#allocation16 + $0x3b8] sm:$0xff] }
 0x22a   :  { %2515 = vmatpush.msrb.mxu2 %v2239_v23  ;;  %2468 = vmatpush.msra.mxu3 %v2250_v29  ;;  %v2287_v63 = vld [vmem:[#allocation16 + $0x730] sm:$0xff]  ;;  %v2248_v54 = vld [vmem:[#allocation16 + $0x5f8] sm:$0xff] }
 0x22b   :  { %2469 = vmatmul.f32.vlgmr.msra.gmra.mxu3 %v3180_v18  ;;  %2478 = vmatpush.msrb.mxu0 %v2099_v26  ;;  %v2071_v2 = vld [vmem:[#allocation16 + $0x70] sm:$0xff]  ;;  %v2108_v29 = vld [vmem:[#allocation16 + $0x198] sm:$0xff] }
 0x22c   :  { %2498 = vmatpush.msrb.mxu1 %v2163_v27  ;;  %2516 = vmatpush.msrb.mxu2 %v2235_v45  ;;  %v2135_v3 = vld [vmem:[#allocation16 + $0x270] sm:$0xff]  ;;  %v2172_v26 = vld [vmem:[#allocation16 + $0x398] sm:$0xff] }
 0x22d   :  { %2533 = vmatpush.msrb.mxu3 %v2311_v62  ;;  %2479 = vmatpush.msrb.mxu0 %v2095_v30  ;;  %v2207_v24 = vld [vmem:[#allocation16 + $0x4b0] sm:$0xff]  ;;  %v2244_v27 = vld [vmem:[#allocation16 + $0x5d8] sm:$0xff] }
 0x22e   :  { %2499 = vmatpush.msrb.mxu1 %v2159_v31  ;;  %2517 = vmatpush.msrb.mxu2 %v2231_v58  ;;  %v2283_v25 = vld [vmem:[#allocation16 + $0x710] sm:$0xff]  ;;  %v2104_v62 = vld [vmem:[#allocation16 + $0x178] sm:$0xff] }
 0x22f   :  { %2534 = vmatpush.msrb.mxu3 %v2307_v32  ;;  %2480 = vmatpush.msrb.mxu0 %v2091_v33  ;;  %v2067_v6 = vld [vmem:[#allocation16 + $0x50] sm:$0xff]  ;;  %v2168_v30 = vld [vmem:[#allocation16 + $0x378] sm:$0xff] }
 0x230   :  { %2500 = vmatpush.msrb.mxu1 %v2155_v34  ;;  %2518 = vmatpush.msrb.mxu2 %v2227_v35  ;;  %v2131_v7 = vld [vmem:[#allocation16 + $0x250] sm:$0xff]  ;;  %v2240_v31 = vld [vmem:[#allocation16 + $0x5b8] sm:$0xff] }
 0x231   :  { %2535 = vmatpush.msrb.mxu3 %v2303_v36  ;;  %2481 = vmatpush.msrb.mxu0 %v2087_v38  ;;  %v2203_v8 = vld [vmem:[#allocation16 + $0x490] sm:$0xff]  ;;  %v2100_v32 = vld [vmem:[#allocation16 + $0x158] sm:$0xff] }
 0x232   :  { %2501 = vmatpush.msrb.mxu1 %v2151_v42  ;;  %2519 = vmatpush.msrb.mxu2 %v2223_v43  ;;  %v2279_v39 = vld [vmem:[#allocation16 + $0x6f0] sm:$0xff]  ;;  %v2164_v33 = vld [vmem:[#allocation16 + $0x358] sm:$0xff] }
 0x233   :  { %2536 = vmatpush.msrb.mxu3 %v2299_v44  ;;  %2482 = vmatpush.msrb.mxu0 %v2083_v46  ;;  %v2063_v41 = vld [vmem:[#allocation16 + $0x30] sm:$0xff]  ;;  %v2236_v34 = vld [vmem:[#allocation16 + $0x598] sm:$0xff] }
 0x234   :  { %2502 = vmatpush.msrb.mxu1 %v2147_v47  ;;  %2520 = vmatpush.msrb.mxu2 %v2219_v53  ;;  %v2127_v9 = vld [vmem:[#allocation16 + $0x230] sm:$0xff]  ;;  %v2312_v35 = vld [vmem:[#allocation16 + $0x7f8] sm:$0xff] }
 0x235   :  { %2537 = vmatpush.msrb.mxu3 %v2295_v57  ;;  %2483 = vmatpush.msrb.mxu0 %v2079_v49  ;;  %v2199_v40 = vld [vmem:[#allocation16 + $0x470] sm:$0xff]  ;;  %v2096_v36 = vld [vmem:[#allocation16 + $0x138] sm:$0xff] }
 0x236   :  { %2503 = vmatpush.msrb.mxu1 %v2143_v50  ;;  %2521 = vmatpush.msrb.mxu2 %v2215_v51  ;;  %v2275_v37 = vld [vmem:[#allocation16 + $0x6d0] sm:$0xff]  ;;  %v2160_v38 = vld [vmem:[#allocation16 + $0x338] sm:$0xff] }
 0x237   :  { %2538 = vmatpush.msrb.mxu3 %v2291_v52  ;;  %2484 = vmatpush.msrb.mxu0 %v2075_v0  ;;  %v2059_v10 = vld [vmem:[#allocation16 + $0x10] sm:$0xff]  ;;  %v2232_v42 = vld [vmem:[#allocation16 + $0x578] sm:$0xff] }
 0x238   :  { %2504 = vmatpush.msrb.mxu1 %v2139_v59  ;;  %2522 = vmatpush.msrb.mxu2 %v2211_v61  ;;  %v2123_v28 = vld [vmem:[#allocation16 + $0x210] sm:$0xff]  ;;  %v2308_v43 = vld [vmem:[#allocation16 + $0x7d8] sm:$0xff] }
 0x239   :  { %2539 = vmatpush.msrb.mxu3 %v2287_v63  ;;  %2485 = vmatpush.msrb.mxu0 %v2071_v2  ;;  %v2195_v11 = vld [vmem:[#allocation16 + $0x450] sm:$0xff]  ;;  %v2092_v44 = vld [vmem:[#allocation16 + $0x118] sm:$0xff] }
 0x23a   :  { %2505 = vmatpush.msrb.mxu1 %v2135_v3  ;;  %2523 = vmatpush.msrb.mxu2 %v2207_v24  ;;  %v2271_v12 = vld [vmem:[#allocation16 + $0x6b0] sm:$0xff]  ;;  %v2156_v46 = vld [vmem:[#allocation16 + $0x318] sm:$0xff] }
 0x23b   :  { %2540 = vmatpush.msrb.mxu3 %v2283_v25  ;;  %2486 = vmatpush.msrb.mxu0 %v2067_v6  ;;  %v2191_v56 = vld [vmem:[#allocation16 + $0x430] sm:$0xff]  ;;  %v2228_v47 = vld [vmem:[#allocation16 + $0x558] sm:$0xff] }
 0x23c   :  { %2506 = vmatpush.msrb.mxu1 %v2131_v7  ;;  %2524 = vmatpush.msrb.mxu2 %v2203_v8  ;;  %v2267_v60 = vld [vmem:[#allocation16 + $0x690] sm:$0xff]  ;;  %v2304_v53 = vld [vmem:[#allocation16 + $0x7b8] sm:$0xff] }
 0x23d   :  { %2541 = vmatpush.msrb.mxu3 %v2279_v39  ;;  %2487 = vmatpush.msrb.mxu0 %v2063_v41  ;;  %v2187_v17 = vld [vmem:[#allocation16 + $0x410] sm:$0xff]  ;;  %v2088_v57 = vld [vmem:[#allocation16 + $0xf8] sm:$0xff] }
 0x23e   :  { %2507 = vmatpush.msrb.mxu1 %v2127_v9  ;;  %2525 = vmatpush.msrb.mxu2 %v2199_v40  ;;  %v2263_v19 = vld [vmem:[#allocation16 + $0x670] sm:$0xff]  ;;  %v2152_v49 = vld [vmem:[#allocation16 + $0x2f8] sm:$0xff] }
 0x23f   :  { %2542 = vmatpush.msrb.mxu3 %v2275_v37  ;;  %2488 = vmatpush.msrb.mxu0 %v2059_v10  ;;  %v2259_v23 = vld [vmem:[#allocation16 + $0x650] sm:$0xff]  ;;  %v2224_v50 = vld [vmem:[#allocation16 + $0x538] sm:$0xff] }
 0x240   :  { %2508 = vmatpush.msrb.mxu1 %v2123_v28  ;;  %2526 = vmatpush.msrb.mxu2 %v2195_v11  ;;  %v2255_v45 = vld [vmem:[#allocation16 + $0x630] sm:$0xff]  ;;  %v2300_v51 = vld [vmem:[#allocation16 + $0x798] sm:$0xff] }
 0x241   :  { %2543 = vmatpush.msrb.mxu3 %v2271_v12  ;;  %2489 = vmatmul.f32.vlgmr.msrb.gmra.mxu0 %v3165_v4  ;;  %v2251_v58 = vld [vmem:[#allocation16 + $0x610] sm:$0xff]  ;;  %v2084_v52 = vld [vmem:[#allocation16 + $0xd8] sm:$0xff] }
 0x242   :  { %2509 = vmatmul.f32.vlgmr.msrb.gmra.mxu1 %v3169_v5  ;;  %2553 = vmatpush.msra.mxu0 %v2120_v13  ;;  %v2148_v0 = vld [vmem:[#allocation16 + $0x2d8] sm:$0xff] }
 0x243   :  { %2573 = vmatpush.msra.mxu1 %v2184_v14  ;;  %2527 = vmatpush.msrb.mxu2 %v2191_v56  ;;  %v2220_v59 = vld [vmem:[#allocation16 + $0x518] sm:$0xff] }
 0x244   :  { %2544 = vmatpush.msrb.mxu3 %v2267_v60  ;;  %2554 = vmatpush.msra.mxu0 %v2116_v15  ;;  %v2296_v61 = vld [vmem:[#allocation16 + $0x778] sm:$0xff] }
 0x245   :  { %2574 = vmatpush.msra.mxu1 %v2180_v16  ;;  %2528 = vmatpush.msrb.mxu2 %v2187_v17  ;;  %v2080_v63 = vld [vmem:[#allocation16 + $0xb8] sm:$0xff] }
 0x246   :  { %2545 = vmatpush.msrb.mxu3 %v2263_v19  ;;  %2529 = vmatmul.f32.vlgmr.msrb.gmra.mxu2 %v3175_v20  ;;  %v2144_v2 = vld [vmem:[#allocation16 + $0x2b8] sm:$0xff] }
 0x247   :  { %2555 = vmatpush.msra.mxu0 %v2112_v1  ;;  %2575 = vmatpush.msra.mxu1 %v2176_v22  ;;  %v2216_v3 = vld [vmem:[#allocation16 + $0x4f8] sm:$0xff] }
 0x248   :  { %2593 = vmatpush.msra.mxu2 %v2248_v54  ;;  %2546 = vmatpush.msrb.mxu3 %v2259_v23  ;;  %v2292_v24 = vld [vmem:[#allocation16 + $0x758] sm:$0xff] }
 0x249   :  { %2556 = vmatpush.msra.mxu0 %v2108_v29  ;;  %2576 = vmatpush.msra.mxu1 %v2172_v26  ;;  %v2076_v25 = vld [vmem:[#allocation16 + $0x98] sm:$0xff] }
 0x24a   :  { %2594 = vmatpush.msra.mxu2 %v2244_v27  ;;  %2547 = vmatpush.msrb.mxu3 %v2255_v45  ;;  %v2140_v6 = vld [vmem:[#allocation16 + $0x298] sm:$0xff]  ;;  %v1674_v27 = vpop.f32.mrf.mxu0  ;;  %v1714_v45 = vpop.f32.mrf.mxu2 }
 0x24b   :  { %2557 = vmatpush.msra.mxu0 %v2104_v62  ;;  %2577 = vmatpush.msra.mxu1 %v2168_v30  ;;  %v2212_v7 = vld [vmem:[#allocation16 + $0x4d8] sm:$0xff]  ;;  %v1734_v62 = vpop.f32.mrf.mxu3 }
 0x24c   :  { %2595 = vmatpush.msra.mxu2 %v2240_v31  ;;  %2548 = vmatpush.msrb.mxu3 %v2251_v58  ;;  %v2288_v8 = vld [vmem:[#allocation16 + $0x738] sm:$0xff] }
 0x24d   :  { %2549 = vmatmul.f32.vlgmr.msrb.gmra.mxu3 %v3180_v18  ;;  %2558 = vmatpush.msra.mxu0 %v2100_v32  ;;  %v2072_v39 = vld [vmem:[#allocation16 + $0x78] sm:$0xff] }
 0x24e   :  { %2578 = vmatpush.msra.mxu1 %v2164_v33  ;;  %2596 = vmatpush.msra.mxu2 %v2236_v34  ;;  %v2136_v41 = vld [vmem:[#allocation16 + $0x278] sm:$0xff] }
 0x24f   :  { %2613 = vmatpush.msra.mxu3 %v2312_v35  ;;  %2559 = vmatpush.msra.mxu0 %v2096_v36  ;;  %v2208_v9 = vld [vmem:[#allocation16 + $0x4b8] sm:$0xff] }
 0x250   :  { %2579 = vmatpush.msra.mxu1 %v2160_v38  ;;  %2597 = vmatpush.msra.mxu2 %v2232_v42  ;;  %v2284_v40 = vld [vmem:[#allocation16 + $0x718] sm:$0xff] }
 0x251   :  { %2614 = vmatpush.msra.mxu3 %v2308_v43  ;;  %2560 = vmatpush.msra.mxu0 %v2092_v44  ;;  %v2068_v37 = vld [vmem:[#allocation16 + $0x58] sm:$0xff] }
 0x252   :  { %2580 = vmatpush.msra.mxu1 %v2156_v46  ;;  %2598 = vmatpush.msra.mxu2 %v2228_v47  ;;  %v2132_v10 = vld [vmem:[#allocation16 + $0x258] sm:$0xff]  ;;  %v1794_v31 = vpop.f32.mrf.mxu2 }
 0x253   :  { %2615 = vmatpush.msra.mxu3 %v2304_v53  ;;  %2561 = vmatpush.msra.mxu0 %v2088_v57  ;;  %v2204_v28 = vld [vmem:[#allocation16 + $0x498] sm:$0xff]  ;;  %v1814_v58 = vpop.f32.mrf.mxu3 }
 0x254   :  { %2581 = vmatpush.msra.mxu1 %v2152_v49  ;;  %2599 = vmatpush.msra.mxu2 %v2224_v50  ;;  %v2280_v11 = vld [vmem:[#allocation16 + $0x6f8] sm:$0xff] }
 0x255   :  { %2616 = vmatpush.msra.mxu3 %v2300_v51  ;;  %2562 = vmatpush.msra.mxu0 %v2084_v52  ;;  %v2064_v12 = vld [vmem:[#allocation16 + $0x38] sm:$0xff] }
 0x256   :  { %2582 = vmatpush.msra.mxu1 %v2148_v0  ;;  %2600 = vmatpush.msra.mxu2 %v2220_v59  ;;  %v2128_v13 = vld [vmem:[#allocation16 + $0x238] sm:$0xff] }
 0x257   :  { %2617 = vmatpush.msra.mxu3 %v2296_v61  ;;  %2563 = vmatpush.msra.mxu0 %v2080_v63  ;;  %v2200_v14 = vld [vmem:[#allocation16 + $0x478] sm:$0xff] }
 0x258   :  { %2583 = vmatpush.msra.mxu1 %v2144_v2  ;;  %2601 = vmatpush.msra.mxu2 %v2216_v3  ;;  %v2276_v56 = vld [vmem:[#allocation16 + $0x6d8] sm:$0xff] }
 0x259   :  { %2618 = vmatpush.msra.mxu3 %v2292_v24  ;;  %2564 = vmatpush.msra.mxu0 %v2076_v25  ;;  %v2060_v60 = vld [vmem:[#allocation16 + $0x18] sm:$0xff] }
 0x25a   :  { %2584 = vmatpush.msra.mxu1 %v2140_v6  ;;  %2602 = vmatpush.msra.mxu2 %v2212_v7  ;;  %v2124_v15 = vld [vmem:[#allocation16 + $0x218] sm:$0xff]  ;;  %v1874_v34 = vpop.f32.mrf.mxu2 }
 0x25b   :  { %2619 = vmatpush.msra.mxu3 %v2288_v8  ;;  %2565 = vmatpush.msra.mxu0 %v2072_v39  ;;  %v2196_v16 = vld [vmem:[#allocation16 + $0x458] sm:$0xff]  ;;  %v1894_v35 = vpop.f32.mrf.mxu3  ;;  %v2637_v39 = vld [vmem:[%s3213_s9] sm:$0xf]  ;;  %s2962_s9 = smov [#allocation17]  }
 0x25c   :  { %2585 = vmatpush.msra.mxu1 %v2136_v41  ;;  %2603 = vmatpush.msra.mxu2 %v2208_v9  ;;  %v2272_v17 = vld [vmem:[#allocation16 + $0x6b8] sm:$0xff]  ;;  %s2671_s24 = sshll.u32 %s2962_s9, 4  ;;  %s2672_s24 = int_to_ptr.vmem [resolvable:$true] %s2671_s24 }
 0x25d   :  { %2620 = vmatpush.msra.mxu3 %v2284_v40  ;;  %2566 = vmatpush.msra.mxu0 %v2068_v37  ;;  %v2192_v19 = vld [vmem:[#allocation16 + $0x438] sm:$0xff]  ;;  %v2640_v40 = vperm.slane %v2637_v39, 1 }
 0x25e   :  { %2586 = vmatpush.msra.mxu1 %v2132_v10  ;;  %2604 = vmatpush.msra.mxu2 %v2204_v28  ;;  %v2268_v1 = vld [vmem:[#allocation16 + $0x698] sm:$0xff]  ;;  %v2639_v10 = vperm.slane %v2637_v39, 0 }
 0x25f   :  { %2621 = vmatpush.msra.mxu3 %v2280_v11  ;;  %2567 = vmatpush.msra.mxu0 %v2064_v12  ;;  %v2188_v22 = vld [vmem:[#allocation16 + $0x418] sm:$0xff] }
 0x260   :  { %2587 = vmatpush.msra.mxu1 %v2128_v13  ;;  %2605 = vmatpush.msra.mxu2 %v2200_v14  ;;  %v2264_v54 = vld [vmem:[#allocation16 + $0x678] sm:$0xff] }
 0x261   :  { %2622 = vmatpush.msra.mxu3 %v2276_v56  ;;  %2568 = vmatpush.msra.mxu0 %v2060_v60  ;;  %v2260_v23 = vld [vmem:[#allocation16 + $0x658] sm:$0xff] }
 0x262   :  { %2588 = vmatpush.msra.mxu1 %v2124_v15  ;;  %2606 = vmatpush.msra.mxu2 %v2196_v16  ;;  %v2256_v29 = vld [vmem:[#allocation16 + $0x638] sm:$0xff]  ;;  %v1954_v38 = vpop.f32.mrf.mxu2 }
 0x263   :  { %2623 = vmatpush.msra.mxu3 %v2272_v17  ;;  %2569 = vmatmul.f32.vlgmr.msra.gmra.mxu0 %v3165_v4  ;;  %v2252_v26 = vld [vmem:[#allocation16 + $0x618] sm:$0xff]  ;;  %v1694_v4 = vpop.f32.mrf.mxu1  ;;  %v1974_v42 = vpop.f32.mrf.mxu3 }
 0x264   :  { %2589 = vmatmul.f32.vlgmr.msra.gmra.mxu1 %v3169_v5  ;;  %2607 = vmatpush.msra.mxu2 %v2192_v19  ;;  %v1754_v5 = vpop.f32.mrf.mxu0  ;;  %v1695_v15 = vadd.f32 %v1694_v4, %v1674_v27  ;;  %v2641_v4 = vperm.slane %v2637_v39, 2 }
 0x265   :  { %2624 = vmatpush.msra.mxu3 %v2268_v1  ;;  %v1755_v50 = vadd.f32 %v1754_v5, %v3147_v21 }
 0x266   :  { %2608 = vmatpush.msra.mxu2 %v2188_v22  ;;  %v1715_v17 = vadd.f32 %v1714_v45, %v1695_v15 }
 0x267   :  { %2625 = vmatpush.msra.mxu3 %v2264_v54  ;;  %2609 = vmatmul.f32.vlgmr.msra.gmra.mxu2 %v3175_v20 }
 0x268   :  { %v1735_v1 = vadd.f32 %v1734_v62, %v1715_v17 }
 0x269   :  { %2626 = vmatpush.msra.mxu3 %v2260_v23 }
 0x26a   :  { %v2034_v46 = vpop.f32.mrf.mxu2 }
 0x26b   :  { %2627 = vmatpush.msra.mxu3 %v2256_v29  ;;  %v1774_v30 = vpop.f32.mrf.mxu1 }
 0x26c   :  { %v1834_v32 = vpop.f32.mrf.mxu0  ;;  %v1775_v63 = vadd.f32 %v1774_v30, %v1755_v50 }
 0x26d   :  { %2628 = vmatpush.msra.mxu3 %v2252_v26  ;;  %v1835_v51 = vadd.f32 %v1834_v32, %v3151_v48 }
 0x26e   :  { %2629 = vmatmul.f32.vlgmr.msra.gmra.mxu3 %v3180_v18  ;;  %v2054_v18 = vpop.f32.mrf.mxu3  ;;  %v1795_v25 = vadd.f32 %v1794_v31, %v1775_v63 }
 0x270   :  { %v1815_v21 = vadd.f32 %v1814_v58, %v1795_v25 }
 0x273   :  { %v1854_v33 = vpop.f32.mrf.mxu1 }
 0x274   :  { %v1914_v20 = vpop.f32.mrf.mxu0  ;;  %v1855_v2 = vadd.f32 %v1854_v33, %v1835_v51 }
 0x275   :  { %v1915_v19 = vadd.f32 %v1914_v20, %v3156_v55  ;;  %v2642_v20 = vperm.slane %v2637_v39, 3 }
 0x276   :  { %v1875_v6 = vadd.f32 %v1874_v34, %v1855_v2 }
 0x278   :  { %v1895_v9 = vadd.f32 %v1894_v35, %v1875_v6 }
 0x27b   :  { %v1934_v36 = vpop.f32.mrf.mxu1 }
 0x27c   :  { %v1994_v43 = vpop.f32.mrf.mxu0  ;;  %v1935_v23 = vadd.f32 %v1934_v36, %v1915_v19 }
 0x27d   :  { %v1995_v29 = vadd.f32 %v1994_v43, %v1735_v1 }
 0x27e   :  { %v1955_v31 = vadd.f32 %v1954_v38, %v1935_v23 }
 0x280   :  { %v1975_v33 = vadd.f32 %v1974_v42, %v1955_v31 }
 0x283   :  { %v2014_v44 = vpop.f32.mrf.mxu1 }
 0x284   :  { %v2330_v47 = vpop.f32.mrf.mxu0  ;;  %v2015_v34 = vadd.f32 %v2014_v44, %v1995_v29 }
 0x285   :  { %v2370_v57 = vpop.f32.mrf.mxu2 }
 0x28b   :  { %v2350_v53 = vpop.f32.mrf.mxu1 }
 0x28c   :  { %v2390_v49 = vpop.f32.mrf.mxu3  ;;  %v2351_v59 = vadd.f32 %v2350_v53, %v2330_v47  ;;  %v2035_v47 = vadd.f32 %v2034_v46, %v2015_v34 }
 0x28e   :  { %v2371_v3 = vadd.f32 %v2370_v57, %v2351_v59  ;;  %v2055_v55 = vadd.f32 %v2054_v18, %v2035_v47 }
 0x290   :  { %v2391_v7 = vadd.f32 %v2390_v49, %v2371_v3 }
 0x292   :  { %v2633_v37 = vadd.f32 %v2391_v7, %v1815_v21 }
 0x294   :  { %v2647_v12 = vadd.f32 %v2639_v10, %v2633_v37 }
 0x29c   :  { %v2410_v52 = vpop.f32.mrf.mxu0 }
 0x29d   :  { %v2430_v0 = vpop.f32.mrf.mxu1 }
 0x29e   :  { %v2431_v24 = vadd.f32 %v2430_v0, %v2410_v52 }
 0x2a7   :  { %v2450_v61 = vpop.f32.mrf.mxu2 }
 0x2a8   :  { %v2451_v8 = vadd.f32 %v2450_v61, %v2431_v24 }
 0x2ae   :  { %v2470_v41 = vpop.f32.mrf.mxu3 }
 0x2af   :  { %v2471_v48 = vadd.f32 %v2470_v41, %v2451_v8 }
 0x2b1   :  { %v2634_v28 = vadd.f32 %v2471_v48, %v1895_v9 }
 0x2b3   :  { %v2648_v11 = vadd.f32 %v2640_v40, %v2634_v28 }
 0x2b5   :  { %v2655_v13 = vrot.slane %v2648_v11, 6 }
 0x2b7   :  { %v2659_v14 = vsel %vm2658_vm0, %v2647_v12, %v2655_v13 }
 0x2be   :  { %v2490_v56 = vpop.f32.mrf.mxu0 }
 0x2bf   :  { %v2510_v60 = vpop.f32.mrf.mxu1 }
 0x2c0   :  { %v2511_v22 = vadd.f32 %v2510_v60, %v2490_v56 }
 0x2c9   :  { %v2530_v16 = vpop.f32.mrf.mxu2 }
 0x2ca   :  { %v2531_v26 = vadd.f32 %v2530_v16, %v2511_v22 }
 0x2d0   :  { %v2550_v54 = vpop.f32.mrf.mxu3 }
 0x2d1   :  { %v2551_v58 = vadd.f32 %v2550_v54, %v2531_v26 }
 0x2d3   :  { %v2635_v27 = vadd.f32 %v2551_v58, %v1975_v33 }
 0x2d5   :  { %v2649_v57 = vadd.f32 %v2641_v4, %v2635_v27 }
 0x2d7   :  { %v2656_v38 = vrot.slane %v2649_v57, 4 }
 0x2e0   :  { %v2570_v5 = vpop.f32.mrf.mxu0 }
 0x2e1   :  { %v2590_v30 = vpop.f32.mrf.mxu1 }
 0x2e2   :  { %v2591_v35 = vadd.f32 %v2590_v30, %v2570_v5 }
 0x2ea   :  { %v2610_v32 = vpop.f32.mrf.mxu2 }
 0x2eb   :  { %v2611_v45 = vadd.f32 %v2610_v32, %v2591_v35 }
 0x2f1   :  { %v2630_v53 = vpop.f32.mrf.mxu3 }
 0x2f2   :  { %v2631_v62 = vadd.f32 %v2630_v53, %v2611_v45 }
 0x2f4   :  { %v2636_v36 = vadd.f32 %v2631_v62, %v2055_v55 }
 0x2f6   :  { %v2650_v43 = vadd.f32 %v2642_v20, %v2636_v36 }
 0x2f8   :  { %v2657_v42 = vrot.slane %v2650_v43, 2 }
 0x2fa   :  { %v2661_v44 = vsel %vm2660_vm1, %v2656_v38, %v2657_v42 }
 0x2fb   :  { %v2663_v46 = vsel %vm2662_vm2, %v2659_v14, %v2661_v44 }
 0x2fc   :  { %2665 = vst [vmem:[#allocation17] sm:$0xff] %v2663_v46 }
 0x2fd   :  { %2676 = dma.vmem_to_hbm [thread:$0]  %s2672_s24, 128, %s2674_s14, [#allocation4]  }
 0x2fe   :  { %2949 = dma.done.wait [#allocation4], 128  }
 0x2ff   :  { %2950 = vsyncadd [#allocation4], 4294967168 }
 0x300   :  { %2681 = vsyncpa [#allocation3], 1 }
 0x301   :  { %2682 = vsyncpa [#allocation6], 1 }
 0x302   :  { %2683 = vsyncpa [#allocation9], 1 }
 0x303   :  { %2684 = vsyncpa [#allocation12], 1 }
 0x304   :  { %2685 = vsyncpa [#allocation15], 1 }
 0x305   :  { %2686 = vsyncpa [#allocation4], 1 }

</bundles_post_ra>
